<compile_context>
chip_gen: v7x
topology: tpu7x:2x2x1
jax: 0.10.0
libtpu: 0.0.40
codegen_flags: <defaults>
</compile_context>

<pallas_src>
import functools

import jax
import jax.numpy as jnp
from jax.experimental import pallas as pl
from jax.experimental.pallas import tpu as pltpu

HIDDEN_PAD = 512    # fc hidden 500 -> 512 (lane-dense)
LOGIT_PAD = 128     # out_dim 10 -> 128 (lane-dense); sliced back after the kernel
LANE_TILE = 2048    # conv lane tile (multiple of 128); block ~1.2 MB, 2x-buffered
FC_ROW_TILE = 256   # fc head batch tile (matches v6e/v7x 256-wide MXU)


def _round_lanes(n, lane_tile=LANE_TILE):
    """Round a lane count up to a multiple of 128, and of lane_tile if tiled."""
    n128 = ((n + 127) // 128) * 128
    if n128 <= lane_tile:
        return n128
    return ((n128 + lane_tile - 1) // lane_tile) * lane_tile


# --------------------------- conv + relu + pool ----------------------------

def _conv_relu_pool_kernel(cols_ref, w_ref, b_ref, o_ref):
    # cols_ref: (4, K, TN) bf16  -- im2col patches, leading axis = pool position
    # w_ref:    (Cout, K) bf16   -- torch weight reshaped (Cout, Cin*kh*kw)
    # b_ref:    (Cout, 1) f32
    # o_ref:    (Cout, TN) f32   -- pooled, ReLU'd activation (channel-major)
    w = w_ref[...]
    m = None
    for dd in range(4):                       # static unroll: 4 MXU passes
        y = jnp.dot(w, cols_ref[dd], preferred_element_type=jnp.float32)
        m = y if m is None else jnp.maximum(m, y)      # 2x2 max-pool
    o_ref[...] = jnp.maximum(m + b_ref[...], 0.0)      # bias + ReLU, f32 store


def conv_relu_pool(cols, w_r, b_col, *, lane_tile=LANE_TILE):
    # cols: (4, K, Npp), w_r: (Cout, K), b_col: (Cout, 1) -> (Cout, Npp) f32
    # Npp is pre-rounded to a multiple of 128 (and of lane_tile when tiled),
    # so every block is full and every store is unmasked.
    _, K, Npp = cols.shape
    Cout = w_r.shape[0]
    block_n = Npp if Npp <= lane_tile else lane_tile
    grid_n = Npp // block_n
    return pl.pallas_call(
        _conv_relu_pool_kernel,
        out_shape=jax.ShapeDtypeStruct((Cout, Npp), jnp.float32),
        grid=(grid_n,),
        in_specs=[pl.BlockSpec((4, K, block_n), lambda n: (0, 0, n)),
                  pl.BlockSpec((Cout, K), lambda n: (0, 0)),
                  pl.BlockSpec((Cout, 1), lambda n: (0, 0))],
        out_specs=pl.BlockSpec((Cout, block_n), lambda n: (0, n)),
        compiler_params=pltpu.CompilerParams(
            dimension_semantics=("parallel",),
            vmem_limit_bytes=32 * 1024 * 1024,
            # Let XLA fuse the im2col slice/stack producer into the operand DMA
            # instead of materializing the ~20x-amplified cols array in HBM.
            allow_input_fusion=[True, False, False]),
    )(cols, w_r, b_col)


# --------------------- fused fc1/fc2/AFM-mix/fc3 head -----------------------

def _fc_head_kernel(x_ref, w1_ref, b1_ref, w2_ref, b2_ref, alpha_ref,
                    homo_ref, w3_ref, b3_ref, o_ref, logits_ref):
    # One batch tile: all three GEMMs + ReLUs + AFM mix; (bt, 512) intermediates
    # never leave VMEM.  GEMM operands bf16, accumulation + epilogues f32.
    h = jnp.dot(x_ref[...].astype(w1_ref.dtype), w1_ref[...],
                preferred_element_type=jnp.float32) + b1_ref[...]
    h = jnp.maximum(h, 0.0)
    o1 = jnp.dot(h.astype(w2_ref.dtype), w2_ref[...],
                 preferred_element_type=jnp.float32) + b2_ref[...]
    o1 = jnp.maximum(o1, 0.0)
    o = o1 * alpha_ref[...] + homo_ref[...]            # AFM mix (homo unscaled)
    o_ref[...] = o
    logits_ref[...] = jnp.dot(o.astype(w3_ref.dtype), w3_ref[...],
                              preferred_element_type=jnp.float32) + b3_ref[...]


def fc_head(xflat, w1, b1, w2, b2, alpha_p, homo_p, w3, b3, *,
            row_tile=FC_ROW_TILE):
    B, F = xflat.shape
    NP = w1.shape[1]
    LP = w3.shape[1]
    if B <= row_tile:
        bt, Bp = B, B
    else:
        bt = row_tile
        Bp = ((B + row_tile - 1) // row_tile) * row_tile
        if Bp != B:
            xflat = jnp.pad(xflat, ((0, Bp - B), (0, 0)))
            homo_p = jnp.pad(homo_p, ((0, Bp - B), (0, 0)))
    grid_b = Bp // bt
    o_pad, logits_pad = pl.pallas_call(
        _fc_head_kernel,
        out_shape=(jax.ShapeDtypeStruct((Bp, NP), jnp.float32),
                   jax.ShapeDtypeStruct((Bp, LP), jnp.float32)),
        grid=(grid_b,),
        in_specs=[pl.BlockSpec((bt, F), lambda i: (i, 0)),    # x tile streamed
                  pl.BlockSpec((F, NP), lambda i: (0, 0)),    # w1 resident
                  pl.BlockSpec((1, NP), lambda i: (0, 0)),    # b1
                  pl.BlockSpec((NP, NP), lambda i: (0, 0)),   # w2 resident
                  pl.BlockSpec((1, NP), lambda i: (0, 0)),    # b2
                  pl.BlockSpec((1, NP), lambda i: (0, 0)),    # alpha
                  pl.BlockSpec((bt, NP), lambda i: (i, 0)),   # homo tile streamed
                  pl.BlockSpec((NP, LP), lambda i: (0, 0)),   # w3 resident
                  pl.BlockSpec((1, LP), lambda i: (0, 0))],   # b3
        out_specs=(pl.BlockSpec((bt, NP), lambda i: (i, 0)),
                   pl.BlockSpec((bt, LP), lambda i: (i, 0))),
        compiler_params=pltpu.CompilerParams(
            dimension_semantics=("parallel",),
            vmem_limit_bytes=32 * 1024 * 1024),
    )(xflat, w1, b1, w2, b2, alpha_p, homo_p, w3, b3)
    return o_pad[:B], logits_pad[:B]


# ------------------------------- glue ops ----------------------------------

def _pool_im2col(x_cbhw, kh, kw, np_pad):
    # x: (C, B, H, W) -> (4, C*kh*kw, np_pad) patches, leading axis = 2x2 pool
    # position; K axis ordered (c, i, j) to match torch weight.reshape(Cout,-1).
    # Lane axis n = b*(Hp*Wp) + hp*Wp + wp, zero-padded up to np_pad.
    # (Producer is fusable into the pallas_call DMA via allow_input_fusion.)
    C, B, H, W = x_cbhw.shape
    Ho, Wo = H - kh + 1, W - kw + 1
    Hp, Wp = Ho // 2, Wo // 2
    blocks = []
    for di in range(2):
        for dj in range(2):
            slabs = [x_cbhw[:, :, di + i: di + i + 2 * Hp: 2,
                            dj + j: dj + j + 2 * Wp: 2]
                     for i in range(kh) for j in range(kw)]
            col = jnp.stack(slabs, axis=1)              # (C, kh*kw, B, Hp, Wp)
            blocks.append(col.reshape(C * kh * kw, B * Hp * Wp))
    cols = jnp.stack(blocks, axis=0)                    # (4, K, Np)
    Np = B * Hp * Wp
    if np_pad > Np:
        cols = jnp.pad(cols, ((0, 0), (0, 0), (0, np_pad - Np)))
    return cols


# ----------------------------- parameters ----------------------------------

def init_params(key, in_channels=3, n_kernels=4, out_dim=10):
    # Same shapes / init style as the torch module (uniform +-1/sqrt(fan_in)).
    def uni(k, shape, fan_in):
        bound = 1.0 / float(fan_in) ** 0.5
        return jax.random.uniform(k, shape, jnp.float32, -bound, bound)

    ks = jax.random.split(key, 10)
    fc1_in = 2 * n_kernels * 5 * 5
    return {
        "w1": uni(ks[0], (n_kernels, in_channels, 5, 5), in_channels * 25),
        "b1": uni(ks[1], (n_kernels,), in_channels * 25),
        "w2": uni(ks[2], (2 * n_kernels, n_kernels, 5, 5), n_kernels * 25),
        "b2": uni(ks[3], (2 * n_kernels,), n_kernels * 25),
        "w_fc1": uni(ks[4], (500, fc1_in), fc1_in),
        "b_fc1": uni(ks[5], (500,), fc1_in),
        "w_fc2": uni(ks[6], (500, 500), 500),
        "b_fc2": uni(ks[7], (500,), 500),
        "w_fc3": uni(ks[8], (out_dim, 500), 500),
        "b_fc3": uni(ks[9], (out_dim,), 500),
    }


def prepare_params(p):
    # One-time reshape / transpose / zero-pad / bf16-cast of torch-layout params
    # into the layouts the Pallas kernels consume (biases stay f32).
    def pad2(a, rows, cols):
        return jnp.pad(a, ((0, rows - a.shape[0]), (0, cols - a.shape[1])))

    n1 = p["w1"].shape[0]
    n2 = p["w2"].shape[0]
    f = p["w_fc1"].shape[1]
    return {
        "w1": p["w1"].reshape(n1, -1).astype(jnp.bfloat16),        # (C1, Cin*25)
        "b1": p["b1"].reshape(n1, 1).astype(jnp.float32),
        "w2": p["w2"].reshape(n2, -1).astype(jnp.bfloat16),        # (C2, C1*25)
        "b2": p["b2"].reshape(n2, 1).astype(jnp.float32),
        "w_fc1": pad2(p["w_fc1"].T, f, HIDDEN_PAD).astype(jnp.bfloat16),
        "b_fc1": pad2(p["b_fc1"].reshape(1, -1), 1, HIDDEN_PAD),
        "w_fc2": pad2(p["w_fc2"].T, HIDDEN_PAD, HIDDEN_PAD).astype(jnp.bfloat16),
        "b_fc2": pad2(p["b_fc2"].reshape(1, -1), 1, HIDDEN_PAD),
        "w_fc3": pad2(p["w_fc3"].T, HIDDEN_PAD, LOGIT_PAD).astype(jnp.bfloat16),
        "b_fc3": pad2(p["b_fc3"].reshape(1, -1), 1, LOGIT_PAD),
    }


def prepare_alpha(alpha):
    # One-time pad of the AFM mixing vector to the lane-dense hidden width.
    a = jnp.asarray(alpha, jnp.float32).reshape(1, -1)
    return jnp.pad(a, ((0, 0), (0, HIDDEN_PAD - a.shape[1])))


# ------------------------------- forward -----------------------------------

@functools.partial(jax.jit, static_argnames=("out_dim",))
def forward(prep, x_nchw, homo_rep, alpha, *, out_dim=10):
    B, _, H, W = x_nchw.shape
    kh = kw = 5

    # conv1 -> relu -> pool   (channel-major activations: (C, B, H, W))
    x_cbhw = jnp.transpose(x_nchw, (1, 0, 2, 3)).astype(jnp.bfloat16)
    Hp1, Wp1 = (H - kh + 1) // 2, (W - kw + 1) // 2
    Np1 = B * Hp1 * Wp1
    cols1 = _pool_im2col(x_cbhw, kh, kw, _round_lanes(Np1))
    y1 = conv_relu_pool(cols1, prep["w1"], prep["b1"])   # (C1, Npp1) f32
    C1 = prep["w1"].shape[0]
    y1 = y1[:, :Np1].reshape(C1, B, Hp1, Wp1).astype(jnp.bfloat16)

    # conv2 -> relu -> pool
    Hp2, Wp2 = (Hp1 - kh + 1) // 2, (Wp1 - kw + 1) // 2
    Np2 = B * Hp2 * Wp2
    cols2 = _pool_im2col(y1, kh, kw, _round_lanes(Np2))
    y2 = conv_relu_pool(cols2, prep["w2"], prep["b2"])   # (C2, Npp2) f32
    C2 = prep["w2"].shape[0]

    # flatten in torch's NCHW order: feature = c*(Hp2*Wp2) + h*Wp2 + w
    # TODO(synk): fold this tiny (B, C2*Hp2*Wp2) transpose into the conv2
    # epilogue (or a prep-time w_fc1 row permutation).
    xflat = (y2[:, :Np2].reshape(C2, B, Hp2 * Wp2)
               .transpose(1, 0, 2)
               .reshape(B, C2 * Hp2 * Wp2))

    # fused fc1 -> relu -> fc2 -> relu -> AFM mix -> fc3 (one kernel, B-gridded)
    d = homo_rep.shape[1]
    alpha_p = alpha if alpha.ndim == 2 else alpha.reshape(1, -1)
    alpha_p = alpha_p.astype(jnp.float32)
    if alpha_p.shape[-1] != HIDDEN_PAD:        # use prepare_alpha() to hoist this
        alpha_p = jnp.pad(alpha_p, ((0, 0), (0, HIDDEN_PAD - alpha_p.shape[-1])))
    homo_p = jnp.pad(homo_rep.astype(jnp.float32),
                     ((0, 0), (0, HIDDEN_PAD - d)))
    o_pad, logits_pad = fc_head(xflat, prep["w_fc1"], prep["b_fc1"],
                                prep["w_fc2"], prep["b_fc2"],
                                alpha_p, homo_p,
                                prep["w_fc3"], prep["b_fc3"])
    return logits_pad[:, :out_dim], o_pad[:, :d]


# --------------------------- pure-JAX reference -----------------------------

def ref_forward(p, x, homo_rep, alpha):
    def conv2d(x, w, b):
        y = jax.lax.conv_general_dilated(
            x, w, (1, 1), "VALID", dimension_numbers=("NCHW", "OIHW", "NCHW"))
        return y + b.reshape(1, -1, 1, 1)

    def pool(x):
        return jax.lax.reduce_window(x, -jnp.inf, jax.lax.max,
                                     (1, 1, 2, 2), (1, 1, 2, 2), "VALID")

    y = pool(jax.nn.relu(conv2d(x, p["w1"], p["b1"])))
    y = pool(jax.nn.relu(conv2d(y, p["w2"], p["b2"])))
    xf = y.reshape(x.shape[0], -1)
    h = jax.nn.relu(xf @ p["w_fc1"].T + p["b_fc1"])
    o1 = jax.nn.relu(h @ p["w_fc2"].T + p["b_fc2"])
    o = o1 * alpha + homo_rep
    logits = o @ p["w_fc3"].T + p["b_fc3"]
    return logits, o


if __name__ == "__main__":
    key = jax.random.PRNGKey(0)
    kp, kx, khm, ka = jax.random.split(key, 4)

    # fc1 expects 2*n_kernels*5*5 features -> 32x32 spatial input is forced by
    # the architecture; keep the model small via n_kernels=4.
    params = init_params(kp, in_channels=3, n_kernels=4, out_dim=10)
    prep = prepare_params(params)

    x = jax.random.normal(kx, (2, 3, 32, 32), jnp.float32)    # NCHW, as in torch
    homo_rep = jax.random.normal(khm, (2, 500), jnp.float32)  # homogeneous rep
    alpha = jax.random.uniform(ka, (500,), jnp.float32)       # mixing weights
    alpha_p = prepare_alpha(alpha)                            # hoisted pad

    logits, o = forward(prep, x, homo_rep, alpha_p, out_dim=10)
    jax.block_until_ready((logits, o))
    assert logits.shape == (2, 10) and o.shape == (2, 500)
    assert logits.dtype == jnp.float32 and o.dtype == jnp.float32

    # Tolerance-asserted pure-JAX f32 reference (kernel uses bf16 GEMM operands).
    ref_logits, ref_o = ref_forward(params, x, homo_rep, alpha)
    err_l = float(jnp.max(jnp.abs(logits - ref_logits)))
    err_o = float(jnp.max(jnp.abs(o - ref_o)))
    assert err_l < 1e-1 and err_o < 1e-1, (err_l, err_o)

    print("KERNEL_OK")
</pallas_src>

<mosaic_0001>
module attributes {stable_mosaic.version = 11 : i64} {
  func.func @_conv_relu_pool_kernel(%arg0: i32, %arg1: memref<4x75x512xbf16, #tpu.memory_space<vmem>>, %arg2: memref<4x75xbf16, #tpu.memory_space<vmem>>, %arg3: memref<4x1xf32, #tpu.memory_space<vmem>>, %arg4: memref<4x512xf32, #tpu.memory_space<vmem>>) attributes {dimension_semantics = [#tpu.dimension_semantics<parallel>], iteration_bounds = array<i64: 1>, scalar_prefetch = 0 : i64, scratch_operands = 0 : i64, tpu.core_type = #tpu.core_type<tc>, window_params = [{transform_indices = @transform_0, window_bounds = array<i64: 4, 75, 512>}, {pipeline_mode = #tpu.pipeline_mode<synchronous>, transform_indices = @transform_1, window_bounds = array<i64: 4, 75>}, {pipeline_mode = #tpu.pipeline_mode<synchronous>, transform_indices = @transform_2, window_bounds = array<i64: 4, 1>}, {transform_indices = @transform_3, window_bounds = array<i64: 4, 512>}]} {
    %c0 = arith.constant 0 : index
    %c0_0 = arith.constant 0 : index
    %0 = vector.load %arg2[%c0, %c0_0] : memref<4x75xbf16, #tpu.memory_space<vmem>>, vector<4x75xbf16>
    %c0_1 = arith.constant 0 : index
    %c0_2 = arith.constant 0 : index
    %c0_3 = arith.constant 0 : index
    %1 = vector.load %arg1[%c0_1, %c0_2, %c0_3] : memref<4x75x512xbf16, #tpu.memory_space<vmem>>, vector<1x75x512xbf16>
    %2 = vector.shape_cast %1 : vector<1x75x512xbf16> to vector<75x512xbf16>
    %cst = arith.constant dense<0.000000e+00> : vector<4x512xf32>
    %3 = tpu.matmul %0, %2, %cst {dimension_numbers = #tpu.dot_dimension_numbers<[1], [0], [0], [1], [0, 0, 1, 1], [], []>} : vector<4x75xbf16>, vector<75x512xbf16>, vector<4x512xf32> -> vector<4x512xf32>
    %c1 = arith.constant 1 : index
    %c0_4 = arith.constant 0 : index
    %c0_5 = arith.constant 0 : index
    %4 = vector.load %arg1[%c1, %c0_4, %c0_5] : memref<4x75x512xbf16, #tpu.memory_space<vmem>>, vector<1x75x512xbf16>
    %5 = vector.shape_cast %4 : vector<1x75x512xbf16> to vector<75x512xbf16>
    %cst_6 = arith.constant dense<0.000000e+00> : vector<4x512xf32>
    %6 = tpu.matmul %0, %5, %cst_6 {dimension_numbers = #tpu.dot_dimension_numbers<[1], [0], [0], [1], [0, 0, 1, 1], [], []>} : vector<4x75xbf16>, vector<75x512xbf16>, vector<4x512xf32> -> vector<4x512xf32>
    %7 = arith.maximumf %3, %6 : vector<4x512xf32>
    %c2 = arith.constant 2 : index
    %c0_7 = arith.constant 0 : index
    %c0_8 = arith.constant 0 : index
    %8 = vector.load %arg1[%c2, %c0_7, %c0_8] : memref<4x75x512xbf16, #tpu.memory_space<vmem>>, vector<1x75x512xbf16>
    %9 = vector.shape_cast %8 : vector<1x75x512xbf16> to vector<75x512xbf16>
    %cst_9 = arith.constant dense<0.000000e+00> : vector<4x512xf32>
    %10 = tpu.matmul %0, %9, %cst_9 {dimension_numbers = #tpu.dot_dimension_numbers<[1], [0], [0], [1], [0, 0, 1, 1], [], []>} : vector<4x75xbf16>, vector<75x512xbf16>, vector<4x512xf32> -> vector<4x512xf32>
    %11 = arith.maximumf %7, %10 : vector<4x512xf32>
    %c3 = arith.constant 3 : index
    %c0_10 = arith.constant 0 : index
    %c0_11 = arith.constant 0 : index
    %12 = vector.load %arg1[%c3, %c0_10, %c0_11] : memref<4x75x512xbf16, #tpu.memory_space<vmem>>, vector<1x75x512xbf16>
    %13 = vector.shape_cast %12 : vector<1x75x512xbf16> to vector<75x512xbf16>
    %cst_12 = arith.constant dense<0.000000e+00> : vector<4x512xf32>
    %14 = tpu.matmul %0, %13, %cst_12 {dimension_numbers = #tpu.dot_dimension_numbers<[1], [0], [0], [1], [0, 0, 1, 1], [], []>} : vector<4x75xbf16>, vector<75x512xbf16>, vector<4x512xf32> -> vector<4x512xf32>
    %15 = arith.maximumf %11, %14 : vector<4x512xf32>
    %c0_13 = arith.constant 0 : index
    %c0_14 = arith.constant 0 : index
    %16 = vector.load %arg3[%c0_13, %c0_14] : memref<4x1xf32, #tpu.memory_space<vmem>>, vector<4x1xf32>
    %17 = vector.broadcast %16 : vector<4x1xf32> to vector<4x512xf32>
    %18 = arith.addf %15, %17 : vector<4x512xf32>
    %cst_15 = arith.constant 0.000000e+00 : f32
    %19 = vector.broadcast %cst_15 : f32 to vector<4x512xf32>
    %20 = arith.maximumf %18, %19 : vector<4x512xf32>
    %c0_16 = arith.constant 0 : index
    %c0_17 = arith.constant 0 : index
    %21 = vector.load %arg4[%c0_16, %c0_17] : memref<4x512xf32, #tpu.memory_space<vmem>>, vector<4x512xf32>
    tpu.vector_store %arg4[%c0_16, %c0_17], %20 {strides = array<i32>} : memref<4x512xf32, #tpu.memory_space<vmem>>, vector<4x512xf32>,
    return
  }
  func.func @transform_0(%arg0: i32) -> (i32, i32, i32) {
    %c0_i32 = arith.constant 0 : i32
    %c0_i32_0 = arith.constant 0 : i32
    %c0_i32_1 = arith.constant 0 : i32
    return %c0_i32, %c0_i32_0, %arg0 : i32, i32, i32
  }
  func.func @transform_1(%arg0: i32) -> (i32, i32) {
    %c0_i32 = arith.constant 0 : i32
    %c0_i32_0 = arith.constant 0 : i32
    %c0_i32_1 = arith.constant 0 : i32
    return %c0_i32, %c0_i32_0 : i32, i32
  }
  func.func @transform_2(%arg0: i32) -> (i32, i32) {
    %c0_i32 = arith.constant 0 : i32
    %c0_i32_0 = arith.constant 0 : i32
    %c0_i32_1 = arith.constant 0 : i32
    return %c0_i32, %c0_i32_0 : i32, i32
  }
  func.func @transform_3(%arg0: i32) -> (i32, i32) {
    %c0_i32 = arith.constant 0 : i32
    %c0_i32_0 = arith.constant 0 : i32
    return %c0_i32, %arg0 : i32, i32
  }
}

module attributes {stable_mosaic.version = 11 : i64} {
  func.func @_fc_head_kernel(%arg0: i32, %arg1: memref<2x200xf32, #tpu.memory_space<vmem>>, %arg2: memref<200x512xbf16, #tpu.memory_space<vmem>>, %arg3: memref<1x512xf32, #tpu.memory_space<vmem>>, %arg4: memref<512x512xbf16, #tpu.memory_space<vmem>>, %arg5: memref<1x512xf32, #tpu.memory_space<vmem>>, %arg6: memref<1x512xf32, #tpu.memory_space<vmem>>, %arg7: memref<2x512xf32, #tpu.memory_space<vmem>>, %arg8: memref<512x128xbf16, #tpu.memory_space<vmem>>, %arg9: memref<1x128xf32, #tpu.memory_space<vmem>>, %arg10: memref<2x512xf32, #tpu.memory_space<vmem>>, %arg11: memref<2x128xf32, #tpu.memory_space<vmem>>) attributes {dimension_semantics = [#tpu.dimension_semantics<parallel>], iteration_bounds = array<i64: 1>, scalar_prefetch = 0 : i64, scratch_operands = 0 : i64, tpu.core_type = #tpu.core_type<tc>, window_params = [{transform_indices = @transform_0, window_bounds = array<i64: 2, 200>}, {pipeline_mode = #tpu.pipeline_mode<synchronous>, transform_indices = @transform_1, window_bounds = array<i64: 200, 512>}, {pipeline_mode = #tpu.pipeline_mode<synchronous>, transform_indices = @transform_2, window_bounds = array<i64: 1, 512>}, {pipeline_mode = #tpu.pipeline_mode<synchronous>, transform_indices = @transform_3, window_bounds = array<i64: 512, 512>}, {pipeline_mode = #tpu.pipeline_mode<synchronous>, transform_indices = @transform_4, window_bounds = array<i64: 1, 512>}, {pipeline_mode = #tpu.pipeline_mode<synchronous>, transform_indices = @transform_5, window_bounds = array<i64: 1, 512>}, {transform_indices = @transform_6, window_bounds = array<i64: 2, 512>}, {pipeline_mode = #tpu.pipeline_mode<synchronous>, transform_indices = @transform_7, window_bounds = array<i64: 512, 128>}, {pipeline_mode = #tpu.pipeline_mode<synchronous>, transform_indices = @transform_8, window_bounds = array<i64: 1, 128>}, {transform_indices = @transform_9, window_bounds = array<i64: 2, 512>}, {transform_indices = @transform_10, window_bounds = array<i64: 2, 128>}]} {
    %c0 = arith.constant 0 : index
    %c0_0 = arith.constant 0 : index
    %0 = vector.load %arg1[%c0, %c0_0] : memref<2x200xf32, #tpu.memory_space<vmem>>, vector<2x200xf32>
    %1 = arith.truncf %0 : vector<2x200xf32> to vector<2x200xbf16>
    %c0_1 = arith.constant 0 : index
    %c0_2 = arith.constant 0 : index
    %2 = vector.load %arg2[%c0_1, %c0_2] : memref<200x512xbf16, #tpu.memory_space<vmem>>, vector<200x512xbf16>
    %cst = arith.constant dense<0.000000e+00> : vector<2x512xf32>
    %3 = tpu.matmul %1, %2, %cst {dimension_numbers = #tpu.dot_dimension_numbers<[1], [0], [0], [1], [0, 0, 1, 1], [], []>} : vector<2x200xbf16>, vector<200x512xbf16>, vector<2x512xf32> -> vector<2x512xf32>
    %c0_3 = arith.constant 0 : index
    %c0_4 = arith.constant 0 : index
    %4 = vector.load %arg3[%c0_3, %c0_4] : memref<1x512xf32, #tpu.memory_space<vmem>>, vector<1x512xf32>
    %5 = vector.broadcast %4 : vector<1x512xf32> to vector<2x512xf32>
    %6 = arith.addf %3, %5 : vector<2x512xf32>
    %cst_5 = arith.constant 0.000000e+00 : f32
    %7 = vector.broadcast %cst_5 : f32 to vector<2x512xf32>
    %8 = arith.maximumf %6, %7 : vector<2x512xf32>
    %9 = arith.truncf %8 : vector<2x512xf32> to vector<2x512xbf16>
    %c0_6 = arith.constant 0 : index
    %c0_7 = arith.constant 0 : index
    %10 = vector.load %arg4[%c0_6, %c0_7] : memref<512x512xbf16, #tpu.memory_space<vmem>>, vector<512x512xbf16>
    %cst_8 = arith.constant dense<0.000000e+00> : vector<2x512xf32>
    %11 = tpu.matmul %9, %10, %cst_8 {dimension_numbers = #tpu.dot_dimension_numbers<[1], [0], [0], [1], [0, 0, 1, 1], [], []>} : vector<2x512xbf16>, vector<512x512xbf16>, vector<2x512xf32> -> vector<2x512xf32>
    %c0_9 = arith.constant 0 : index
    %c0_10 = arith.constant 0 : index
    %12 = vector.load %arg5[%c0_9, %c0_10] : memref<1x512xf32, #tpu.memory_space<vmem>>, vector<1x512xf32>
    %13 = vector.broadcast %12 : vector<1x512xf32> to vector<2x512xf32>
    %14 = arith.addf %11, %13 : vector<2x512xf32>
    %cst_11 = arith.constant 0.000000e+00 : f32
    %15 = vector.broadcast %cst_11 : f32 to vector<2x512xf32>
    %16 = arith.maximumf %14, %15 : vector<2x512xf32>
    %c0_12 = arith.constant 0 : index
    %c0_13 = arith.constant 0 : index
    %17 = vector.load %arg6[%c0_12, %c0_13] : memref<1x512xf32, #tpu.memory_space<vmem>>, vector<1x512xf32>
    %18 = vector.broadcast %17 : vector<1x512xf32> to vector<2x512xf32>
    %19 = arith.mulf %16, %18 : vector<2x512xf32>
    %c0_14 = arith.constant 0 : index
    %c0_15 = arith.constant 0 : index
    %20 = vector.load %arg7[%c0_14, %c0_15] : memref<2x512xf32, #tpu.memory_space<vmem>>, vector<2x512xf32>
    %21 = arith.addf %19, %20 : vector<2x512xf32>
    %c0_16 = arith.constant 0 : index
    %c0_17 = arith.constant 0 : index
    %22 = vector.load %arg10[%c0_16, %c0_17] : memref<2x512xf32, #tpu.memory_space<vmem>>, vector<2x512xf32>
    tpu.vector_store %arg10[%c0_16, %c0_17], %21 {strides = array<i32>} : memref<2x512xf32, #tpu.memory_space<vmem>>, vector<2x512xf32>,
    %23 = arith.truncf %21 : vector<2x512xf32> to vector<2x512xbf16>
    %c0_18 = arith.constant 0 : index
    %c0_19 = arith.constant 0 : index
    %24 = vector.load %arg8[%c0_18, %c0_19] : memref<512x128xbf16, #tpu.memory_space<vmem>>, vector<512x128xbf16>
    %cst_20 = arith.constant dense<0.000000e+00> : vector<2x128xf32>
    %25 = tpu.matmul %23, %24, %cst_20 {dimension_numbers = #tpu.dot_dimension_numbers<[1], [0], [0], [1], [0, 0, 1, 1], [], []>} : vector<2x512xbf16>, vector<512x128xbf16>, vector<2x128xf32> -> vector<2x128xf32>
    %c0_21 = arith.constant 0 : index
    %c0_22 = arith.constant 0 : index
    %26 = vector.load %arg9[%c0_21, %c0_22] : memref<1x128xf32, #tpu.memory_space<vmem>>, vector<1x128xf32>
    %27 = vector.broadcast %26 : vector<1x128xf32> to vector<2x128xf32>
    %28 = arith.addf %25, %27 : vector<2x128xf32>
    %c0_23 = arith.constant 0 : index
    %c0_24 = arith.constant 0 : index
    %29 = vector.load %arg11[%c0_23, %c0_24] : memref<2x128xf32, #tpu.memory_space<vmem>>, vector<2x128xf32>
    tpu.vector_store %arg11[%c0_23, %c0_24], %28 {strides = array<i32>} : memref<2x128xf32, #tpu.memory_space<vmem>>, vector<2x128xf32>,
    return
  }
  func.func @transform_0(%arg0: i32) -> (i32, i32) {
    %c0_i32 = arith.constant 0 : i32
    %c0_i32_0 = arith.constant 0 : i32
    return %arg0, %c0_i32 : i32, i32
  }
  func.func @transform_1(%arg0: i32) -> (i32, i32) {
    %c0_i32 = arith.constant 0 : i32
    %c0_i32_0 = arith.constant 0 : i32
    %c0_i32_1 = arith.constant 0 : i32
    return %c0_i32, %c0_i32_0 : i32, i32
  }
  func.func @transform_2(%arg0: i32) -> (i32, i32) {
    %c0_i32 = arith.constant 0 : i32
    %c0_i32_0 = arith.constant 0 : i32
    %c0_i32_1 = arith.constant 0 : i32
    return %c0_i32, %c0_i32_0 : i32, i32
  }
  func.func @transform_3(%arg0: i32) -> (i32, i32) {
    %c0_i32 = arith.constant 0 : i32
    %c0_i32_0 = arith.constant 0 : i32
    %c0_i32_1 = arith.constant 0 : i32
    return %c0_i32, %c0_i32_0 : i32, i32
  }
  func.func @transform_4(%arg0: i32) -> (i32, i32) {
    %c0_i32 = arith.constant 0 : i32
    %c0_i32_0 = arith.constant 0 : i32
    %c0_i32_1 = arith.constant 0 : i32
    return %c0_i32, %c0_i32_0 : i32, i32
  }
  func.func @transform_5(%arg0: i32) -> (i32, i32) {
    %c0_i32 = arith.constant 0 : i32
    %c0_i32_0 = arith.constant 0 : i32
    %c0_i32_1 = arith.constant 0 : i32
    return %c0_i32, %c0_i32_0 : i32, i32
  }
  func.func @transform_6(%arg0: i32) -> (i32, i32) {
    %c0_i32 = arith.constant 0 : i32
    %c0_i32_0 = arith.constant 0 : i32
    return %arg0, %c0_i32 : i32, i32
  }
  func.func @transform_7(%arg0: i32) -> (i32, i32) {
    %c0_i32 = arith.constant 0 : i32
    %c0_i32_0 = arith.constant 0 : i32
    %c0_i32_1 = arith.constant 0 : i32
    return %c0_i32, %c0_i32_0 : i32, i32
  }
  func.func @transform_8(%arg0: i32) -> (i32, i32) {
    %c0_i32 = arith.constant 0 : i32
    %c0_i32_0 = arith.constant 0 : i32
    %c0_i32_1 = arith.constant 0 : i32
    return %c0_i32, %c0_i32_0 : i32, i32
  }
  func.func @transform_9(%arg0: i32) -> (i32, i32) {
    %c0_i32 = arith.constant 0 : i32
    %c0_i32_0 = arith.constant 0 : i32
    return %arg0, %c0_i32 : i32, i32
  }
  func.func @transform_10(%arg0: i32) -> (i32, i32) {
    %c0_i32 = arith.constant 0 : i32
    %c0_i32_0 = arith.constant 0 : i32
    return %arg0, %c0_i32 : i32, i32
  }
}

module attributes {stable_mosaic.version = 11 : i64} {
  func.func @_conv_relu_pool_kernel(%arg0: i32, %arg1: memref<4x100x128xbf16, #tpu.memory_space<vmem>>, %arg2: memref<8x100xbf16, #tpu.memory_space<vmem>>, %arg3: memref<8x1xf32, #tpu.memory_space<vmem>>, %arg4: memref<8x128xf32, #tpu.memory_space<vmem>>) attributes {dimension_semantics = [#tpu.dimension_semantics<parallel>], iteration_bounds = array<i64: 1>, scalar_prefetch = 0 : i64, scratch_operands = 0 : i64, tpu.core_type = #tpu.core_type<tc>, window_params = [{transform_indices = @transform_0, window_bounds = array<i64: 4, 100, 128>}, {pipeline_mode = #tpu.pipeline_mode<synchronous>, transform_indices = @transform_1, window_bounds = array<i64: 8, 100>}, {pipeline_mode = #tpu.pipeline_mode<synchronous>, transform_indices = @transform_2, window_bounds = array<i64: 8, 1>}, {transform_indices = @transform_3, window_bounds = array<i64: 8, 128>}]} {
    %c0 = arith.constant 0 : index
    %c0_0 = arith.constant 0 : index
    %0 = vector.load %arg2[%c0, %c0_0] : memref<8x100xbf16, #tpu.memory_space<vmem>>, vector<8x100xbf16>
    %c0_1 = arith.constant 0 : index
    %c0_2 = arith.constant 0 : index
    %c0_3 = arith.constant 0 : index
    %1 = vector.load %arg1[%c0_1, %c0_2, %c0_3] : memref<4x100x128xbf16, #tpu.memory_space<vmem>>, vector<1x100x128xbf16>
    %2 = vector.shape_cast %1 : vector<1x100x128xbf16> to vector<100x128xbf16>
    %cst = arith.constant dense<0.000000e+00> : vector<8x128xf32>
    %3 = tpu.matmul %0, %2, %cst {dimension_numbers = #tpu.dot_dimension_numbers<[1], [0], [0], [1], [0, 0, 1, 1], [], []>} : vector<8x100xbf16>, vector<100x128xbf16>, vector<8x128xf32> -> vector<8x128xf32>
    %c1 = arith.constant 1 : index
    %c0_4 = arith.constant 0 : index
    %c0_5 = arith.constant 0 : index
    %4 = vector.load %arg1[%c1, %c0_4, %c0_5] : memref<4x100x128xbf16, #tpu.memory_space<vmem>>, vector<1x100x128xbf16>
    %5 = vector.shape_cast %4 : vector<1x100x128xbf16> to vector<100x128xbf16>
    %cst_6 = arith.constant dense<0.000000e+00> : vector<8x128xf32>
    %6 = tpu.matmul %0, %5, %cst_6 {dimension_numbers = #tpu.dot_dimension_numbers<[1], [0], [0], [1], [0, 0, 1, 1], [], []>} : vector<8x100xbf16>, vector<100x128xbf16>, vector<8x128xf32> -> vector<8x128xf32>
    %7 = arith.maximumf %3, %6 : vector<8x128xf32>
    %c2 = arith.constant 2 : index
    %c0_7 = arith.constant 0 : index
    %c0_8 = arith.constant 0 : index
    %8 = vector.load %arg1[%c2, %c0_7, %c0_8] : memref<4x100x128xbf16, #tpu.memory_space<vmem>>, vector<1x100x128xbf16>
    %9 = vector.shape_cast %8 : vector<1x100x128xbf16> to vector<100x128xbf16>
    %cst_9 = arith.constant dense<0.000000e+00> : vector<8x128xf32>
    %10 = tpu.matmul %0, %9, %cst_9 {dimension_numbers = #tpu.dot_dimension_numbers<[1], [0], [0], [1], [0, 0, 1, 1], [], []>} : vector<8x100xbf16>, vector<100x128xbf16>, vector<8x128xf32> -> vector<8x128xf32>
    %11 = arith.maximumf %7, %10 : vector<8x128xf32>
    %c3 = arith.constant 3 : index
    %c0_10 = arith.constant 0 : index
    %c0_11 = arith.constant 0 : index
    %12 = vector.load %arg1[%c3, %c0_10, %c0_11] : memref<4x100x128xbf16, #tpu.memory_space<vmem>>, vector<1x100x128xbf16>
    %13 = vector.shape_cast %12 : vector<1x100x128xbf16> to vector<100x128xbf16>
    %cst_12 = arith.constant dense<0.000000e+00> : vector<8x128xf32>
    %14 = tpu.matmul %0, %13, %cst_12 {dimension_numbers = #tpu.dot_dimension_numbers<[1], [0], [0], [1], [0, 0, 1, 1], [], []>} : vector<8x100xbf16>, vector<100x128xbf16>, vector<8x128xf32> -> vector<8x128xf32>
    %15 = arith.maximumf %11, %14 : vector<8x128xf32>
    %c0_13 = arith.constant 0 : index
    %c0_14 = arith.constant 0 : index
    %16 = vector.load %arg3[%c0_13, %c0_14] : memref<8x1xf32, #tpu.memory_space<vmem>>, vector<8x1xf32>
    %17 = vector.broadcast %16 : vector<8x1xf32> to vector<8x128xf32>
    %18 = arith.addf %15, %17 : vector<8x128xf32>
    %cst_15 = arith.constant 0.000000e+00 : f32
    %19 = vector.broadcast %cst_15 : f32 to vector<8x128xf32>
    %20 = arith.maximumf %18, %19 : vector<8x128xf32>
    %c0_16 = arith.constant 0 : index
    %c0_17 = arith.constant 0 : index
    %21 = vector.load %arg4[%c0_16, %c0_17] : memref<8x128xf32, #tpu.memory_space<vmem>>, vector<8x128xf32>
    tpu.vector_store %arg4[%c0_16, %c0_17], %20 {strides = array<i32>} : memref<8x128xf32, #tpu.memory_space<vmem>>, vector<8x128xf32>,
    return
  }
  func.func @transform_0(%arg0: i32) -> (i32, i32, i32) {
    %c0_i32 = arith.constant 0 : i32
    %c0_i32_0 = arith.constant 0 : i32
    %c0_i32_1 = arith.constant 0 : i32
    return %c0_i32, %c0_i32_0, %arg0 : i32, i32, i32
  }
  func.func @transform_1(%arg0: i32) -> (i32, i32) {
    %c0_i32 = arith.constant 0 : i32
    %c0_i32_0 = arith.constant 0 : i32
    %c0_i32_1 = arith.constant 0 : i32
    return %c0_i32, %c0_i32_0 : i32, i32
  }
  func.func @transform_2(%arg0: i32) -> (i32, i32) {
    %c0_i32 = arith.constant 0 : i32
    %c0_i32_0 = arith.constant 0 : i32
    %c0_i32_1 = arith.constant 0 : i32
    return %c0_i32, %c0_i32_0 : i32, i32
  }
  func.func @transform_3(%arg0: i32) -> (i32, i32) {
    %c0_i32 = arith.constant 0 : i32
    %c0_i32_0 = arith.constant 0 : i32
    return %c0_i32, %arg0 : i32, i32
  }
}

</mosaic_0001>

<bundles_post_ra>
// kernel: forward.6
= control target key start
LH: loop header
LB: loop body
LE: loop exit
PB: predicated region body
PF: predicated region fallthrough
CT: control target
= control target key end

     0   :  { %s13993_s0 = inlined_call_operand.vmem [shape: bf16[4,75], index: 0, kind: input, shape index: {}]   ;;  %s13994_s1 = inlined_call_operand.vmem [shape: f32[4,1], index: 1, kind: input, shape index: {}]   ;;  %s13995_s2 = inlined_call_operand.vmem [shape: bf16[1,75,392], index: 2, kind: input, shape index: {}]   ;;  %s13996_s3 = inlined_call_operand.<no memory space> [shape: bf16[], index: 3, kind: input, shape index: {}]   ;;  %s13997_s4 = inlined_call_operand.vmem [shape: bf16[1,75,392], index: 4, kind: input, shape index: {}]   ;;  %s13998_s5 = inlined_call_operand.vmem [shape: bf16[1,75,392], index: 5, kind: input, shape index: {}]   ;;  %s13999_s6 = inlined_call_operand.<no memory space> [shape: s32[], index: 6, kind: input, shape index: {}]   ;;  %s14000_s7 = inlined_call_operand.vmem [shape: bf16[1,75,392], index: 7, kind: input, shape index: {}]   ;;  %s14001_s8 = inlined_call_operand.<no memory space> [shape: bf16[], index: 8, kind: input, shape index: {}]   ;;  %s14002_s9 = inlined_call_operand.vmem [shape: f32[4,512], index: 9, kind: output, shape index: {}]  }
   0x1   :  { %v14_v0 = vstv %s13996_s3  ;;  %v29_v1 = vstv %s13999_s6  ;;  %v35_v2 = vstv %s14001_s8 }
   0x2   :  { %v12460_v3 = vunpack.i.l.bf16 %v14_v0  ;;  %v12462_v4 = vunpack.i.l.bf16 %v35_v2 }
   0x3   :  { %v226_v5 = vld [vmem:[%s14000_s7] sm:$0xff]   ;;  %v239_v6 = vlaneseq  ;;  %v12044_v7 = vld [vmem:[%s14000_s7 + $0x10] sm:$0xff]   ;;  %v12036_v8 = vld [vmem:[%s14000_s7 + $0x8] sm:$0xff]   ;;  %v12398_v55 = vmov 0.0   ;;  %vm11240_vm5 = vcmask 1044480   ;;  %vm11241_vm6 = vcmask 1045504  }
   0x4   :  { %v227_v9 = vunpack.c.l.bf16 %v226_v5  ;;  %v338_v10 = vunpack.c.h.bf16 %v226_v5  ;;  %v674_v11 = vunpack.c.l.bf16 %v12044_v7  ;;  %v786_v12 = vunpack.c.h.bf16 %v12044_v7  ;;  %v12052_v13 = vld [vmem:[%s14000_s7 + $0x18] sm:$0xff]   ;;  %v12479_v14 = vld [vmem:[%s14000_s7 + $0x20] sm:$0xff]   ;;  %v12484_v15 = vld [vmem:[%s14000_s7 + $0x30] sm:$0xff]  }
   0x5   :  { %v240_v16 = vand.u32 127, %v239_v6  ;;  %v450_v17 = vunpack.c.l.bf16 %v12036_v8  ;;  %v562_v18 = vunpack.c.h.bf16 %v12036_v8  ;;  %v898_v19 = vunpack.c.l.bf16 %v12052_v13 }
   0x6   :  { %v1010_v20 = vunpack.c.h.bf16 %v12052_v13  ;;  %v1122_v21 = vunpack.c.l.bf16 %v12479_v14  ;;  %v1234_v22 = vunpack.c.h.bf16 %v12479_v14  ;;  %v1570_v23 = vunpack.c.l.bf16 %v12484_v15 }
   0x7   :  { %vm12490_vm0 = vcmp.lt.s32.totalorder %v240_v16, %v29_v1  ;;  %v353_v25 = vadd.s32 128, %v240_v16  ;;  %v465_v26 = vadd.s32 256, %v240_v16  ;;  %v12494_v27 = vadd.s32 384, %v240_v16  ;;  %v12068_v16 = vld [vmem:[%s14000_s7 + $0x28] sm:$0xff]  }
   0x8   :  { %v250_v28 = vsel %vm12490_vm0, %v227_v9, %v12462_v4  ;;  %v12503_v29 = vsel %vm12490_vm0, %v12460_v3, %v12462_v4  ;;  %v697_v30 = vsel %vm12490_vm0, %v674_v11, %v12462_v4  ;;  %v1145_v31 = vsel %vm12490_vm0, %v1122_v21, %v12462_v4 }
   0x9   :  { %v258_v32 = vmax.f32 %v250_v28, %v12503_v29  ;;  %vm12512_vm1 = vcmp.lt.s32.totalorder %v353_v25, %v29_v1  ;;  %v705_v34 = vmax.f32 %v697_v30, %v12503_v29  ;;  %vm12517_vm2 = vcmp.lt.s32.totalorder %v465_v26, %v29_v1 }
   0xa   :  { %v361_v36 = vsel %vm12512_vm1, %v338_v10, %v12462_v4  ;;  %v12528_v37 = vsel %vm12512_vm1, %v12460_v3, %v12462_v4  ;;  %v809_v38 = vsel %vm12512_vm1, %v786_v12, %v12462_v4  ;;  %v473_v39 = vsel %vm12517_vm2, %v450_v17, %v12462_v4 }
   0xb   :  { %v266_v40 = vmax.f32 %v258_v32, %v12503_v29  ;;  %v369_v41 = vmax.f32 %v361_v36, %v12528_v37  ;;  %v713_v42 = vmax.f32 %v705_v34, %v12503_v29  ;;  %v817_v43 = vmax.f32 %v809_v38, %v12528_v37  ;;  %v12084_v38 = vld [vmem:[%s14000_s7 + $0x38] sm:$0xff]  }
   0xc   :  { %v12544_v44 = vsel %vm12517_vm2, %v12460_v3, %v12462_v4  ;;  %vm572_vm3 = vcmp.lt.s32.totalorder %v12494_v27, 392  ;;  %vm12548_vm4 = vcmp.lt.s32.totalorder %v12494_v27, %v29_v1  ;;  %v921_v46 = vsel %vm12517_vm2, %v898_v19, %v12462_v4 }
   0xd   :  { %v274_v47 = vmax.f32 %v266_v40, %v12503_v29  ;;  %v377_v48 = vmax.f32 %v369_v41, %v12528_v37  ;;  %v721_v49 = vmax.f32 %v713_v42, %v12503_v29  ;;  %v825_v50 = vmax.f32 %v817_v43, %v12528_v37 }
   0xe   :  { %v481_v51 = vmax.f32 %v473_v39, %v12544_v44  ;;  %v573_v52 = vsel %vm572_vm3, %v562_v18, %v12460_v3  ;;  %v12567_v53 = vsel %vm12548_vm4, %v12460_v3, %v12462_v4  ;;  %v929_v54 = vmax.f32 %v921_v46, %v12544_v44 }
   0xf   :  { %v276_v56 = vpack.c.bf16 %v12398_v55, %v274_v47  ;;  %v385_v57 = vmax.f32 %v377_v48, %v12528_v37  ;;  %v724_v58 = vpack.c.bf16 %v12398_v55, %v721_v49  ;;  %v833_v59 = vmax.f32 %v825_v50, %v12528_v37  ;;  %v12092_v49 = vld [vmem:[%s14000_s7 + $0x40] sm:$0xff]  }
  0x10   :  { %v489_v60 = vmax.f32 %v481_v51, %v12544_v44  ;;  %v585_v61 = vsel %vm12548_vm4, %v573_v52, %v12462_v4  ;;  %v937_v62 = vmax.f32 %v929_v54, %v12544_v44  ;;  %v1021_v63 = vsel %vm572_vm3, %v1010_v20, %v12460_v3 }
  0x11   :  { %278 = vst [vmem:[#allocation22] sm:$0xf] %v276_v56  ;;  %v388_v0 = vpack.c.bf16 %v12398_v55, %v385_v57  ;;  %726 = vst [vmem:[#allocation22 + $0x10] sm:$0xf] %v724_v58  ;;  %v836_v1 = vpack.c.bf16 %v12398_v55, %v833_v59  ;;  %v593_v2 = vmax.f32 %v585_v61, %v12567_v53  ;;  %v1682_v14 = vunpack.c.h.bf16 %v12484_v15 }
  0x12   :  { %v1033_v5 = vsel %vm12548_vm4, %v1021_v63, %v12462_v4  ;;  %v497_v7 = vmax.f32 %v489_v60, %v12544_v44  ;;  %v945_v8 = vmax.f32 %v937_v62, %v12544_v44  ;;  %v1153_v10 = vmax.f32 %v1145_v31, %v12503_v29  ;;  %v12108_v62 = vld [vmem:[%s14000_s7 + $0x50] sm:$0xff]  }
  0x13   :  { %v1041_v9 = vmax.f32 %v1033_v5, %v12567_v53  ;;  %390 = vst [vmem:[#allocation22 + $0x4] sm:$0xf] %v388_v0  ;;  %838 = vst [vmem:[#allocation22 + $0x14] sm:$0xf] %v836_v1  ;;  %v601_v11 = vmax.f32 %v593_v2, %v12567_v53  ;;  %v1257_v12 = vsel %vm12512_vm1, %v1234_v22, %v12462_v4  ;;  %v1346_v30 = vunpack.c.l.bf16 %v12068_v16 }
  0x14   :  { %v1593_v13 = vsel %vm12490_vm0, %v1570_v23, %v12462_v4  ;;  %v500_v17 = vpack.c.bf16 %v12398_v55, %v497_v7  ;;  %v948_v18 = vpack.c.bf16 %v12398_v55, %v945_v8  ;;  %v1161_v20 = vmax.f32 %v1153_v10, %v12503_v29 }
  0x15   :  { %v1049_v19 = vmax.f32 %v1041_v9, %v12567_v53  ;;  %v609_v21 = vmax.f32 %v601_v11, %v12567_v53  ;;  %v1265_v22 = vmax.f32 %v1257_v12, %v12528_v37  ;;  %v1601_v23 = vmax.f32 %v1593_v13, %v12503_v29 }
  0x16   :  { %v1705_v15 = vsel %vm12512_vm1, %v1682_v14, %v12462_v4  ;;  %502 = vst [vmem:[#allocation22 + $0x8] sm:$0xf] %v500_v17  ;;  %950 = vst [vmem:[#allocation22 + $0x18] sm:$0xf] %v948_v18  ;;  %v1169_v26 = vmax.f32 %v1161_v20, %v12503_v29  ;;  %v1458_v36 = vunpack.c.h.bf16 %v12068_v16  ;;  %v1369_v42 = vsel %vm12517_vm2, %v1346_v30, %v12462_v4 }
  0x17   :  { %v1057_v25 = vmax.f32 %v1049_v19, %v12567_v53  ;;  %v1713_v28 = vmax.f32 %v1705_v15, %v12528_v37  ;;  %v612_v31 = vpack.c.bf16 %v12398_v55, %v609_v21  ;;  %v1273_v32 = vmax.f32 %v1265_v22, %v12528_v37  ;;  %v12100_v19 = vld [vmem:[%s14000_s7 + $0x48] sm:$0xff]  }
  0x18   :  { %v1609_v34 = vmax.f32 %v1601_v23, %v12503_v29  ;;  %v1172_v40 = vpack.c.bf16 %v12398_v55, %v1169_v26  ;;  %v1377_v47 = vmax.f32 %v1369_v42, %v12544_v44  ;;  %v1469_v48 = vsel %vm572_vm3, %v1458_v36, %v12460_v3  ;;  %v12279_v57 = vld [vmem:[#allocation22] ss:$16 sps:$4 sm:$0xff]  }
  0x19   :  { %v1060_v39 = vpack.c.bf16 %v12398_v55, %v1057_v25  ;;  %v1721_v41 = vmax.f32 %v1713_v28, %v12528_v37  ;;  %614 = vst [vmem:[#allocation22 + $0xc] sm:$0xf] %v612_v31  ;;  %v1281_v43 = vmax.f32 %v1273_v32, %v12528_v37  ;;  %v1481_v52 = vsel %vm12548_vm4, %v1469_v48, %v12462_v4 }
  0x1a   :  { %v1617_v46 = vmax.f32 %v1609_v34, %v12503_v29  ;;  %v12277_v50 = vld [vmem:[#allocation22 + $0x4] ss:$16 sps:$4 sm:$0xff]   ;;  %1174 = vst [vmem:[#allocation22 + $0x20] sm:$0xf] %v1172_v40  ;;  %v1794_v54 = vunpack.c.l.bf16 %v12084_v38  ;;  %v1906_v56 = vunpack.c.h.bf16 %v12084_v38  ;;  %v1385_v60 = vmax.f32 %v1377_v47, %v12544_v44 }
  0x1b   :  { %1062 = vst [vmem:[#allocation22 + $0x1c] sm:$0xf] %v1060_v39  ;;  %v1729_v51 = vmax.f32 %v1721_v41, %v12528_v37  ;;  %v1284_v58 = vpack.c.bf16 %v12398_v55, %v1281_v43  ;;  %v1489_v61 = vmax.f32 %v1481_v52, %v12567_v53  ;;  %11256 = vmatprep.subr.bf16.mxu0 %v12277_v50  ;;  %v2018_v2 = vunpack.c.l.bf16 %v12092_v49  ;;  %v12116_v43 = vld [vmem:[%s14000_s7 + $0x58] sm:$0xff]  }
  0x1c   :  { %v1620_v59 = vpack.c.bf16 %v12398_v55, %v1617_v46  ;;  %v1817_v0 = vsel %vm12517_vm2, %v1794_v54, %v12462_v4  ;;  %v1917_v1 = vsel %vm572_vm3, %v1906_v56, %v12460_v3  ;;  %11257 = vmatpush1.bf16.msra.mxu0 %v12279_v57  ;;  %v1393_v5 = vmax.f32 %v1385_v60, %v12544_v44 }
  0x1d   :  { %v1732_v63 = vpack.c.bf16 %v12398_v55, %v1729_v51  ;;  %1286 = vst [vmem:[#allocation22 + $0x24] sm:$0xf] %v1284_v58  ;;  %v1497_v7 = vmax.f32 %v1489_v61, %v12567_v53  ;;  %v1825_v8 = vmax.f32 %v1817_v0, %v12544_v44  ;;  %v1929_v9 = vsel %vm12548_vm4, %v1917_v1, %v12462_v4  ;;  %v12282_v25 = vld [vmem:[#allocation22 + $0x8] ss:$16 sps:$4 sm:$0xff]  }
  0x1e   :  { %1622 = vst [vmem:[#allocation22 + $0x30] sm:$0xf] %v1620_v59  ;;  %v1937_v10 = vmax.f32 %v1929_v9, %v12567_v53  ;;  %v2041_v11 = vsel %vm12490_vm0, %v2018_v2, %v12462_v4  ;;  %v2130_v12 = vunpack.c.h.bf16 %v12092_v49  ;;  %v2466_v13 = vunpack.c.l.bf16 %v12108_v62  ;;  %v12124_v2 = vld [vmem:[%s14000_s7 + $0x60] sm:$0xff]  }
  0x1f   :  { %1734 = vst [vmem:[#allocation22 + $0x34] sm:$0xf] %v1732_v63  ;;  %v1396_v14 = vpack.c.bf16 %v12398_v55, %v1393_v5  ;;  %v1505_v16 = vmax.f32 %v1497_v7, %v12567_v53  ;;  %v1833_v17 = vmax.f32 %v1825_v8, %v12544_v44  ;;  %v2049_v18 = vmax.f32 %v2041_v11, %v12503_v29 }
  0x20   :  { %v1945_v20 = vmax.f32 %v1937_v10, %v12567_v53  ;;  %v2153_v21 = vsel %vm12512_vm1, %v2130_v12, %v12462_v4  ;;  %v2489_v22 = vsel %vm12490_vm0, %v2466_v13, %v12462_v4  ;;  %v2578_v23 = vunpack.c.h.bf16 %v12108_v62  ;;  %v12140_v10 = vld [vmem:[%s14000_s7 + $0x70] sm:$0xff]  }
  0x21   :  { %1398 = vst [vmem:[#allocation22 + $0x28] sm:$0xf] %v1396_v14  ;;  %v1508_v26 = vpack.c.bf16 %v12398_v55, %v1505_v16  ;;  %v1841_v28 = vmax.f32 %v1833_v17, %v12544_v44  ;;  %v2057_v30 = vmax.f32 %v2049_v18, %v12503_v29  ;;  %v2161_v31 = vmax.f32 %v2153_v21, %v12528_v37 }
  0x22   :  { %v12280_v15 = vld [vmem:[#allocation22 + $0xc] ss:$16 sps:$4 sm:$0xff]   ;;  %v1953_v32 = vmax.f32 %v1945_v20, %v12567_v53  ;;  %v2497_v34 = vmax.f32 %v2489_v22, %v12503_v29  ;;  %v2601_v36 = vsel %vm12512_vm1, %v2578_v23, %v12462_v4  ;;  %v2242_v38 = vunpack.c.l.bf16 %v12100_v19 }
  0x23   :  { %11297 = vmatprep.subr.bf16.mxu1 %v12280_v15  ;;  %1510 = vst [vmem:[#allocation22 + $0x2c] sm:$0xf] %v1508_v26  ;;  %v1844_v39 = vpack.c.bf16 %v12398_v55, %v1841_v28  ;;  %v2065_v40 = vmax.f32 %v2057_v30, %v12503_v29  ;;  %v2169_v41 = vmax.f32 %v2161_v31, %v12528_v37  ;;  %v2354_v49 = vunpack.c.h.bf16 %v12100_v19  ;;  %v12132_v30 = vld [vmem:[%s14000_s7 + $0x68] sm:$0xff]  }
  0x24   :  { %v2609_v42 = vmax.f32 %v2601_v36, %v12528_v37  ;;  %11298 = vmatpush1.bf16.msra.mxu1 %v12282_v25  ;;  %v1956_v46 = vpack.c.bf16 %v12398_v55, %v1953_v32  ;;  %v2505_v47 = vmax.f32 %v2497_v34, %v12503_v29  ;;  %v2265_v48 = vsel %vm12517_vm2, %v2242_v38, %v12462_v4 }
  0x25   :  { %v12285_v51 = vld [vmem:[#allocation22 + $0x20] ss:$16 sps:$4 sm:$0xff]   ;;  %1846 = vst [vmem:[#allocation22 + $0x38] sm:$0xf] %v1844_v39  ;;  %v2068_v52 = vpack.c.bf16 %v12398_v55, %v2065_v40  ;;  %v2177_v54 = vmax.f32 %v2169_v41, %v12528_v37  ;;  %v2273_v57 = vmax.f32 %v2265_v48, %v12544_v44  ;;  %v2365_v59 = vsel %vm572_vm3, %v2354_v49, %v12460_v3 }
  0x26   :  { %v12283_v50 = vld [vmem:[#allocation22 + $0x24] ss:$16 sps:$4 sm:$0xff]   ;;  %v2617_v56 = vmax.f32 %v2609_v42, %v12528_v37  ;;  %1958 = vst [vmem:[#allocation22 + $0x3c] sm:$0xf] %v1956_v46  ;;  %v2513_v58 = vmax.f32 %v2505_v47, %v12503_v29  ;;  %v2690_v60 = vunpack.c.l.bf16 %v12116_v43  ;;  %v2802_v61 = vunpack.c.h.bf16 %v12116_v43  ;;  %v12148_v46 = vld [vmem:[%s14000_s7 + $0x78] sm:$0xff]  }
  0x27   :  { %11258 = vmatprep.subr.bf16.mxu0 %v12283_v50  ;;  %2070 = vst [vmem:[#allocation22 + $0x40] sm:$0xf] %v2068_v52  ;;  %v2180_v62 = vpack.c.bf16 %v12398_v55, %v2177_v54  ;;  %v2281_v0 = vmax.f32 %v2273_v57, %v12544_v44  ;;  %v2377_v1 = vsel %vm12548_vm4, %v2365_v59, %v12462_v4  ;;  %v2914_v18 = vunpack.c.l.bf16 %v12124_v2 }
  0x28   :  { %v2625_v63 = vmax.f32 %v2617_v56, %v12528_v37  ;;  %11259 = vmatpush1.bf16.msra.mxu0 %v12285_v51  ;;  %v2516_v5 = vpack.c.bf16 %v12398_v55, %v2513_v58  ;;  %v2385_v7 = vmax.f32 %v2377_v1, %v12567_v53  ;;  %v2713_v8 = vsel %vm12517_vm2, %v2690_v60, %v12462_v4 }
  0x29   :  { %v2813_v9 = vsel %vm572_vm3, %v2802_v61, %v12460_v3  ;;  %2182 = vst [vmem:[#allocation22 + $0x44] sm:$0xf] %v2180_v62  ;;  %v2289_v12 = vmax.f32 %v2281_v0, %v12544_v44  ;;  %v2721_v13 = vmax.f32 %v2713_v8, %v12544_v44  ;;  %v3026_v19 = vunpack.c.h.bf16 %v12124_v2 }
  0x2a   :  { %v2628_v11 = vpack.c.bf16 %v12398_v55, %v2625_v63  ;;  %v2825_v14 = vsel %vm12548_vm4, %v2813_v9, %v12462_v4  ;;  %2518 = vst [vmem:[#allocation22 + $0x50] sm:$0xf] %v2516_v5  ;;  %v2393_v16 = vmax.f32 %v2385_v7, %v12567_v53  ;;  %v3362_v22 = vunpack.c.l.bf16 %v12140_v10 }
  0x2b   :  { %v2833_v17 = vmax.f32 %v2825_v14, %v12567_v53  ;;  %v2292_v20 = vpack.c.bf16 %v12398_v55, %v2289_v12  ;;  %v2729_v21 = vmax.f32 %v2721_v13, %v12544_v44  ;;  %v3474_v23 = vunpack.c.h.bf16 %v12140_v10  ;;  %v12156_v10 = vld [vmem:[%s14000_s7 + $0x80] sm:$0xff]  }
  0x2c   :  { %2630 = vst [vmem:[#allocation22 + $0x54] sm:$0xf] %v2628_v11  ;;  %v2401_v15 = vmax.f32 %v2393_v16, %v12567_v53  ;;  %v2937_v26 = vsel %vm12490_vm0, %v2914_v18, %v12462_v4  ;;  %v3049_v28 = vsel %vm12512_vm1, %v3026_v19, %v12462_v4  ;;  %v12288_v32 = vld [vmem:[#allocation22 + $0x28] ss:$16 sps:$4 sm:$0xff]   ;;  %v3385_v39 = vsel %vm12490_vm0, %v3362_v22, %v12462_v4  ;;  %v12172_v11 = vld [vmem:[%s14000_s7 + $0x90] sm:$0xff]  }
  0x2d   :  { %v2841_v25 = vmax.f32 %v2833_v17, %v12567_v53  ;;  %v12286_v31 = vld [vmem:[#allocation22 + $0x2c] ss:$16 sps:$4 sm:$0xff]   ;;  %2294 = vst [vmem:[#allocation22 + $0x48] sm:$0xf] %v2292_v20  ;;  %v2737_v34 = vmax.f32 %v2729_v21, %v12544_v44  ;;  %v2945_v36 = vmax.f32 %v2937_v26, %v12503_v29  ;;  %v3057_v38 = vmax.f32 %v3049_v28, %v12528_v37 }
  0x2e   :  { %v2404_v40 = vpack.c.bf16 %v12398_v55, %v2401_v15  ;;  %v3393_v42 = vmax.f32 %v3385_v39, %v12503_v29  ;;  %v3497_v43 = vsel %vm12512_vm1, %v3474_v23, %v12462_v4  ;;  %11299 = vmatprep.subr.bf16.mxu1 %v12286_v31  ;;  %v3138_v54 = vunpack.c.l.bf16 %v12132_v30 }
  0x2f   :  { %v2849_v41 = vmax.f32 %v2841_v25, %v12567_v53  ;;  %v2740_v47 = vpack.c.bf16 %v12398_v55, %v2737_v34  ;;  %v2953_v48 = vmax.f32 %v2945_v36, %v12503_v29  ;;  %v3065_v49 = vmax.f32 %v3057_v38, %v12528_v37  ;;  %11300 = vmatpush1.bf16.msra.mxu1 %v12288_v32 }
  0x30   :  { %v3505_v50 = vmax.f32 %v3497_v43, %v12528_v37  ;;  %2406 = vst [vmem:[#allocation22 + $0x4c] sm:$0xf] %v2404_v40  ;;  %v3401_v52 = vmax.f32 %v3393_v42, %v12503_v29  ;;  %v3250_v56 = vunpack.c.h.bf16 %v12132_v30  ;;  %v3586_v60 = vunpack.c.l.bf16 %v12148_v46 }
  0x31   :  { %v2852_v51 = vpack.c.bf16 %v12398_v55, %v2849_v41  ;;  %2742 = vst [vmem:[#allocation22 + $0x58] sm:$0xf] %v2740_v47  ;;  %v2961_v57 = vmax.f32 %v2953_v48, %v12503_v29  ;;  %v3073_v58 = vmax.f32 %v3065_v49, %v12528_v37  ;;  %v12291_v62 = vld [vmem:[#allocation22 + $0x40] ss:$16 sps:$4 sm:$0xff]   ;;  %v3161_v0 = vsel %vm12517_vm2, %v3138_v54, %v12462_v4 }
  0x32   :  { %v3513_v59 = vmax.f32 %v3505_v50, %v12528_v37  ;;  %v3409_v63 = vmax.f32 %v3401_v52, %v12503_v29  ;;  %v3261_v1 = vsel %vm572_vm3, %v3250_v56, %v12460_v3  ;;  %v3698_v2 = vunpack.c.h.bf16 %v12148_v46 }
  0x33   :  { %v12289_v61 = vld [vmem:[#allocation22 + $0x44] ss:$16 sps:$4 sm:$0xff]   ;;  %2854 = vst [vmem:[#allocation22 + $0x5c] sm:$0xf] %v2852_v51  ;;  %v2964_v5 = vpack.c.bf16 %v12398_v55, %v2961_v57  ;;  %v3076_v7 = vpack.c.bf16 %v12398_v55, %v3073_v58  ;;  %v3169_v9 = vmax.f32 %v3161_v0, %v12544_v44  ;;  %v3273_v13 = vsel %vm12548_vm4, %v3261_v1, %v12462_v4 }
  0x34   :  { %v3521_v8 = vmax.f32 %v3513_v59, %v12528_v37  ;;  %11260 = vmatprep.subr.bf16.mxu0 %v12289_v61  ;;  %v3412_v12 = vpack.c.bf16 %v12398_v55, %v3409_v63  ;;  %v3609_v14 = vsel %vm12517_vm2, %v3586_v60, %v12462_v4  ;;  %v3709_v16 = vsel %vm572_vm3, %v3698_v2, %v12460_v3 }
  0x35   :  { %11261 = vmatpush1.bf16.msra.mxu0 %v12291_v62  ;;  %2966 = vst [vmem:[#allocation22 + $0x60] sm:$0xf] %v2964_v5  ;;  %3078 = vst [vmem:[#allocation22 + $0x64] sm:$0xf] %v3076_v7  ;;  %v3177_v18 = vmax.f32 %v3169_v9, %v12544_v44  ;;  %v3281_v19 = vmax.f32 %v3273_v13, %v12567_v53  ;;  %v3617_v20 = vmax.f32 %v3609_v14, %v12544_v44  ;;  %v12399_v56 = vmov 65535   ;;  %v12180_v62 = vld [vmem:[%s14000_s7 + $0x98] sm:$0xff]  }
  0x36   :  { %v3524_v17 = vpack.c.bf16 %v12398_v55, %v3521_v8  ;;  %3414 = vst [vmem:[#allocation22 + $0x70] sm:$0xf] %v3412_v12  ;;  %v3721_v21 = vsel %vm12548_vm4, %v3709_v16, %v12462_v4  ;;  %v3810_v22 = vunpack.c.l.bf16 %v12156_v10  ;;  %v3922_v23 = vunpack.c.h.bf16 %v12156_v10 }
  0x37   :  { %v4258_v15 = vunpack.c.l.bf16 %v12172_v11  ;;  %v3185_v25 = vmax.f32 %v3177_v18, %v12544_v44  ;;  %v3289_v26 = vmax.f32 %v3281_v19, %v12567_v53  ;;  %v3625_v28 = vmax.f32 %v3617_v20, %v12544_v44 }
  0x38   :  { %3526 = vst [vmem:[#allocation22 + $0x74] sm:$0xf] %v3524_v17  ;;  %v3729_v30 = vmax.f32 %v3721_v21, %v12567_v53  ;;  %v3833_v31 = vsel %vm12490_vm0, %v3810_v22, %v12462_v4  ;;  %v3945_v32 = vsel %vm12512_vm1, %v3922_v23, %v12462_v4  ;;  %v4261_v34 = vshrl.u32 %v239_v6, 7  ;;  %v12294_v39 = vld [vmem:[#allocation22 + $0x48] ss:$16 sps:$4 sm:$0xff]  }
  0x39   :  { %v4370_v36 = vunpack.c.h.bf16 %v12172_v11  ;;  %v3188_v40 = vpack.c.bf16 %v12398_v55, %v3185_v25  ;;  %v3297_v41 = vmax.f32 %v3289_v26, %v12567_v53  ;;  %v3633_v42 = vmax.f32 %v3625_v28, %v12544_v44  ;;  %v12164_v6 = vld [vmem:[%s14000_s7 + $0x88] sm:$0xff]  }
  0x3a   :  { %v12292_v38 = vld [vmem:[#allocation22 + $0x4c] ss:$16 sps:$4 sm:$0xff]   ;;  %v3737_v43 = vmax.f32 %v3729_v30, %v12567_v53  ;;  %v3841_v46 = vmax.f32 %v3833_v31, %v12503_v29  ;;  %v3953_v47 = vmax.f32 %v3945_v32, %v12528_v37  ;;  %v12824_v48 = vadd.s32 72, %v4261_v34  ;;  %v214_v31 = vld [vmem:[%s13998_s5] sm:$0xff]  }
  0x3b   :  { %11301 = vmatprep.subr.bf16.mxu1 %v12292_v38  ;;  %3190 = vst [vmem:[#allocation22 + $0x68] sm:$0xf] %v3188_v40  ;;  %v3300_v49 = vpack.c.bf16 %v12398_v55, %v3297_v41  ;;  %v3636_v50 = vpack.c.bf16 %v12398_v55, %v3633_v42  ;;  %v11242_v57 = vsel %vm11240_vm5, 4294967295, %v12399_v56  ;;  %v4034_v61 = vunpack.c.l.bf16 %v12164_v6 }
  0x3c   :  { %v3745_v51 = vmax.f32 %v3737_v43, %v12567_v53  ;;  %11302 = vmatpush1.bf16.msra.mxu1 %v12294_v39  ;;  %v3849_v52 = vmax.f32 %v3841_v46, %v12503_v29  ;;  %v3961_v54 = vmax.f32 %v3953_v47, %v12528_v37  ;;  %vm4263_vm7 = vcmp.lt.s32.totalorder %v12824_v48, 75  ;;  %v12043_v39 = vld [vmem:[%s13998_s5 + $0x10] sm:$0xff]   ;;  %v12035_v46 = vld [vmem:[%s13998_s5 + $0x8] sm:$0xff]  }
  0x3d   :  { %3302 = vst [vmem:[#allocation22 + $0x6c] sm:$0xf] %v3300_v49  ;;  %3638 = vst [vmem:[#allocation22 + $0x78] sm:$0xf] %v3636_v50  ;;  %v4264_v59 = vsel %vm4263_vm7, %v4258_v15, %v12460_v3  ;;  %v4376_v60 = vsel %vm4263_vm7, %v4370_v36, %v12460_v3  ;;  %v12297_v0 = vld [vmem:[#allocation22 + $0x60] ss:$16 sps:$4 sm:$0xff]   ;;  %v4057_v10 = vsel %vm12517_vm2, %v4034_v61, %v12462_v4  ;;  %v4146_v11 = vunpack.c.h.bf16 %v12164_v6 }
  0x3e   :  { %v3748_v58 = vpack.c.bf16 %v12398_v55, %v3745_v51  ;;  %v3857_v1 = vmax.f32 %v3849_v52, %v12503_v29  ;;  %v3969_v2 = vmax.f32 %v3961_v54, %v12528_v37  ;;  %v4281_v5 = vsel %vm12490_vm0, %v4264_v59, %v12462_v4 }
  0x3f   :  { %v12295_v63 = vld [vmem:[#allocation22 + $0x64] ss:$16 sps:$4 sm:$0xff]   ;;  %v4393_v7 = vsel %vm12512_vm1, %v4376_v60, %v12462_v4  ;;  %v4289_v8 = vmax.f32 %v4281_v5, %v12503_v29  ;;  %v4065_v14 = vmax.f32 %v4057_v10, %v12544_v44  ;;  %v4482_v16 = vunpack.c.l.bf16 %v12180_v62  ;;  %v12051_v5 = vld [vmem:[%s13998_s5 + $0x18] sm:$0xff]  }
  0x40   :  { %3750 = vst [vmem:[#allocation22 + $0x7c] sm:$0xf] %v3748_v58  ;;  %v4401_v9 = vmax.f32 %v4393_v7, %v12528_v37  ;;  %11262 = vmatprep.subr.bf16.mxu0 %v12295_v63  ;;  %v3860_v12 = vpack.c.bf16 %v12398_v55, %v3857_v1  ;;  %v3972_v13 = vpack.c.bf16 %v12398_v55, %v3969_v2  ;;  %v4594_v20 = vunpack.c.h.bf16 %v12180_v62 }
  0x41   :  { %11263 = vmatpush1.bf16.msra.mxu0 %v12297_v0  ;;  %v4297_v17 = vmax.f32 %v4289_v8, %v12503_v29  ;;  %v4157_v19 = vsel %vm572_vm3, %v4146_v11, %v12460_v3  ;;  %v4073_v21 = vmax.f32 %v4065_v14, %v12544_v44  ;;  %v4488_v23 = vsel %vm4263_vm7, %v4482_v16, %v12460_v3 }
  0x42   :  { %v4409_v18 = vmax.f32 %v4401_v9, %v12528_v37  ;;  %3862 = vst [vmem:[#allocation22 + $0x80] sm:$0xf] %v3860_v12  ;;  %3974 = vst [vmem:[#allocation22 + $0x84] sm:$0xf] %v3972_v13  ;;  %v4169_v22 = vsel %vm12548_vm4, %v4157_v19, %v12462_v4  ;;  %v4505_v28 = vsel %vm12517_vm2, %v4488_v23, %v12462_v4  ;;  %v12400_v30 = vmov 0  }
  0x43   :  { %v4305_v15 = vmax.f32 %v4297_v17, %v12503_v29  ;;  %v4177_v26 = vmax.f32 %v4169_v22, %v12567_v53  ;;  %11288 = vmatprep.mubr.bf16.mxu0 %v12400_v30  ;;  %v12885_v32 = vsel %vm11241_vm6, %v11242_v57, 0  ;;  %v4081_v34 = vmax.f32 %v4073_v21, %v12544_v44  ;;  %11329 = vmatprep.mubr.bf16.mxu1 %v12400_v30 }
  0x44   :  { %v4417_v25 = vmax.f32 %v4409_v18, %v12528_v37  ;;  %v4513_v36 = vmax.f32 %v4505_v28, %v12544_v44  ;;  %v4600_v38 = vsel %vm4263_vm7, %v4594_v20, %v12460_v3  ;;  %12276 = vset.pattern.permute.xlu0 %v12400_v30  ;;  %v12300_v6 = vld [vmem:[#allocation22 + $0x68] ss:$16 sps:$4 sm:$0xff]   ;;  %v215_v52 = vunpack.c.l.bf16 %v214_v31 }
  0x45   :  { %v4308_v40 = vpack.c.bf16 %v12398_v55, %v4305_v15  ;;  %v4185_v42 = vmax.f32 %v4177_v26, %v12567_v53  ;;  %v4605_v43 = vsel %vm572_vm3, %v4600_v38, %v12460_v3  ;;  %v4084_v49 = vpack.c.bf16 %v12398_v55, %v4081_v34 }
  0x46   :  { %v4420_v41 = vpack.c.bf16 %v12398_v55, %v4417_v25  ;;  %v4521_v50 = vmax.f32 %v4513_v36, %v12544_v44  ;;  %v4617_v51 = vsel %vm12548_vm4, %v4605_v43, %v12462_v4  ;;  %v325_v57 = vunpack.c.h.bf16 %v214_v31 }
  0x47   :  { %v12298_v47 = vld [vmem:[#allocation22 + $0x6c] ss:$16 sps:$4 sm:$0xff]   ;;  %4310 = vst [vmem:[#allocation22 + $0x90] sm:$0xf] %v4308_v40  ;;  %v4193_v54 = vmax.f32 %v4185_v42, %v12567_v53  ;;  %v4625_v56 = vmax.f32 %v4617_v51, %v12567_v53  ;;  %v661_v58 = vunpack.c.l.bf16 %v12043_v39  ;;  %4086 = vst [vmem:[#allocation22 + $0x88] sm:$0xf] %v4084_v49  ;;  %v773_v60 = vunpack.c.h.bf16 %v12043_v39 }
  0x48   :  { %4422 = vst [vmem:[#allocation22 + $0x94] sm:$0xf] %v4420_v41  ;;  %11303 = vmatprep.subr.bf16.mxu1 %v12298_v47  ;;  %v4529_v59 = vmax.f32 %v4521_v50, %v12544_v44  ;;  %v4672_v61 = vsel %vm12490_vm0, %v215_v52, %v12462_v4  ;;  %v437_v62 = vunpack.c.l.bf16 %v12035_v46  ;;  %v4726_v2 = vsel %vm12512_vm1, %v325_v57, %v12462_v4  ;;  %v12059_v41 = vld [vmem:[%s13998_s5 + $0x20] sm:$0xff]  }
  0x49   :  { %11304 = vmatpush1.bf16.msra.mxu1 %v12300_v6  ;;  %v4196_v63 = vpack.c.bf16 %v12398_v55, %v4193_v54  ;;  %v4633_v0 = vmax.f32 %v4625_v56, %v12567_v53  ;;  %v4676_v1 = vmax.f32 %v12503_v29, %v4672_v61  ;;  %v4730_v8 = vmax.f32 %v12528_v37, %v4726_v2  ;;  %v12075_v6 = vld [vmem:[%s13998_s5 + $0x30] sm:$0xff]  }
  0x4a   :  { %v4532_v7 = vpack.c.bf16 %v12398_v55, %v4529_v59  ;;  %v4888_v9 = vsel %vm12490_vm0, %v661_v58, %v12462_v4  ;;  %v4942_v10 = vsel %vm12512_vm1, %v773_v60, %v12462_v4  ;;  %vm11236_vm8 = vcmask 613376   ;;  %v12981_v59 = vld [vmem:[%s13993_s0] sm:$0x3] }
  0x4b   :  { %4198 = vst [vmem:[#allocation22 + $0x8c] sm:$0xf] %v4196_v63  ;;  %v4641_v11 = vmax.f32 %v4633_v0, %v12567_v53  ;;  %v4684_v12 = vmax.f32 %v4676_v1, %v12503_v29  ;;  %v4892_v13 = vmax.f32 %v12503_v29, %v4888_v9  ;;  %v4946_v14 = vmax.f32 %v12528_v37, %v4942_v10 }
  0x4c   :  { %4534 = vst [vmem:[#allocation22 + $0x98] sm:$0xf] %v4532_v7  ;;  %v4738_v16 = vmax.f32 %v4730_v8, %v12528_v37  ;;  %v549_v17 = vunpack.c.h.bf16 %v12035_v46  ;;  %v885_v18 = vunpack.c.l.bf16 %v12051_v5  ;;  %v997_v19 = vunpack.c.h.bf16 %v12051_v5  ;;  %v12067_v7 = vld [vmem:[%s13998_s5 + $0x28] sm:$0xff]  }
  0x4d   :  { %v4644_v20 = vpack.c.bf16 %v12398_v55, %v4641_v11  ;;  %v4692_v21 = vmax.f32 %v4684_v12, %v12503_v29  ;;  %v4900_v22 = vmax.f32 %v4892_v13, %v12503_v29  ;;  %v4954_v23 = vmax.f32 %v4946_v14, %v12528_v37 }
  0x4e   :  { %v4746_v25 = vmax.f32 %v4738_v16, %v12528_v37  ;;  %v4780_v26 = vsel %vm12517_vm2, %v437_v62, %v12462_v4  ;;  %v4818_v28 = vsel %vm572_vm3, %v549_v17, %v12460_v3  ;;  %v4996_v31 = vsel %vm12517_vm2, %v885_v18, %v12462_v4  ;;  %v12303_v34 = vld [vmem:[#allocation22 + $0x80] ss:$16 sps:$4 sm:$0x3f]  }
  0x4f   :  { %v12301_v15 = vld [vmem:[#allocation22 + $0x84] ss:$16 sps:$4 sm:$0x3f]   ;;  %4646 = vst [vmem:[#allocation22 + $0x9c] sm:$0xf] %v4644_v20  ;;  %v4695_v36 = vpack.c.bf16 %v12398_v55, %v4692_v21  ;;  %v4908_v38 = vmax.f32 %v4900_v22, %v12503_v29  ;;  %v4962_v39 = vmax.f32 %v4954_v23, %v12528_v37  ;;  %v4784_v40 = vmax.f32 %v12544_v44, %v4780_v26  ;;  %v12083_v23 = vld [vmem:[%s13998_s5 + $0x38] sm:$0xff]  }
  0x50   :  { %v11248_v42 = vand.u32 %v12301_v15, %v12885_v32  ;;  %v4749_v43 = vpack.c.bf16 %v12398_v55, %v4746_v25  ;;  %v4834_v46 = vsel %vm12548_vm4, %v4818_v28, %v12462_v4  ;;  %v5000_v47 = vmax.f32 %v12544_v44, %v4996_v31 }
  0x51   :  { %v11245_v49 = vand.u32 %v12303_v34, %v12885_v32  ;;  %4697 = vst [vmem:[#allocation22 + $0xa0] sm:$0xf] %v4695_v36  ;;  %v4911_v50 = vpack.c.bf16 %v12398_v55, %v4908_v38  ;;  %v4965_v51 = vpack.c.bf16 %v12398_v55, %v4962_v39  ;;  %v4792_v52 = vmax.f32 %v4784_v40, %v12544_v44 }
  0x52   :  { %11264 = vmatprep.subr.bf16.mxu0 %v11248_v42  ;;  %4751 = vst [vmem:[#allocation22 + $0xa4] sm:$0xf] %v4749_v43  ;;  %v4838_v54 = vmax.f32 %v12567_v53, %v4834_v46  ;;  %v5008_v56 = vmax.f32 %v5000_v47, %v12544_v44  ;;  %v5034_v57 = vsel %vm572_vm3, %v997_v19, %v12460_v3  ;;  %v1109_v58 = vunpack.c.l.bf16 %v12059_v41 }
  0x53   :  { %11265 = vmatpush1.bf16.msra.mxu0 %v11245_v49  ;;  %4913 = vst [vmem:[#allocation22 + $0xb0] sm:$0xf] %v4911_v50  ;;  %4967 = vst [vmem:[#allocation22 + $0xb4] sm:$0xf] %v4965_v51  ;;  %v4800_v60 = vmax.f32 %v4792_v52, %v12544_v44  ;;  %v5050_v61 = vsel %vm12548_vm4, %v5034_v57, %v12462_v4  ;;  %v1221_v62 = vunpack.c.h.bf16 %v12059_v41  ;;  %v1557_v63 = vunpack.c.l.bf16 %v12075_v6  ;;  %v12091_v51 = vld [vmem:[%s13998_s5 + $0x40] sm:$0xff]  }
  0x54   :  { %v4846_v0 = vmax.f32 %v4838_v54, %v12567_v53  ;;  %v5016_v1 = vmax.f32 %v5008_v56, %v12544_v44  ;;  %v5054_v2 = vmax.f32 %v12567_v53, %v5050_v61  ;;  %v1669_v5 = vunpack.c.h.bf16 %v12075_v6  ;;  %v12306_v18 = vld [vmem:[#allocation22 + $0x88] ss:$16 sps:$4 sm:$0x3f]  }
  0x55   :  { %v4803_v8 = vpack.c.bf16 %v12398_v55, %v4800_v60  ;;  %v5104_v9 = vsel %vm12490_vm0, %v1109_v58, %v12462_v4  ;;  %v5158_v10 = vsel %vm12512_vm1, %v1221_v62, %v12462_v4  ;;  %v5320_v11 = vsel %vm12490_vm0, %v1557_v63, %v12462_v4  ;;  %v12107_v63 = vld [vmem:[%s13998_s5 + $0x50] sm:$0xff]  }
  0x56   :  { %v12304_v12 = vld [vmem:[#allocation22 + $0x8c] ss:$16 sps:$4 sm:$0x3f]   ;;  %12205 = vmatmul.mubr.msk.bf16.vlgmr.msra.gmra.mrb[0].mxu0 %vm11236_vm8, %v12981_v59  ;;  %v4854_v13 = vmax.f32 %v4846_v0, %v12567_v53  ;;  %v5019_v14 = vpack.c.bf16 %v12398_v55, %v5016_v1  ;;  %v5062_v16 = vmax.f32 %v5054_v2, %v12567_v53  ;;  %v5108_v17 = vmax.f32 %v12503_v29, %v5104_v9 }
  0x57   :  { %4805 = vst [vmem:[#allocation22 + $0xa8] sm:$0xf] %v4803_v8  ;;  %v5162_v19 = vmax.f32 %v12528_v37, %v5158_v10  ;;  %v5324_v20 = vmax.f32 %v12503_v29, %v5320_v11  ;;  %v5374_v21 = vsel %vm12512_vm1, %v1669_v5, %v12462_v4  ;;  %v1333_v22 = vunpack.c.l.bf16 %v12067_v7  ;;  %11499 = vmatprep.mubr.bf16.mxu0 %v12400_v30 }
  0x58   :  { %v11254_v15 = vand.u32 %v12304_v12, %v12885_v32  ;;  %v4857_v25 = vpack.c.bf16 %v12398_v55, %v4854_v13  ;;  %5021 = vst [vmem:[#allocation22 + $0xb8] sm:$0xf] %v5019_v14  ;;  %v5070_v26 = vmax.f32 %v5062_v16, %v12567_v53  ;;  %v5116_v28 = vmax.f32 %v5108_v17, %v12503_v29 }
  0x59   :  { %v11251_v31 = vand.u32 %v12306_v18, %v12885_v32  ;;  %v5170_v34 = vmax.f32 %v5162_v19, %v12528_v37  ;;  %v5332_v36 = vmax.f32 %v5324_v20, %v12503_v29  ;;  %v5378_v38 = vmax.f32 %v12528_v37, %v5374_v21 }
  0x5a   :  { %11305 = vmatprep.subr.bf16.mxu1 %v11254_v15  ;;  %v12307_v39 = vld [vmem:[#allocation22 + $0xa0] ss:$16 sps:$4 sm:$0xff]   ;;  %v12309_v40 = vld [vmem:[#allocation22 + $0xa4] ss:$16 sps:$4 sm:$0xff]   ;;  %4859 = vst [vmem:[#allocation22 + $0xac] sm:$0xf] %v4857_v25  ;;  %v5073_v41 = vpack.c.bf16 %v12398_v55, %v5070_v26  ;;  %v5124_v42 = vmax.f32 %v5116_v28, %v12503_v29  ;;  %v1445_v43 = vunpack.c.h.bf16 %v12067_v7  ;;  %v1781_v46 = vunpack.c.l.bf16 %v12083_v23 }
  0x5b   :  { %11306 = vmatpush1.bf16.msra.mxu1 %v11251_v31  ;;  %v5178_v47 = vmax.f32 %v5170_v34, %v12528_v37  ;;  %v5340_v6 = vmax.f32 %v5332_v36, %v12503_v29  ;;  %v5386_v49 = vmax.f32 %v5378_v38, %v12528_v37  ;;  %v1893_v50 = vunpack.c.h.bf16 %v12083_v23  ;;  %11467 = vmatprep.subr.bf16.mxu0 %v12309_v40  ;;  %v12099_v15 = vld [vmem:[%s13998_s5 + $0x48] sm:$0xff]  }
  0x5c   :  { %5075 = vst [vmem:[#allocation22 + $0xbc] sm:$0xf] %v5073_v41  ;;  %v5127_v52 = vpack.c.bf16 %v12398_v55, %v5124_v42  ;;  %v5212_v54 = vsel %vm12517_vm2, %v1333_v22, %v12462_v4  ;;  %v5250_v56 = vsel %vm572_vm3, %v1445_v43, %v12460_v3  ;;  %v5428_v57 = vsel %vm12517_vm2, %v1781_v46, %v12462_v4  ;;  %v12115_v42 = vld [vmem:[%s13998_s5 + $0x58] sm:$0xff]  }
  0x5d   :  { %11468 = vmatpush1.bf16.msra.mxu0 %v12307_v39  ;;  %v5181_v58 = vpack.c.bf16 %v12398_v55, %v5178_v47  ;;  %v5343_v60 = vpack.c.bf16 %v12398_v55, %v5340_v6  ;;  %v5394_v61 = vmax.f32 %v5386_v49, %v12528_v37  ;;  %v5216_v62 = vmax.f32 %v12544_v44, %v5212_v54 }
  0x5e   :  { %12206 = vmatmul.mubr.msk.bf16.vlgmr.msra.gmra.mrb[0].mxu1 %vm11236_vm8, %v12981_v59  ;;  %5129 = vst [vmem:[#allocation22 + $0xc0] sm:$0xf] %v5127_v52  ;;  %v5266_v0 = vsel %vm12548_vm4, %v5250_v56, %v12462_v4  ;;  %v5432_v1 = vmax.f32 %v12544_v44, %v5428_v57  ;;  %v5466_v2 = vsel %vm572_vm3, %v1893_v50, %v12460_v3  ;;  %v2005_v5 = vunpack.c.l.bf16 %v12091_v51 }
  0x5f   :  { %5183 = vst [vmem:[#allocation22 + $0xc4] sm:$0xf] %v5181_v58  ;;  %5345 = vst [vmem:[#allocation22 + $0xd0] sm:$0xf] %v5343_v60  ;;  %v5397_v7 = vpack.c.bf16 %v12398_v55, %v5394_v61  ;;  %v5224_v8 = vmax.f32 %v5216_v62, %v12544_v44  ;;  %v5270_v9 = vmax.f32 %v12567_v53, %v5266_v0  ;;  %11540 = vmatprep.mubr.bf16.mxu1 %v12400_v30  ;;  %v12310_v25 = vld [vmem:[#allocation22 + $0xa8] ss:$16 sps:$4 sm:$0xff]  }
  0x60   :  { %v5482_v10 = vsel %vm12548_vm4, %v5466_v2, %v12462_v4  ;;  %v5440_v11 = vmax.f32 %v5432_v1, %v12544_v44  ;;  %v2117_v13 = vunpack.c.h.bf16 %v12091_v51  ;;  %v2453_v14 = vunpack.c.l.bf16 %v12107_v63  ;;  %v12123_v60 = vld [vmem:[%s13998_s5 + $0x60] sm:$0xff]  }
  0x61   :  { %v5486_v12 = vmax.f32 %v12567_v53, %v5482_v10  ;;  %5399 = vst [vmem:[#allocation22 + $0xd4] sm:$0xf] %v5397_v7  ;;  %v5232_v16 = vmax.f32 %v5224_v8, %v12544_v44  ;;  %v5278_v17 = vmax.f32 %v5270_v9, %v12567_v53  ;;  %v2565_v18 = vunpack.c.h.bf16 %v12107_v63 }
  0x62   :  { %v5536_v19 = vsel %vm12490_vm0, %v2005_v5, %v12462_v4  ;;  %v5448_v20 = vmax.f32 %v5440_v11, %v12544_v44  ;;  %v5590_v23 = vsel %vm12512_vm1, %v2117_v13, %v12462_v4  ;;  %v5752_v36 = vsel %vm12490_vm0, %v2453_v14, %v12462_v4  ;;  %v12139_v14 = vld [vmem:[%s13998_s5 + $0x70] sm:$0xff]  }
  0x63   :  { %v5494_v21 = vmax.f32 %v5486_v12, %v12567_v53  ;;  %v5540_v22 = vmax.f32 %v12503_v29, %v5536_v19  ;;  %v12312_v26 = vld [vmem:[#allocation22 + $0xac] ss:$16 sps:$4 sm:$0xff]   ;;  %v5235_v28 = vpack.c.bf16 %v12398_v55, %v5232_v16  ;;  %v5286_v31 = vmax.f32 %v5278_v17, %v12567_v53 }
  0x64   :  { %v5594_v34 = vmax.f32 %v12528_v37, %v5590_v23  ;;  %v5451_v38 = vpack.c.bf16 %v12398_v55, %v5448_v20  ;;  %v5756_v41 = vmax.f32 %v12503_v29, %v5752_v36  ;;  %11508 = vmatprep.subr.bf16.mxu1 %v12312_v26  ;;  %v5806_v47 = vsel %vm12512_vm1, %v2565_v18, %v12462_v4 }
  0x65   :  { %v5502_v39 = vmax.f32 %v5494_v21, %v12567_v53  ;;  %v5548_v40 = vmax.f32 %v5540_v22, %v12503_v29  ;;  %5237 = vst [vmem:[#allocation22 + $0xc8] sm:$0xf] %v5235_v28  ;;  %v5289_v43 = vpack.c.bf16 %v12398_v55, %v5286_v31  ;;  %v2229_v6 = vunpack.c.l.bf16 %v12099_v15  ;;  %11509 = vmatpush1.bf16.msra.mxu1 %v12310_v25 }
  0x66   :  { %v5602_v46 = vmax.f32 %v5594_v34, %v12528_v37  ;;  %5453 = vst [vmem:[#allocation22 + $0xd8] sm:$0xf] %v5451_v38  ;;  %v5764_v51 = vmax.f32 %v5756_v41, %v12503_v29  ;;  %v5810_v52 = vmax.f32 %v12528_v37, %v5806_v47  ;;  %v2341_v56 = vunpack.c.h.bf16 %v12099_v15  ;;  %v12313_v61 = vld [vmem:[#allocation22 + $0xc0] ss:$16 sps:$4 sm:$0xff]  }
  0x67   :  { %v5505_v49 = vpack.c.bf16 %v12398_v55, %v5502_v39  ;;  %v5556_v50 = vmax.f32 %v5548_v40, %v12503_v29  ;;  %5291 = vst [vmem:[#allocation22 + $0xcc] sm:$0xf] %v5289_v43  ;;  %v2677_v57 = vunpack.c.l.bf16 %v12115_v42  ;;  %v2789_v58 = vunpack.c.h.bf16 %v12115_v42  ;;  %v12131_v39 = vld [vmem:[%s13998_s5 + $0x68] sm:$0xff]  }
  0x68   :  { %v5610_v54 = vmax.f32 %v5602_v46, %v12528_v37  ;;  %v12315_v62 = vld [vmem:[#allocation22 + $0xc4] ss:$16 sps:$4 sm:$0xff]   ;;  %v5772_v0 = vmax.f32 %v5764_v51, %v12503_v29  ;;  %v5818_v1 = vmax.f32 %v5810_v52, %v12528_v37  ;;  %v5644_v2 = vsel %vm12517_vm2, %v2229_v6, %v12462_v4  ;;  %v12147_v52 = vld [vmem:[%s13998_s5 + $0x78] sm:$0xff]  }
  0x69   :  { %5507 = vst [vmem:[#allocation22 + $0xdc] sm:$0xf] %v5505_v49  ;;  %v5559_v63 = vpack.c.bf16 %v12398_v55, %v5556_v50  ;;  %v5648_v7 = vmax.f32 %v12544_v44, %v5644_v2  ;;  %v5682_v8 = vsel %vm572_vm3, %v2341_v56, %v12460_v3  ;;  %v5860_v9 = vsel %vm12517_vm2, %v2677_v57, %v12462_v4 }
  0x6a   :  { %v5613_v5 = vpack.c.bf16 %v12398_v55, %v5610_v54  ;;  %11469 = vmatprep.subr.bf16.mxu0 %v12315_v62  ;;  %v5775_v10 = vpack.c.bf16 %v12398_v55, %v5772_v0  ;;  %v5826_v11 = vmax.f32 %v5818_v1, %v12528_v37  ;;  %v5698_v12 = vsel %vm12548_vm4, %v5682_v8, %v12462_v4 }
  0x6b   :  { %5561 = vst [vmem:[#allocation22 + $0xe0] sm:$0xf] %v5559_v63  ;;  %v5864_v13 = vmax.f32 %v12544_v44, %v5860_v9  ;;  %11470 = vmatpush1.bf16.msra.mxu0 %v12313_v61  ;;  %v5656_v16 = vmax.f32 %v5648_v7, %v12544_v44  ;;  %v5702_v17 = vmax.f32 %v12567_v53, %v5698_v12  ;;  %v2901_v19 = vunpack.c.l.bf16 %v12123_v60 }
  0x6c   :  { %5615 = vst [vmem:[#allocation22 + $0xe4] sm:$0xf] %v5613_v5  ;;  %v5898_v18 = vsel %vm572_vm3, %v2789_v58, %v12460_v3  ;;  %5777 = vst [vmem:[#allocation22 + $0xf0] sm:$0xf] %v5775_v10  ;;  %v5829_v20 = vpack.c.bf16 %v12398_v55, %v5826_v11  ;;  %v3013_v23 = vunpack.c.h.bf16 %v12123_v60  ;;  %v3349_v28 = vunpack.c.l.bf16 %v12139_v14  ;;  %v12155_v11 = vld [vmem:[%s13998_s5 + $0x80] sm:$0xff]  }
  0x6d   :  { %v5872_v21 = vmax.f32 %v5864_v13, %v12544_v44  ;;  %v5914_v22 = vsel %vm12548_vm4, %v5898_v18, %v12462_v4  ;;  %v5664_v15 = vmax.f32 %v5656_v16, %v12544_v44  ;;  %v5710_v25 = vmax.f32 %v5702_v17, %v12567_v53  ;;  %v12316_v40 = vld [vmem:[#allocation22 + $0xc8] ss:$16 sps:$4 sm:$0xff]  }
  0x6e   :  { %v5918_v26 = vmax.f32 %v12567_v53, %v5914_v22  ;;  %5831 = vst [vmem:[#allocation22 + $0xf4] sm:$0xf] %v5829_v20  ;;  %v3461_v34 = vunpack.c.h.bf16 %v12139_v14  ;;  %v5968_v36 = vsel %vm12490_vm0, %v2901_v19, %v12462_v4  ;;  %v6022_v38 = vsel %vm12512_vm1, %v3013_v23, %v12462_v4 }
  0x6f   :  { %v5880_v31 = vmax.f32 %v5872_v21, %v12544_v44  ;;  %v5667_v42 = vpack.c.bf16 %v12398_v55, %v5664_v15  ;;  %v5718_v43 = vmax.f32 %v5710_v25, %v12567_v53  ;;  %v5972_v47 = vmax.f32 %v12503_v29, %v5968_v36 }
  0x70   :  { %v12318_v41 = vld [vmem:[#allocation22 + $0xcc] ss:$16 sps:$4 sm:$0xff]   ;;  %v5926_v46 = vmax.f32 %v5918_v26, %v12567_v53  ;;  %v6026_v49 = vmax.f32 %v12528_v37, %v6022_v38  ;;  %v6184_v50 = vsel %vm12490_vm0, %v3349_v28, %v12462_v4  ;;  %v6238_v51 = vsel %vm12512_vm1, %v3461_v34, %v12462_v4  ;;  %v12171_v28 = vld [vmem:[%s13998_s5 + $0x90] sm:$0xff]  }
  0x71   :  { %v5883_v6 = vpack.c.bf16 %v12398_v55, %v5880_v31  ;;  %11510 = vmatprep.subr.bf16.mxu1 %v12318_v41  ;;  %5669 = vst [vmem:[#allocation22 + $0xe8] sm:$0xf] %v5667_v42  ;;  %v5721_v54 = vpack.c.bf16 %v12398_v55, %v5718_v43  ;;  %v5980_v57 = vmax.f32 %v5972_v47, %v12503_v29  ;;  %v3125_v62 = vunpack.c.l.bf16 %v12131_v39 }
  0x72   :  { %v5934_v56 = vmax.f32 %v5926_v46, %v12567_v53  ;;  %v6188_v58 = vmax.f32 %v12503_v29, %v6184_v50  ;;  %11511 = vmatpush1.bf16.msra.mxu1 %v12316_v40  ;;  %v6034_v60 = vmax.f32 %v6026_v49, %v12528_v37  ;;  %v6242_v61 = vmax.f32 %v12528_v37, %v6238_v51 }
  0x73   :  { %5885 = vst [vmem:[#allocation22 + $0xf8] sm:$0xf] %v5883_v6  ;;  %v3237_v63 = vunpack.c.h.bf16 %v12131_v39  ;;  %5723 = vst [vmem:[#allocation22 + $0xec] sm:$0xf] %v5721_v54  ;;  %v5988_v1 = vmax.f32 %v5980_v57, %v12503_v29  ;;  %v3573_v5 = vunpack.c.l.bf16 %v12147_v52  ;;  %v3685_v9 = vunpack.c.h.bf16 %v12147_v52  ;;  %v12319_v12 = vld [vmem:[#allocation22 + $0xe0] ss:$16 sps:$4 sm:$0xff]  }
  0x74   :  { %v5937_v0 = vpack.c.bf16 %v12398_v55, %v5934_v56  ;;  %v6196_v2 = vmax.f32 %v6188_v58, %v12503_v29  ;;  %v6042_v7 = vmax.f32 %v6034_v60, %v12528_v37  ;;  %v6250_v8 = vmax.f32 %v6242_v61, %v12528_v37  ;;  %v12163_v54 = vld [vmem:[%s13998_s5 + $0x88] sm:$0xff]  }
  0x75   :  { %v6076_v10 = vsel %vm12517_vm2, %v3125_v62, %v12462_v4  ;;  %v12321_v13 = vld [vmem:[#allocation22 + $0xe4] ss:$16 sps:$4 sm:$0xff]   ;;  %v5991_v14 = vpack.c.bf16 %v12398_v55, %v5988_v1  ;;  %v6114_v18 = vsel %vm572_vm3, %v3237_v63, %v12460_v3  ;;  %v6292_v22 = vsel %vm12517_vm2, %v3573_v5, %v12462_v4  ;;  %v12179_v5 = vld [vmem:[%s13998_s5 + $0x98] sm:$0xff]  }
  0x76   :  { %5939 = vst [vmem:[#allocation22 + $0xfc] sm:$0xf] %v5937_v0  ;;  %v6204_v16 = vmax.f32 %v6196_v2, %v12503_v29  ;;  %v6080_v17 = vmax.f32 %v12544_v44, %v6076_v10  ;;  %v6045_v19 = vpack.c.bf16 %v12398_v55, %v6042_v7  ;;  %v6258_v20 = vmax.f32 %v6250_v8, %v12528_v37 }
  0x77   :  { %v6130_v21 = vsel %vm12548_vm4, %v6114_v18, %v12462_v4  ;;  %11471 = vmatprep.subr.bf16.mxu0 %v12321_v13  ;;  %5993 = vst [vmem:[#allocation22 + $0x100] sm:$0xf] %v5991_v14  ;;  %v6296_v26 = vmax.f32 %v12544_v44, %v6292_v22  ;;  %v6330_v34 = vsel %vm572_vm3, %v3685_v9, %v12460_v3  ;;  %v3797_v36 = vunpack.c.l.bf16 %v12155_v11 }
  0x78   :  { %v6207_v23 = vpack.c.bf16 %v12398_v55, %v6204_v16  ;;  %v6088_v15 = vmax.f32 %v6080_v17, %v12544_v44  ;;  %v6134_v25 = vmax.f32 %v12567_v53, %v6130_v21  ;;  %11472 = vmatpush1.bf16.msra.mxu0 %v12319_v12  ;;  %6047 = vst [vmem:[#allocation22 + $0x104] sm:$0xf] %v6045_v19  ;;  %v3909_v38 = vunpack.c.h.bf16 %v12155_v11  ;;  %v11983_v21 = vld [vmem:[%s13994_s1] sm:$0xf] }
  0x79   :  { %v6261_v31 = vpack.c.bf16 %v12398_v55, %v6258_v20  ;;  %v6304_v41 = vmax.f32 %v6296_v26, %v12544_v44  ;;  %v6346_v42 = vsel %vm12548_vm4, %v6330_v34, %v12462_v4  ;;  %v4245_v46 = vunpack.c.l.bf16 %v12171_v28  ;;  %v199_v20 = vld [vmem:[%s13997_s4] sm:$0xff]   ;;  %11986 = vperm.xlu0 %12276, %v11983_v21  }
  0x7a   :  { %6209 = vst [vmem:[#allocation22 + $0x110] sm:$0xf] %v6207_v23  ;;  %v6096_v39 = vmax.f32 %v6088_v15, %v12544_v44  ;;  %v6142_v40 = vmax.f32 %v6134_v25, %v12567_v53  ;;  %v6350_v43 = vmax.f32 %v12567_v53, %v6346_v42  ;;  %v4357_v47 = vunpack.c.h.bf16 %v12171_v28  ;;  %v12322_v56 = vld [vmem:[#allocation22 + $0xe8] ss:$16 sps:$4 sm:$0xff]  }
  0x7b   :  { %6263 = vst [vmem:[#allocation22 + $0x114] sm:$0xf] %v6261_v31  ;;  %v6400_v6 = vsel %vm12490_vm0, %v3797_v36, %v12462_v4  ;;  %v6312_v51 = vmax.f32 %v6304_v41, %v12544_v44  ;;  %v6454_v60 = vsel %vm12512_vm1, %v3909_v38, %v12462_v4  ;;  %v6595_v61 = vsel %vm4263_vm7, %v4245_v46, %v12460_v3 }
  0x7c   :  { %v6099_v49 = vpack.c.bf16 %v12398_v55, %v6096_v39  ;;  %v6150_v50 = vmax.f32 %v6142_v40, %v12567_v53  ;;  %v6404_v52 = vmax.f32 %v12503_v29, %v6400_v6  ;;  %v6358_v58 = vmax.f32 %v6350_v43, %v12567_v53  ;;  %v12042_v43 = vld [vmem:[%s13997_s4 + $0x10] sm:$0xff]  }
  0x7d   :  { %v12324_v57 = vld [vmem:[#allocation22 + $0xec] ss:$16 sps:$4 sm:$0xff]   ;;  %v6649_v62 = vsel %vm4263_vm7, %v4357_v47, %v12460_v3  ;;  %v6315_v0 = vpack.c.bf16 %v12398_v55, %v6312_v51  ;;  %v6458_v2 = vmax.f32 %v12528_v37, %v6454_v60  ;;  %v6616_v8 = vsel %vm12490_vm0, %v6595_v61, %v12462_v4 }
  0x7e   :  { %6101 = vst [vmem:[#allocation22 + $0x108] sm:$0xf] %v6099_v49  ;;  %v6153_v63 = vpack.c.bf16 %v12398_v55, %v6150_v50  ;;  %v6412_v1 = vmax.f32 %v6404_v52, %v12503_v29  ;;  %11512 = vmatprep.subr.bf16.mxu1 %v12324_v57  ;;  %v6366_v7 = vmax.f32 %v6358_v58, %v12567_v53  ;;  %v4021_v10 = vunpack.c.l.bf16 %v12163_v54 }
  0x7f   :  { %v6670_v9 = vsel %vm12512_vm1, %v6649_v62, %v12462_v4  ;;  %11513 = vmatpush1.bf16.msra.mxu1 %v12322_v56  ;;  %6317 = vst [vmem:[#allocation22 + $0x118] sm:$0xf] %v6315_v0  ;;  %v6466_v12 = vmax.f32 %v6458_v2, %v12528_v37  ;;  %v6620_v13 = vmax.f32 %v12503_v29, %v6616_v8  ;;  %v4133_v17 = vunpack.c.h.bf16 %v12163_v54  ;;  %v12034_v8 = vld [vmem:[%s13997_s4 + $0x8] sm:$0xff]  }
  0x80   :  { %6155 = vst [vmem:[#allocation22 + $0x10c] sm:$0xf] %v6153_v63  ;;  %v6420_v11 = vmax.f32 %v6412_v1, %v12503_v29  ;;  %v6674_v14 = vmax.f32 %v12528_v37, %v6670_v9  ;;  %v6369_v16 = vpack.c.bf16 %v12398_v55, %v6366_v7  ;;  %v4469_v18 = vunpack.c.l.bf16 %v12179_v5 }
  0x81   :  { %v4581_v19 = vunpack.c.h.bf16 %v12179_v5  ;;  %v12325_v22 = vld [vmem:[#allocation22 + $0x100] ss:$16 sps:$4 sm:$0xff]   ;;  %v6474_v25 = vmax.f32 %v6466_v12, %v12528_v37  ;;  %v6628_v26 = vmax.f32 %v6620_v13, %v12503_v29  ;;  %v6508_v31 = vsel %vm12517_vm2, %v4021_v10, %v12462_v4 }
  0x82   :  { %v12327_v23 = vld [vmem:[#allocation22 + $0x104] ss:$16 sps:$4 sm:$0xff]   ;;  %v6423_v15 = vpack.c.bf16 %v12398_v55, %v6420_v11  ;;  %v6682_v28 = vmax.f32 %v6674_v14, %v12528_v37  ;;  %6371 = vst [vmem:[#allocation22 + $0x11c] sm:$0xf] %v6369_v16  ;;  %v6546_v34 = vsel %vm572_vm3, %v4133_v17, %v12460_v3  ;;  %v6703_v36 = vsel %vm4263_vm7, %v4469_v18, %v12460_v3 }
  0x83   :  { %v6757_v38 = vsel %vm4263_vm7, %v4581_v19, %v12460_v3  ;;  %11473 = vmatprep.subr.bf16.mxu0 %v12327_v23  ;;  %v6477_v39 = vpack.c.bf16 %v12398_v55, %v6474_v25  ;;  %v6636_v40 = vmax.f32 %v6628_v26, %v12503_v29  ;;  %v6512_v42 = vmax.f32 %v12544_v44, %v6508_v31 }
  0x84   :  { %6425 = vst [vmem:[#allocation22 + $0x120] sm:$0xf] %v6423_v15  ;;  %v6690_v41 = vmax.f32 %v6682_v28, %v12528_v37  ;;  %11474 = vmatpush1.bf16.msra.mxu0 %v12325_v22  ;;  %v6562_v46 = vsel %vm12548_vm4, %v6546_v34, %v12462_v4  ;;  %v6724_v47 = vsel %vm12517_vm2, %v6703_v36, %v12462_v4  ;;  %v200_v49 = vunpack.c.l.bf16 %v199_v20  ;;  %v12050_v15 = vld [vmem:[%s13997_s4 + $0x18] sm:$0xff]   ;;  %v12058_v34 = vld [vmem:[%s13997_s4 + $0x20] sm:$0xff]  }
  0x85   :  { %v6762_v6 = vsel %vm572_vm3, %v6757_v38, %v12460_v3  ;;  %6479 = vst [vmem:[#allocation22 + $0x124] sm:$0xf] %v6477_v39  ;;  %v6639_v50 = vpack.c.bf16 %v12398_v55, %v6636_v40  ;;  %v6520_v52 = vmax.f32 %v6512_v42, %v12544_v44  ;;  %v6566_v54 = vmax.f32 %v12567_v53, %v6562_v46 }
  0x86   :  { %v6693_v51 = vpack.c.bf16 %v12398_v55, %v6690_v41  ;;  %v6728_v56 = vmax.f32 %v12544_v44, %v6724_v47  ;;  %v6778_v57 = vsel %vm12548_vm4, %v6762_v6, %v12462_v4  ;;  %v309_v58 = vunpack.c.h.bf16 %v199_v20  ;;  %v12328_v9 = vld [vmem:[#allocation22 + $0x108] ss:$16 sps:$4 sm:$0xff]  }
  0x87   :  { %v645_v60 = vunpack.c.l.bf16 %v12042_v43  ;;  %6641 = vst [vmem:[#allocation22 + $0x130] sm:$0xf] %v6639_v50  ;;  %v6528_v61 = vmax.f32 %v6520_v52, %v12544_v44  ;;  %v6574_v62 = vmax.f32 %v6566_v54, %v12567_v53  ;;  %v6782_v63 = vmax.f32 %v12567_v53, %v6778_v57  ;;  %v12074_v54 = vld [vmem:[%s13997_s4 + $0x30] sm:$0xff]  }
  0x88   :  { %6695 = vst [vmem:[#allocation22 + $0x134] sm:$0xf] %v6693_v51  ;;  %v757_v0 = vunpack.c.h.bf16 %v12042_v43  ;;  %v6736_v1 = vmax.f32 %v6728_v56, %v12544_v44  ;;  %v6837_v2 = vsel %vm12490_vm0, %v200_v49, %v12462_v4  ;;  %v6891_v5 = vsel %vm12512_vm1, %v309_v58, %v12462_v4 }
  0x89   :  { %v7053_v7 = vsel %vm12490_vm0, %v645_v60, %v12462_v4  ;;  %v12330_v10 = vld [vmem:[#allocation22 + $0x10c] ss:$16 sps:$4 sm:$0xff]   ;;  %v6531_v11 = vpack.c.bf16 %v12398_v55, %v6528_v61  ;;  %v6582_v12 = vmax.f32 %v6574_v62, %v12567_v53  ;;  %v6790_v13 = vmax.f32 %v6782_v63, %v12567_v53 }
  0x8a   :  { %v6841_v14 = vmax.f32 %v12503_v29, %v6837_v2  ;;  %v6744_v16 = vmax.f32 %v6736_v1, %v12544_v44  ;;  %v6895_v17 = vmax.f32 %v12528_v37, %v6891_v5  ;;  %v7057_v18 = vmax.f32 %v12503_v29, %v7053_v7  ;;  %11514 = vmatprep.subr.bf16.mxu1 %v12330_v10 }
  0x8b   :  { %v7107_v19 = vsel %vm12512_vm1, %v757_v0, %v12462_v4  ;;  %6533 = vst [vmem:[#allocation22 + $0x128] sm:$0xf] %v6531_v11  ;;  %v6585_v20 = vpack.c.bf16 %v12398_v55, %v6582_v12  ;;  %v6798_v21 = vmax.f32 %v6790_v13, %v12567_v53  ;;  %11515 = vmatpush1.bf16.msra.mxu1 %v12328_v9  ;;  %v421_v31 = vunpack.c.l.bf16 %v12034_v8  ;;  %v12066_v12 = vld [vmem:[%s13997_s4 + $0x28] sm:$0xff]  }
  0x8c   :  { %v6849_v22 = vmax.f32 %v6841_v14, %v12503_v29  ;;  %v7111_v23 = vmax.f32 %v12528_v37, %v7107_v19  ;;  %v6747_v25 = vpack.c.bf16 %v12398_v55, %v6744_v16  ;;  %v6903_v26 = vmax.f32 %v6895_v17, %v12528_v37 }
  0x8d   :  { %v7065_v28 = vmax.f32 %v7057_v18, %v12503_v29  ;;  %6587 = vst [vmem:[#allocation22 + $0x12c] sm:$0xf] %v6585_v20  ;;  %v6801_v36 = vpack.c.bf16 %v12398_v55, %v6798_v21  ;;  %v533_v40 = vunpack.c.h.bf16 %v12034_v8  ;;  %v869_v46 = vunpack.c.l.bf16 %v12050_v15 }
  0x8e   :  { %v6852_v38 = vpack.c.bf16 %v12398_v55, %v6849_v22  ;;  %v7119_v39 = vmax.f32 %v7111_v23, %v12528_v37  ;;  %v12331_v41 = vld [vmem:[#allocation22 + $0x120] ss:$16 sps:$4 sm:$0x3f]   ;;  %6749 = vst [vmem:[#allocation22 + $0x138] sm:$0xf] %v6747_v25  ;;  %v6906_v42 = vpack.c.bf16 %v12398_v55, %v6903_v26  ;;  %v981_v47 = vunpack.c.h.bf16 %v12050_v15  ;;  %v12082_v22 = vld [vmem:[%s13997_s4 + $0x38] sm:$0xff]  }
  0x8f   :  { %v7068_v43 = vpack.c.bf16 %v12398_v55, %v7065_v28  ;;  %v12333_v6 = vld [vmem:[#allocation22 + $0x124] ss:$16 sps:$4 sm:$0x3f]   ;;  %6803 = vst [vmem:[#allocation22 + $0x13c] sm:$0xf] %v6801_v36  ;;  %v6945_v50 = vsel %vm12517_vm2, %v421_v31, %v12462_v4  ;;  %v6974_v51 = vsel %vm572_vm3, %v533_v40, %v12460_v3  ;;  %v1093_v52 = vunpack.c.l.bf16 %v12058_v34 }
  0x90   :  { %6854 = vst [vmem:[#allocation22 + $0x140] sm:$0xf] %v6852_v38  ;;  %v7122_v49 = vpack.c.bf16 %v12398_v55, %v7119_v39  ;;  %v11456_v56 = vand.u32 %v12331_v41, %v12885_v32  ;;  %6908 = vst [vmem:[#allocation22 + $0x144] sm:$0xf] %v6906_v42  ;;  %v6949_v57 = vmax.f32 %v12544_v44, %v6945_v50  ;;  %v1205_v5 = vunpack.c.h.bf16 %v12058_v34  ;;  %v12090_v40 = vld [vmem:[%s13997_s4 + $0x40] sm:$0xff]  }
  0x91   :  { %7070 = vst [vmem:[#allocation22 + $0x150] sm:$0xf] %v7068_v43  ;;  %v6999_v58 = vsel %vm12548_vm4, %v6974_v51, %v12462_v4  ;;  %v7161_v60 = vsel %vm12517_vm2, %v869_v46, %v12462_v4  ;;  %v11459_v61 = vand.u32 %v12333_v6, %v12885_v32  ;;  %v7190_v0 = vsel %vm572_vm3, %v981_v47, %v12460_v3 }
  0x92   :  { %7124 = vst [vmem:[#allocation22 + $0x154] sm:$0xf] %v7122_v49  ;;  %v7003_v62 = vmax.f32 %v12567_v53, %v6999_v58  ;;  %v7165_v63 = vmax.f32 %v12544_v44, %v7161_v60  ;;  %v6957_v1 = vmax.f32 %v6949_v57, %v12544_v44  ;;  %v7215_v2 = vsel %vm12548_vm4, %v7190_v0, %v12462_v4  ;;  %v12106_v60 = vld [vmem:[%s13997_s4 + $0x50] sm:$0xff]  }
  0x93   :  { %v1541_v7 = vunpack.c.l.bf16 %v12074_v54  ;;  %11475 = vmatprep.subr.bf16.mxu0 %v11459_v61  ;;  %v7219_v10 = vmax.f32 %v12567_v53, %v7215_v2  ;;  %v1653_v11 = vunpack.c.h.bf16 %v12074_v54  ;;  %v7269_v14 = vsel %vm12490_vm0, %v1093_v52, %v12462_v4 }
  0x94   :  { %v7011_v8 = vmax.f32 %v7003_v62, %v12567_v53  ;;  %v7173_v9 = vmax.f32 %v7165_v63, %v12544_v44  ;;  %11476 = vmatpush1.bf16.msra.mxu0 %v11456_v56  ;;  %v6960_v13 = vpack.c.bf16 %v12398_v55, %v6957_v1  ;;  %v7323_v16 = vsel %vm12512_vm1, %v1205_v5, %v12462_v4 }
  0x95   :  { %v7485_v17 = vsel %vm12490_vm0, %v1541_v7, %v12462_v4  ;;  %v7227_v20 = vmax.f32 %v7219_v10, %v12567_v53  ;;  %v7273_v21 = vmax.f32 %v12503_v29, %v7269_v14  ;;  %v12334_v23 = vld [vmem:[#allocation22 + $0x128] ss:$16 sps:$4 sm:$0x3f]   ;;  %v7327_v15 = vmax.f32 %v12528_v37, %v7323_v16 }
  0x96   :  { %v7014_v18 = vpack.c.bf16 %v12398_v55, %v7011_v8  ;;  %v7176_v19 = vpack.c.bf16 %v12398_v55, %v7173_v9  ;;  %6962 = vst [vmem:[#allocation22 + $0x148] sm:$0xf] %v6960_v13  ;;  %v7489_v25 = vmax.f32 %v12503_v29, %v7485_v17  ;;  %v7539_v26 = vsel %vm12512_vm1, %v1653_v11, %v12462_v4  ;;  %v12336_v31 = vld [vmem:[#allocation22 + $0x12c] ss:$16 sps:$4 sm:$0x3f]  }
  0x97   :  { %v1317_v28 = vunpack.c.l.bf16 %v12066_v12  ;;  %12227 = vmatmul.mubr.msk.bf16.vlgmr.msra.gmra.mrb[4].mxu0 %vm11236_vm8, %v12981_v59  ;;  %v7230_v34 = vpack.c.bf16 %v12398_v55, %v7227_v20  ;;  %v7281_v36 = vmax.f32 %v7273_v21, %v12503_v29  ;;  %v7543_v38 = vmax.f32 %v12528_v37, %v7539_v26  ;;  %v12098_v21 = vld [vmem:[%s13997_s4 + $0x48] sm:$0xff]  }
  0x98   :  { %7016 = vst [vmem:[#allocation22 + $0x14c] sm:$0xf] %v7014_v18  ;;  %7178 = vst [vmem:[#allocation22 + $0x158] sm:$0xf] %v7176_v19  ;;  %v1429_v39 = vunpack.c.h.bf16 %v12066_v12  ;;  %v11462_v41 = vand.u32 %v12334_v23, %v12885_v32  ;;  %v12337_v42 = vld [vmem:[#allocation22 + $0x140] ss:$16 sps:$4 sm:$0xff]   ;;  %v7335_v46 = vmax.f32 %v7327_v15, %v12528_v37  ;;  %v7497_v47 = vmax.f32 %v7489_v25, %v12503_v29 }
  0x99   :  { %v12339_v43 = vld [vmem:[#allocation22 + $0x144] ss:$16 sps:$4 sm:$0xff]   ;;  %v1765_v6 = vunpack.c.l.bf16 %v12082_v22  ;;  %11714 = vmatprep.mubr.bf16.mxu0 %v12400_v30  ;;  %v11465_v49 = vand.u32 %v12336_v31, %v12885_v32  ;;  %7232 = vst [vmem:[#allocation22 + $0x15c] sm:$0xf] %v7230_v34  ;;  %v7284_v50 = vpack.c.bf16 %v12398_v55, %v7281_v36  ;;  %v7551_v51 = vmax.f32 %v7543_v38, %v12528_v37 }
  0x9a   :  { %v1877_v52 = vunpack.c.h.bf16 %v12082_v22  ;;  %11682 = vmatprep.subr.bf16.mxu0 %v12339_v43  ;;  %v7338_v54 = vpack.c.bf16 %v12398_v55, %v7335_v46  ;;  %v7500_v56 = vpack.c.bf16 %v12398_v55, %v7497_v47  ;;  %v7377_v57 = vsel %vm12517_vm2, %v1317_v28, %v12462_v4  ;;  %v12114_v22 = vld [vmem:[%s13997_s4 + $0x58] sm:$0xff]  }
  0x9b   :  { %v7406_v58 = vsel %vm572_vm3, %v1429_v39, %v12460_v3  ;;  %11516 = vmatprep.subr.bf16.mxu1 %v11465_v49  ;;  %11683 = vmatpush1.bf16.msra.mxu0 %v12337_v42  ;;  %7286 = vst [vmem:[#allocation22 + $0x160] sm:$0xf] %v7284_v50  ;;  %v7554_v61 = vpack.c.bf16 %v12398_v55, %v7551_v51  ;;  %v1989_v0 = vunpack.c.l.bf16 %v12090_v40  ;;  %v2101_v7 = vunpack.c.h.bf16 %v12090_v40  ;;  %v12122_v49 = vld [vmem:[%s13997_s4 + $0x60] sm:$0xff]  }
  0x9c   :  { %v7381_v62 = vmax.f32 %v12544_v44, %v7377_v57  ;;  %v7431_v63 = vsel %vm12548_vm4, %v7406_v58, %v12462_v4  ;;  %11517 = vmatpush1.bf16.msra.mxu1 %v11462_v41  ;;  %7340 = vst [vmem:[#allocation22 + $0x164] sm:$0xf] %v7338_v54  ;;  %7502 = vst [vmem:[#allocation22 + $0x170] sm:$0xf] %v7500_v56  ;;  %v7593_v2 = vsel %vm12517_vm2, %v1765_v6, %v12462_v4 }
  0x9d   :  { %v7435_v1 = vmax.f32 %v12567_v53, %v7431_v63  ;;  %v7622_v5 = vsel %vm572_vm3, %v1877_v52, %v12460_v3  ;;  %7556 = vst [vmem:[#allocation22 + $0x174] sm:$0xf] %v7554_v61  ;;  %v7597_v9 = vmax.f32 %v12544_v44, %v7593_v2  ;;  %v2437_v11 = vunpack.c.l.bf16 %v12106_v60  ;;  %v12138_v63 = vld [vmem:[%s13997_s4 + $0x70] sm:$0xff]  }
  0x9e   :  { %v7389_v8 = vmax.f32 %v7381_v62, %v12544_v44  ;;  %v7647_v10 = vsel %vm12548_vm4, %v7622_v5, %v12462_v4  ;;  %v2549_v14 = vunpack.c.h.bf16 %v12106_v60  ;;  %v7701_v16 = vsel %vm12490_vm0, %v1989_v0, %v12462_v4 }
  0x9f   :  { %v7443_v12 = vmax.f32 %v7435_v1, %v12567_v53  ;;  %v7651_v13 = vmax.f32 %v12567_v53, %v7647_v10  ;;  %12228 = vmatmul.mubr.msk.bf16.vlgmr.msra.gmra.mrb[4].mxu1 %vm11236_vm8, %v12981_v59  ;;  %v7605_v18 = vmax.f32 %v7597_v9, %v12544_v44  ;;  %v7705_v19 = vmax.f32 %v12503_v29, %v7701_v16  ;;  %v12340_v23 = vld [vmem:[#allocation22 + $0x148] ss:$16 sps:$4 sm:$0xff]  }
  0xa0   :  { %v7392_v17 = vpack.c.bf16 %v12398_v55, %v7389_v8  ;;  %v7755_v20 = vsel %vm12512_vm1, %v2101_v7, %v12462_v4  ;;  %v12342_v59 = vld [vmem:[#allocation22 + $0x14c] ss:$16 sps:$4 sm:$0xff]   ;;  %v7917_v28 = vsel %vm12490_vm0, %v2437_v11, %v12462_v4  ;;  %11755 = vmatprep.mubr.bf16.mxu1 %v12400_v30  ;;  %v7971_v38 = vsel %vm12512_vm1, %v2549_v14, %v12462_v4 }
  0xa1   :  { %v7446_v15 = vpack.c.bf16 %v12398_v55, %v7443_v12  ;;  %v7659_v25 = vmax.f32 %v7651_v13, %v12567_v53  ;;  %v7759_v26 = vmax.f32 %v12528_v37, %v7755_v20  ;;  %v7608_v31 = vpack.c.bf16 %v12398_v55, %v7605_v18  ;;  %11723 = vmatprep.subr.bf16.mxu1 %v12342_v59  ;;  %v12130_v59 = vld [vmem:[%s13997_s4 + $0x68] sm:$0xff]  }
  0xa2   :  { %7394 = vst [vmem:[#allocation22 + $0x168] sm:$0xf] %v7392_v17  ;;  %v7713_v34 = vmax.f32 %v7705_v19, %v12503_v29  ;;  %v7921_v36 = vmax.f32 %v12503_v29, %v7917_v28  ;;  %v7975_v41 = vmax.f32 %v12528_v37, %v7971_v38  ;;  %v2213_v42 = vunpack.c.l.bf16 %v12098_v21  ;;  %11724 = vmatpush1.bf16.msra.mxu1 %v12340_v23 }
  0xa3   :  { %7448 = vst [vmem:[#allocation22 + $0x16c] sm:$0xf] %v7446_v15  ;;  %v7662_v39 = vpack.c.bf16 %v12398_v55, %v7659_v25  ;;  %v7767_v40 = vmax.f32 %v7759_v26, %v12528_v37  ;;  %7610 = vst [vmem:[#allocation22 + $0x178] sm:$0xf] %v7608_v31  ;;  %v2325_v47 = vunpack.c.h.bf16 %v12098_v21  ;;  %v2661_v6 = vunpack.c.l.bf16 %v12114_v22  ;;  %v12343_v50 = vld [vmem:[#allocation22 + $0x160] ss:$16 sps:$4 sm:$0xff]  }
  0xa4   :  { %v7716_v43 = vpack.c.bf16 %v12398_v55, %v7713_v34  ;;  %v7929_v46 = vmax.f32 %v7921_v36, %v12503_v29  ;;  %v12345_v51 = vld [vmem:[#allocation22 + $0x164] ss:$16 sps:$4 sm:$0xff]   ;;  %v7983_v54 = vmax.f32 %v7975_v41, %v12528_v37  ;;  %v2773_v56 = vunpack.c.h.bf16 %v12114_v22  ;;  %v12146_v15 = vld [vmem:[%s13997_s4 + $0x78] sm:$0xff]  }
  0xa5   :  { %7664 = vst [vmem:[#allocation22 + $0x17c] sm:$0xf] %v7662_v39  ;;  %v7770_v52 = vpack.c.bf16 %v12398_v55, %v7767_v40  ;;  %v7809_v57 = vsel %vm12517_vm2, %v2213_v42, %v12462_v4  ;;  %v7838_v61 = vsel %vm572_vm3, %v2325_v47, %v12460_v3  ;;  %v8025_v62 = vsel %vm12517_vm2, %v2661_v6, %v12462_v4 }
  0xa6   :  { %7718 = vst [vmem:[#allocation22 + $0x180] sm:$0xf] %v7716_v43  ;;  %v7932_v58 = vpack.c.bf16 %v12398_v55, %v7929_v46  ;;  %v7813_v60 = vmax.f32 %v12544_v44, %v7809_v57  ;;  %11684 = vmatprep.subr.bf16.mxu0 %v12345_v51  ;;  %v7986_v0 = vpack.c.bf16 %v12398_v55, %v7983_v54  ;;  %v2885_v10 = vunpack.c.l.bf16 %v12122_v49  ;;  %v12170_v54 = vld [vmem:[%s13997_s4 + $0x90] sm:$0xff]  }
  0xa7   :  { %7772 = vst [vmem:[#allocation22 + $0x184] sm:$0xf] %v7770_v52  ;;  %v7863_v1 = vsel %vm12548_vm4, %v7838_v61, %v12462_v4  ;;  %v8029_v2 = vmax.f32 %v12544_v44, %v8025_v62  ;;  %v8054_v5 = vsel %vm572_vm3, %v2773_v56, %v12460_v3  ;;  %11685 = vmatpush1.bf16.msra.mxu0 %v12343_v50  ;;  %v2997_v13 = vunpack.c.h.bf16 %v12122_v49  ;;  %v12154_v52 = vld [vmem:[%s13997_s4 + $0x80] sm:$0xff]  }
  0xa8   :  { %7934 = vst [vmem:[#allocation22 + $0x190] sm:$0xf] %v7932_v58  ;;  %v7821_v7 = vmax.f32 %v7813_v60, %v12544_v44  ;;  %v7867_v8 = vmax.f32 %v12567_v53, %v7863_v1  ;;  %v8079_v9 = vsel %vm12548_vm4, %v8054_v5, %v12462_v4  ;;  %7988 = vst [vmem:[#allocation22 + $0x194] sm:$0xf] %v7986_v0  ;;  %v3333_v14 = vunpack.c.l.bf16 %v12138_v63 }
  0xa9   :  { %v8037_v11 = vmax.f32 %v8029_v2, %v12544_v44  ;;  %v8083_v12 = vmax.f32 %v12567_v53, %v8079_v9  ;;  %v3445_v18 = vunpack.c.h.bf16 %v12138_v63  ;;  %v8133_v19 = vsel %vm12490_vm0, %v2885_v10, %v12462_v4 }
  0xaa   :  { %v7824_v16 = vpack.c.bf16 %v12398_v55, %v7821_v7  ;;  %v7875_v17 = vmax.f32 %v7867_v8, %v12567_v53  ;;  %v8137_v22 = vmax.f32 %v12503_v29, %v8133_v19  ;;  %v8187_v23 = vsel %vm12512_vm1, %v2997_v13, %v12462_v4  ;;  %v12346_v25 = vld [vmem:[#allocation22 + $0x168] ss:$16 sps:$4 sm:$0xff]  }
  0xab   :  { %v8040_v20 = vpack.c.bf16 %v12398_v55, %v8037_v11  ;;  %v8091_v21 = vmax.f32 %v8083_v12, %v12567_v53  ;;  %v8191_v31 = vmax.f32 %v12528_v37, %v8187_v23  ;;  %v8349_v34 = vsel %vm12490_vm0, %v3333_v14, %v12462_v4  ;;  %v12162_v19 = vld [vmem:[%s13997_s4 + $0x88] sm:$0xff]  }
  0xac   :  { %v12348_v26 = vld [vmem:[#allocation22 + $0x16c] ss:$16 sps:$4 sm:$0xff]   ;;  %7826 = vst [vmem:[#allocation22 + $0x188] sm:$0xf] %v7824_v16  ;;  %v7878_v28 = vpack.c.bf16 %v12398_v55, %v7875_v17  ;;  %v8403_v36 = vsel %vm12512_vm1, %v3445_v18, %v12462_v4  ;;  %v8145_v39 = vmax.f32 %v8137_v22, %v12503_v29  ;;  %v8353_v40 = vmax.f32 %v12503_v29, %v8349_v34 }
  0xad   :  { %8042 = vst [vmem:[#allocation22 + $0x198] sm:$0xf] %v8040_v20  ;;  %v8094_v38 = vpack.c.bf16 %v12398_v55, %v8091_v21  ;;  %v8407_v41 = vmax.f32 %v12528_v37, %v8403_v36  ;;  %11725 = vmatprep.subr.bf16.mxu1 %v12348_v26  ;;  %v8199_v42 = vmax.f32 %v8191_v31, %v12528_v37  ;;  %v3109_v43 = vunpack.c.l.bf16 %v12130_v59 }
  0xae   :  { %7880 = vst [vmem:[#allocation22 + $0x18c] sm:$0xf] %v7878_v28  ;;  %v3221_v46 = vunpack.c.h.bf16 %v12130_v59  ;;  %v3557_v47 = vunpack.c.l.bf16 %v12146_v15  ;;  %11726 = vmatpush1.bf16.msra.mxu1 %v12346_v25  ;;  %v8148_v6 = vpack.c.bf16 %v12398_v55, %v8145_v39  ;;  %v8361_v49 = vmax.f32 %v8353_v40, %v12503_v29  ;;  %v12178_v59 = vld [vmem:[%s13997_s4 + $0x98] sm:$0xff]  }
  0xaf   :  { %8096 = vst [vmem:[#allocation22 + $0x19c] sm:$0xf] %v8094_v38  ;;  %v8415_v50 = vmax.f32 %v8407_v41, %v12528_v37  ;;  %v3669_v51 = vunpack.c.h.bf16 %v12146_v15  ;;  %v12349_v56 = vld [vmem:[#allocation22 + $0x180] ss:$16 sps:$4 sm:$0xff]   ;;  %v12351_v57 = vld [vmem:[#allocation22 + $0x184] ss:$16 sps:$4 sm:$0xff]   ;;  %v8202_v58 = vpack.c.bf16 %v12398_v55, %v8199_v42  ;;  %v8241_v60 = vsel %vm12517_vm2, %v3109_v43, %v12462_v4 }
  0xb0   :  { %v8270_v61 = vsel %vm572_vm3, %v3221_v46, %v12460_v3  ;;  %v8457_v62 = vsel %vm12517_vm2, %v3557_v47, %v12462_v4  ;;  %8150 = vst [vmem:[#allocation22 + $0x1a0] sm:$0xf] %v8148_v6  ;;  %v8364_v63 = vpack.c.bf16 %v12398_v55, %v8361_v49  ;;  %v8245_v1 = vmax.f32 %v12544_v44, %v8241_v60 }
  0xb1   :  { %v8418_v0 = vpack.c.bf16 %v12398_v55, %v8415_v50  ;;  %v8295_v2 = vsel %vm12548_vm4, %v8270_v61, %v12462_v4  ;;  %11686 = vmatprep.subr.bf16.mxu0 %v12351_v57  ;;  %8204 = vst [vmem:[#allocation22 + $0x1a4] sm:$0xf] %v8202_v58  ;;  %v8461_v7 = vmax.f32 %v12544_v44, %v8457_v62  ;;  %v3781_v9 = vunpack.c.l.bf16 %v12154_v52 }
  0xb2   :  { %v8299_v5 = vmax.f32 %v12567_v53, %v8295_v2  ;;  %v8486_v8 = vsel %vm572_vm3, %v3669_v51, %v12460_v3  ;;  %11687 = vmatpush1.bf16.msra.mxu0 %v12349_v56  ;;  %8366 = vst [vmem:[#allocation22 + $0x1b0] sm:$0xf] %v8364_v63  ;;  %v8253_v10 = vmax.f32 %v8245_v1, %v12544_v44  ;;  %v3893_v12 = vunpack.c.h.bf16 %v12154_v52 }
  0xb3   :  { %8420 = vst [vmem:[#allocation22 + $0x1b4] sm:$0xf] %v8418_v0  ;;  %v8511_v11 = vsel %vm12548_vm4, %v8486_v8, %v12462_v4  ;;  %v4229_v13 = vunpack.c.l.bf16 %v12170_v54  ;;  %v8469_v16 = vmax.f32 %v8461_v7, %v12544_v44  ;;  %v4341_v18 = vunpack.c.h.bf16 %v12170_v54  ;;  %v184_v0 = vld [vmem:[%s13995_s2] sm:$0xff]   ;;  %v12041_v8 = vld [vmem:[%s13995_s2 + $0x10] sm:$0xff]  }
  0xb4   :  { %v8307_v14 = vmax.f32 %v8299_v5, %v12567_v53  ;;  %v8515_v17 = vmax.f32 %v12567_v53, %v8511_v11  ;;  %v8256_v20 = vpack.c.bf16 %v12398_v55, %v8253_v10  ;;  %v8565_v21 = vsel %vm12490_vm0, %v3781_v9, %v12462_v4  ;;  %v12352_v15 = vld [vmem:[#allocation22 + $0x188] ss:$16 sps:$4 sm:$0xff]  }
  0xb5   :  { %v8619_v22 = vsel %vm12512_vm1, %v3893_v12, %v12462_v4  ;;  %v8751_v23 = vsel %vm4263_vm7, %v4229_v13, %v12460_v3  ;;  %v8472_v28 = vpack.c.bf16 %v12398_v55, %v8469_v16  ;;  %v8569_v34 = vmax.f32 %v12503_v29, %v8565_v21 }
  0xb6   :  { %v12354_v25 = vld [vmem:[#allocation22 + $0x18c] ss:$16 sps:$4 sm:$0xff]   ;;  %v8310_v26 = vpack.c.bf16 %v12398_v55, %v8307_v14  ;;  %v8523_v31 = vmax.f32 %v8515_v17, %v12567_v53  ;;  %8258 = vst [vmem:[#allocation22 + $0x1a8] sm:$0xf] %v8256_v20  ;;  %v8623_v36 = vmax.f32 %v12528_v37, %v8619_v22  ;;  %v8781_v38 = vsel %vm12490_vm0, %v8751_v23, %v12462_v4 }
  0xb7   :  { %v8805_v39 = vsel %vm4263_vm7, %v4341_v18, %v12460_v3  ;;  %v4005_v40 = vunpack.c.l.bf16 %v12162_v19  ;;  %11727 = vmatprep.subr.bf16.mxu1 %v12354_v25  ;;  %8474 = vst [vmem:[#allocation22 + $0x1b8] sm:$0xf] %v8472_v28  ;;  %v8577_v42 = vmax.f32 %v8569_v34, %v12503_v29  ;;  %v8785_v43 = vmax.f32 %v12503_v29, %v8781_v38  ;;  %v12033_v25 = vld [vmem:[%s13995_s2 + $0x8] sm:$0xff]  }
  0xb8   :  { %8312 = vst [vmem:[#allocation22 + $0x1ac] sm:$0xf] %v8310_v26  ;;  %v8526_v41 = vpack.c.bf16 %v12398_v55, %v8523_v31  ;;  %v8835_v46 = vsel %vm12512_vm1, %v8805_v39, %v12462_v4  ;;  %11728 = vmatpush1.bf16.msra.mxu1 %v12352_v15  ;;  %v8631_v47 = vmax.f32 %v8623_v36, %v12528_v37  ;;  %v4117_v49 = vunpack.c.h.bf16 %v12162_v19 }
  0xb9   :  { %v8839_v6 = vmax.f32 %v12528_v37, %v8835_v46  ;;  %v4453_v50 = vunpack.c.l.bf16 %v12178_v59  ;;  %v12355_v51 = vld [vmem:[#allocation22 + $0x1a0] ss:$16 sps:$4 sm:$0xff]   ;;  %v8580_v54 = vpack.c.bf16 %v12398_v55, %v8577_v42  ;;  %v8793_v56 = vmax.f32 %v8785_v43, %v12503_v29  ;;  %v12049_v43 = vld [vmem:[%s13995_s2 + $0x18] sm:$0xff]  }
  0xba   :  { %v12357_v52 = vld [vmem:[#allocation22 + $0x1a4] ss:$16 sps:$4 sm:$0xff]   ;;  %8528 = vst [vmem:[#allocation22 + $0x1bc] sm:$0xf] %v8526_v41  ;;  %v4565_v57 = vunpack.c.h.bf16 %v12178_v59  ;;  %v8673_v58 = vsel %vm12517_vm2, %v4005_v40, %v12462_v4  ;;  %v8634_v60 = vpack.c.bf16 %v12398_v55, %v8631_v47  ;;  %v8702_v63 = vsel %vm572_vm3, %v4117_v49, %v12460_v3 }
  0xbb   :  { %v8847_v61 = vmax.f32 %v8839_v6, %v12528_v37  ;;  %v8677_v62 = vmax.f32 %v12544_v44, %v8673_v58  ;;  %11688 = vmatprep.subr.bf16.mxu0 %v12357_v52  ;;  %8582 = vst [vmem:[#allocation22 + $0x1c0] sm:$0xf] %v8580_v54  ;;  %v8796_v1 = vpack.c.bf16 %v12398_v55, %v8793_v56  ;;  %v185_v16 = vunpack.c.l.bf16 %v184_v0 }
  0xbc   :  { %v8727_v2 = vsel %vm12548_vm4, %v8702_v63, %v12462_v4  ;;  %v8859_v5 = vsel %vm4263_vm7, %v4453_v50, %v12460_v3  ;;  %v8913_v7 = vsel %vm4263_vm7, %v4565_v57, %v12460_v3  ;;  %11689 = vmatpush1.bf16.msra.mxu0 %v12355_v51  ;;  %8636 = vst [vmem:[#allocation22 + $0x1c4] sm:$0xf] %v8634_v60  ;;  %v293_v17 = vunpack.c.h.bf16 %v184_v0  ;;  %v12057_v50 = vld [vmem:[%s13995_s2 + $0x20] sm:$0xff]  }
  0xbd   :  { %v8850_v9 = vpack.c.bf16 %v12398_v55, %v8847_v61  ;;  %v8685_v10 = vmax.f32 %v8677_v62, %v12544_v44  ;;  %v8731_v11 = vmax.f32 %v12567_v53, %v8727_v2  ;;  %v8889_v12 = vsel %vm12517_vm2, %v8859_v5, %v12462_v4  ;;  %8798 = vst [vmem:[#allocation22 + $0x1d0] sm:$0xf] %v8796_v1  ;;  %v12073_v5 = vld [vmem:[%s13995_s2 + $0x30] sm:$0xff]  }
  0xbe   :  { %v8893_v13 = vmax.f32 %v12544_v44, %v8889_v12  ;;  %v8918_v14 = vsel %vm572_vm3, %v8913_v7, %v12460_v3  ;;  %v629_v21 = vunpack.c.l.bf16 %v12041_v8  ;;  %v741_v59 = vunpack.c.h.bf16 %v12041_v8  ;;  %v12358_v26 = vld [vmem:[#allocation22 + $0x1a8] ss:$16 sps:$4 sm:$0xff]  }
  0xbf   :  { %8852 = vst [vmem:[#allocation22 + $0x1d4] sm:$0xf] %v8850_v9  ;;  %v8688_v18 = vpack.c.bf16 %v12398_v55, %v8685_v10  ;;  %v8739_v19 = vmax.f32 %v8731_v11, %v12567_v53  ;;  %v8943_v20 = vsel %vm12548_vm4, %v8918_v14, %v12462_v4  ;;  %v9002_v15 = vsel %vm12490_vm0, %v185_v16, %v12462_v4 }
  0xc0   :  { %v8901_v22 = vmax.f32 %v8893_v13, %v12544_v44  ;;  %v8947_v23 = vmax.f32 %v12567_v53, %v8943_v20  ;;  %v9006_v34 = vmax.f32 %v12503_v29, %v9002_v15  ;;  %v9056_v36 = vsel %vm12512_vm1, %v293_v17, %v12462_v4 }
  0xc1   :  { %v12360_v28 = vld [vmem:[#allocation22 + $0x1ac] ss:$16 sps:$4 sm:$0xff]   ;;  %8690 = vst [vmem:[#allocation22 + $0x1c8] sm:$0xf] %v8688_v18  ;;  %v8742_v31 = vpack.c.bf16 %v12398_v55, %v8739_v19  ;;  %v9218_v38 = vsel %vm12490_vm0, %v629_v21, %v12462_v4  ;;  %v9060_v41 = vmax.f32 %v12528_v37, %v9056_v36  ;;  %v9272_v47 = vsel %vm12512_vm1, %v741_v59, %v12462_v4 }
  0xc2   :  { %v8904_v39 = vpack.c.bf16 %v12398_v55, %v8901_v22  ;;  %v8955_v40 = vmax.f32 %v8947_v23, %v12567_v53  ;;  %v9222_v42 = vmax.f32 %v12503_v29, %v9218_v38  ;;  %11729 = vmatprep.subr.bf16.mxu1 %v12360_v28  ;;  %v9009_v46 = vpack.c.bf16 %v12398_v55, %v9006_v34  ;;  %v12065_v21 = vld [vmem:[%s13995_s2 + $0x28] sm:$0xff]  }
  0xc3   :  { %8744 = vst [vmem:[#allocation22 + $0x1cc] sm:$0xf] %v8742_v31  ;;  %v405_v6 = vunpack.c.l.bf16 %v12033_v25  ;;  %v517_v49 = vunpack.c.h.bf16 %v12033_v25  ;;  %11730 = vmatpush1.bf16.msra.mxu1 %v12358_v26  ;;  %v9063_v52 = vpack.c.bf16 %v12398_v55, %v9060_v41  ;;  %v9276_v56 = vmax.f32 %v12528_v37, %v9272_v47  ;;  %v12081_v25 = vld [vmem:[%s13995_s2 + $0x38] sm:$0xff]  }
  0xc4   :  { %8906 = vst [vmem:[#allocation22 + $0x1d8] sm:$0xf] %v8904_v39  ;;  %v8958_v51 = vpack.c.bf16 %v12398_v55, %v8955_v40  ;;  %v9225_v54 = vpack.c.bf16 %v12398_v55, %v9222_v42  ;;  %9011 = vst [vmem:[#allocation22 + $0x1e0] sm:$0xf] %v9009_v46  ;;  %v853_v57 = vunpack.c.l.bf16 %v12049_v43  ;;  %v965_v58 = vunpack.c.h.bf16 %v12049_v43 }
  0xc5   :  { %v9110_v60 = vsel %vm12517_vm2, %v405_v6, %v12462_v4  ;;  %v9130_v61 = vsel %vm572_vm3, %v517_v49, %v12460_v3  ;;  %v12361_v62 = vld [vmem:[#allocation22 + $0x1c0] ss:$16 sps:$4 sm:$0x3f]   ;;  %9065 = vst [vmem:[#allocation22 + $0x1e4] sm:$0xf] %v9063_v52  ;;  %v9279_v63 = vpack.c.bf16 %v12398_v55, %v9276_v56  ;;  %v1077_v2 = vunpack.c.l.bf16 %v12057_v50 }
  0xc6   :  { %8960 = vst [vmem:[#allocation22 + $0x1dc] sm:$0xf] %v8958_v51  ;;  %9227 = vst [vmem:[#allocation22 + $0x1f0] sm:$0xf] %v9225_v54  ;;  %v9114_v0 = vmax.f32 %v12544_v44, %v9110_v60  ;;  %v9164_v1 = vsel %vm12548_vm4, %v9130_v61, %v12462_v4  ;;  %v9326_v9 = vsel %vm12517_vm2, %v853_v57, %v12462_v4  ;;  %v1189_v11 = vunpack.c.h.bf16 %v12057_v50  ;;  %v12089_v54 = vld [vmem:[%s13995_s2 + $0x40] sm:$0xff]   ;;  %v12105_v56 = vld [vmem:[%s13995_s2 + $0x50] sm:$0xff]  }
  0xc7   :  { %v12363_v7 = vld [vmem:[#allocation22 + $0x1c4] ss:$16 sps:$4 sm:$0x3f]   ;;  %v9168_v8 = vmax.f32 %v12567_v53, %v9164_v1  ;;  %v9346_v10 = vsel %vm572_vm3, %v965_v58, %v12460_v3  ;;  %v11671_v12 = vand.u32 %v12361_v62, %v12885_v32  ;;  %9281 = vst [vmem:[#allocation22 + $0x1f4] sm:$0xf] %v9279_v63  ;;  %v9330_v14 = vmax.f32 %v12544_v44, %v9326_v9 }
  0xc8   :  { %v9117_v13 = vpack.c.bf16 %v12398_v55, %v9114_v0  ;;  %v9380_v16 = vsel %vm12548_vm4, %v9346_v10, %v12462_v4  ;;  %v11674_v17 = vand.u32 %v12363_v7, %v12885_v32  ;;  %v1525_v20 = vunpack.c.l.bf16 %v12073_v5  ;;  %v13769_v58 = vld [vmem:[%s13993_s0] sm:$0x3] }
  0xc9   :  { %v9171_v18 = vpack.c.bf16 %v12398_v55, %v9168_v8  ;;  %v9384_v19 = vmax.f32 %v12567_v53, %v9380_v16  ;;  %v9333_v22 = vpack.c.bf16 %v12398_v55, %v9330_v14  ;;  %v1637_v23 = vunpack.c.h.bf16 %v12073_v5  ;;  %v12097_v8 = vld [vmem:[%s13995_s2 + $0x48] sm:$0xff]  }
  0xca   :  { %9119 = vst [vmem:[#allocation22 + $0x1e8] sm:$0xf] %v9117_v13  ;;  %v9434_v59 = vsel %vm12490_vm0, %v1077_v2, %v12462_v4  ;;  %v9488_v15 = vsel %vm12512_vm1, %v1189_v11, %v12462_v4  ;;  %11690 = vmatprep.subr.bf16.mxu0 %v11674_v17  ;;  %v9650_v34 = vsel %vm12490_vm0, %v1525_v20, %v12462_v4  ;;  %v1301_v39 = vunpack.c.l.bf16 %v12065_v21 }
  0xcb   :  { %9173 = vst [vmem:[#allocation22 + $0x1ec] sm:$0xf] %v9171_v18  ;;  %v9387_v26 = vpack.c.bf16 %v12398_v55, %v9384_v19  ;;  %v9438_v28 = vmax.f32 %v12503_v29, %v9434_v59  ;;  %v9492_v31 = vmax.f32 %v12528_v37, %v9488_v15  ;;  %11691 = vmatpush1.bf16.msra.mxu0 %v11671_v12  ;;  %9335 = vst [vmem:[#allocation22 + $0x1f8] sm:$0xf] %v9333_v22  ;;  %v12113_v22 = vld [vmem:[%s13995_s2 + $0x58] sm:$0xff]  }
  0xcc   :  { %v9654_v36 = vmax.f32 %v12503_v29, %v9650_v34  ;;  %v9704_v38 = vsel %vm12512_vm1, %v1637_v23, %v12462_v4  ;;  %v1413_v40 = vunpack.c.h.bf16 %v12065_v21  ;;  %v12364_v41 = vld [vmem:[#allocation22 + $0x1c8] ss:$16 sps:$4 sm:$0x3f]   ;;  %v1749_v47 = vunpack.c.l.bf16 %v12081_v25 }
  0xcd   :  { %9389 = vst [vmem:[#allocation22 + $0x1fc] sm:$0xf] %v9387_v26  ;;  %v9441_v42 = vpack.c.bf16 %v12398_v55, %v9438_v28  ;;  %v9495_v43 = vpack.c.bf16 %v12398_v55, %v9492_v31  ;;  %v9708_v46 = vmax.f32 %v12528_v37, %v9704_v38  ;;  %v12366_v6 = vld [vmem:[#allocation22 + $0x1cc] ss:$16 sps:$4 sm:$0x3f]   ;;  %v1861_v50 = vunpack.c.h.bf16 %v12081_v25 }
  0xce   :  { %v9657_v49 = vpack.c.bf16 %v12398_v55, %v9654_v36  ;;  %v9542_v51 = vsel %vm12517_vm2, %v1301_v39, %v12462_v4  ;;  %v9562_v52 = vsel %vm572_vm3, %v1413_v40, %v12460_v3  ;;  %v11677_v57 = vand.u32 %v12364_v41, %v12885_v32  ;;  %12249 = vmatmul.mubr.msk.bf16.vlgmr.msra.gmra.mrb[8].mxu0 %vm11236_vm8, %v13769_v58  ;;  %v12367_v60 = vld [vmem:[#allocation22 + $0x1e0] ss:$16 sps:$4 sm:$0xff]   ;;  %v12369_v61 = vld [vmem:[#allocation22 + $0x1e4] ss:$16 sps:$4 sm:$0xff]  }
  0xcf   :  { %9443 = vst [vmem:[#allocation22 + $0x200] sm:$0xf] %v9441_v42  ;;  %9497 = vst [vmem:[#allocation22 + $0x204] sm:$0xf] %v9495_v43  ;;  %v9711_v62 = vpack.c.bf16 %v12398_v55, %v9708_v46  ;;  %v9546_v63 = vmax.f32 %v12544_v44, %v9542_v51  ;;  %v9596_v0 = vsel %vm12548_vm4, %v9562_v52, %v12462_v4  ;;  %11929 = vmatprep.mubr.bf16.mxu0 %v12400_v30  ;;  %v12121_v43 = vld [vmem:[%s13995_s2 + $0x60] sm:$0xff]  }
  0xd0   :  { %v11680_v1 = vand.u32 %v12366_v6, %v12885_v32  ;;  %9659 = vst [vmem:[#allocation22 + $0x210] sm:$0xf] %v9657_v49  ;;  %v9600_v2 = vmax.f32 %v12567_v53, %v9596_v0  ;;  %v9758_v5 = vsel %vm12517_vm2, %v1749_v47, %v12462_v4  ;;  %v9778_v7 = vsel %vm572_vm3, %v1861_v50, %v12460_v3  ;;  %v12137_v50 = vld [vmem:[%s13995_s2 + $0x70] sm:$0xff]  }
  0xd1   :  { %11897 = vmatprep.subr.bf16.mxu0 %v12369_v61  ;;  %9713 = vst [vmem:[#allocation22 + $0x214] sm:$0xf] %v9711_v62  ;;  %v9549_v9 = vpack.c.bf16 %v12398_v55, %v9546_v63  ;;  %v9762_v10 = vmax.f32 %v12544_v44, %v9758_v5  ;;  %v9812_v11 = vsel %vm12548_vm4, %v9778_v7, %v12462_v4  ;;  %v1973_v12 = vunpack.c.l.bf16 %v12089_v54 }
  0xd2   :  { %11731 = vmatprep.subr.bf16.mxu1 %v11680_v1  ;;  %11898 = vmatpush1.bf16.msra.mxu0 %v12367_v60  ;;  %v9603_v13 = vpack.c.bf16 %v12398_v55, %v9600_v2  ;;  %v9816_v14 = vmax.f32 %v12567_v53, %v9812_v11  ;;  %v2085_v16 = vunpack.c.h.bf16 %v12089_v54  ;;  %v2421_v17 = vunpack.c.l.bf16 %v12105_v56  ;;  %v12370_v23 = vld [vmem:[#allocation22 + $0x1e8] ss:$16 sps:$4 sm:$0xff]  }
  0xd3   :  { %11732 = vmatpush1.bf16.msra.mxu1 %v11677_v57  ;;  %9551 = vst [vmem:[#allocation22 + $0x208] sm:$0xf] %v9549_v9  ;;  %v9765_v18 = vpack.c.bf16 %v12398_v55, %v9762_v10  ;;  %v2533_v19 = vunpack.c.h.bf16 %v12105_v56  ;;  %v9866_v20 = vsel %vm12490_vm0, %v1973_v12, %v12462_v4  ;;  %v2197_v21 = vunpack.c.l.bf16 %v12097_v8  ;;  %v12129_v1 = vld [vmem:[%s13995_s2 + $0x68] sm:$0xff]   ;;  %v12145_v12 = vld [vmem:[%s13995_s2 + $0x78] sm:$0xff]  }
  0xd4   :  { %v12372_v59 = vld [vmem:[#allocation22 + $0x1ec] ss:$16 sps:$4 sm:$0xff]   ;;  %9605 = vst [vmem:[#allocation22 + $0x20c] sm:$0xf] %v9603_v13  ;;  %v9819_v15 = vpack.c.bf16 %v12398_v55, %v9816_v14  ;;  %v9870_v25 = vmax.f32 %v12503_v29, %v9866_v20  ;;  %v9920_v26 = vsel %vm12512_vm1, %v2085_v16, %v12462_v4  ;;  %v10082_v28 = vsel %vm12490_vm0, %v2421_v17, %v12462_v4 }
  0xd5   :  { %9767 = vst [vmem:[#allocation22 + $0x218] sm:$0xf] %v9765_v18  ;;  %v9924_v31 = vmax.f32 %v12528_v37, %v9920_v26  ;;  %v10086_v34 = vmax.f32 %v12503_v29, %v10082_v28  ;;  %v10136_v36 = vsel %vm12512_vm1, %v2533_v19, %v12462_v4  ;;  %v2309_v38 = vunpack.c.h.bf16 %v12097_v8  ;;  %11938 = vmatprep.subr.bf16.mxu1 %v12372_v59 }
  0xd6   :  { %12250 = vmatmul.mubr.msk.bf16.vlgmr.msra.gmra.mrb[8].mxu1 %vm11236_vm8, %v13769_v58  ;;  %9821 = vst [vmem:[#allocation22 + $0x21c] sm:$0xf] %v9819_v15  ;;  %v9873_v39 = vpack.c.bf16 %v12398_v55, %v9870_v25  ;;  %v10140_v40 = vmax.f32 %v12528_v37, %v10136_v36  ;;  %v2645_v41 = vunpack.c.l.bf16 %v12113_v22  ;;  %v2757_v42 = vunpack.c.h.bf16 %v12113_v22 }
  0xd7   :  { %11939 = vmatpush1.bf16.msra.mxu1 %v12370_v23  ;;  %v9927_v46 = vpack.c.bf16 %v12398_v55, %v9924_v31  ;;  %v10089_v47 = vpack.c.bf16 %v12398_v55, %v10086_v34  ;;  %v9974_v6 = vsel %vm12517_vm2, %v2197_v21, %v12462_v4  ;;  %v9994_v49 = vsel %vm572_vm3, %v2309_v38, %v12460_v3  ;;  %v12373_v51 = vld [vmem:[#allocation22 + $0x200] ss:$16 sps:$4 sm:$0xff]  }
  0xd8   :  { %v12375_v52 = vld [vmem:[#allocation22 + $0x204] ss:$16 sps:$4 sm:$0xff]   ;;  %9875 = vst [vmem:[#allocation22 + $0x220] sm:$0xf] %v9873_v39  ;;  %v10143_v54 = vpack.c.bf16 %v12398_v55, %v10140_v40  ;;  %v9978_v56 = vmax.f32 %v12544_v44, %v9974_v6  ;;  %v10028_v57 = vsel %vm12548_vm4, %v9994_v49, %v12462_v4  ;;  %v10190_v60 = vsel %vm12517_vm2, %v2645_v41, %v12462_v4 }
  0xd9   :  { %11970 = vmatprep.mubr.bf16.mxu1 %v12400_v30  ;;  %9929 = vst [vmem:[#allocation22 + $0x224] sm:$0xf] %v9927_v46  ;;  %10091 = vst [vmem:[#allocation22 + $0x230] sm:$0xf] %v10089_v47  ;;  %v10032_v61 = vmax.f32 %v12567_v53, %v10028_v57  ;;  %v10194_v62 = vmax.f32 %v12544_v44, %v10190_v60  ;;  %v10210_v63 = vsel %vm572_vm3, %v2757_v42, %v12460_v3  ;;  %v12153_v38 = vld [vmem:[%s13995_s2 + $0x80] sm:$0xff]  }
  0xda   :  { %v2869_v0 = vunpack.c.l.bf16 %v12121_v43  ;;  %11899 = vmatprep.subr.bf16.mxu0 %v12375_v52  ;;  %10145 = vst [vmem:[#allocation22 + $0x234] sm:$0xf] %v10143_v54  ;;  %v9981_v2 = vpack.c.bf16 %v12398_v55, %v9978_v56  ;;  %v10244_v30 = vsel %vm12548_vm4, %v10210_v63, %v12462_v4  ;;  %v2981_v5 = vunpack.c.h.bf16 %v12121_v43  ;;  %v12169_v43 = vld [vmem:[%s13995_s2 + $0x90] sm:$0xff]  }
  0xdb   :  { %v3317_v7 = vunpack.c.l.bf16 %v12137_v50  ;;  %11900 = vmatpush1.bf16.msra.mxu0 %v12373_v51  ;;  %v10035_v8 = vpack.c.bf16 %v12398_v55, %v10032_v61  ;;  %v10197_v9 = vpack.c.bf16 %v12398_v55, %v10194_v62  ;;  %v10248_v10 = vmax.f32 %v12567_v53, %v10244_v30 }
  0xdc   :  { %v3429_v11 = vunpack.c.h.bf16 %v12137_v50  ;;  %9983 = vst [vmem:[#allocation22 + $0x228] sm:$0xf] %v9981_v2  ;;  %v10298_v13 = vsel %vm12490_vm0, %v2869_v0, %v12462_v4  ;;  %v10352_v14 = vsel %vm12512_vm1, %v2981_v5, %v12462_v4  ;;  %v3093_v17 = vunpack.c.l.bf16 %v12129_v1  ;;  %v12376_v18 = vld [vmem:[#allocation22 + $0x208] ss:$16 sps:$4 sm:$0xff]  }
  0xdd   :  { %v10514_v16 = vsel %vm12490_vm0, %v3317_v7, %v12462_v4  ;;  %v12378_v19 = vld [vmem:[#allocation22 + $0x20c] ss:$16 sps:$4 sm:$0xff]   ;;  %10037 = vst [vmem:[#allocation22 + $0x22c] sm:$0xf] %v10035_v8  ;;  %10199 = vst [vmem:[#allocation22 + $0x238] sm:$0xf] %v10197_v9  ;;  %v10251_v20 = vpack.c.bf16 %v12398_v55, %v10248_v10  ;;  %v10302_v21 = vmax.f32 %v12503_v29, %v10298_v13  ;;  %v3205_v15 = vunpack.c.h.bf16 %v12129_v1 }
  0xde   :  { %v10356_v22 = vmax.f32 %v12528_v37, %v10352_v14  ;;  %v10518_v23 = vmax.f32 %v12503_v29, %v10514_v16  ;;  %v10568_v59 = vsel %vm12512_vm1, %v3429_v11, %v12462_v4  ;;  %v3541_v25 = vunpack.c.l.bf16 %v12145_v12  ;;  %11940 = vmatprep.subr.bf16.mxu1 %v12378_v19  ;;  %v12161_v0 = vld [vmem:[%s13995_s2 + $0x88] sm:$0xff]   ;;  %v12177_v11 = vld [vmem:[%s13995_s2 + $0x98] sm:$0xff]  }
  0xdf   :  { %v3653_v26 = vunpack.c.h.bf16 %v12145_v12  ;;  %10253 = vst [vmem:[#allocation22 + $0x23c] sm:$0xf] %v10251_v20  ;;  %v10305_v28 = vpack.c.bf16 %v12398_v55, %v10302_v21  ;;  %v10572_v36 = vmax.f32 %v12528_v37, %v10568_v59  ;;  %11941 = vmatpush1.bf16.msra.mxu1 %v12376_v18  ;;  %v10406_v39 = vsel %vm12517_vm2, %v3093_v17, %v12462_v4 }
  0xe0   :  { %v10359_v31 = vpack.c.bf16 %v12398_v55, %v10356_v22  ;;  %v10521_v34 = vpack.c.bf16 %v12398_v55, %v10518_v23  ;;  %v10426_v40 = vsel %vm572_vm3, %v3205_v15, %v12460_v3  ;;  %v10622_v41 = vsel %vm12517_vm2, %v3541_v25, %v12462_v4  ;;  %v12379_v46 = vld [vmem:[#allocation22 + $0x220] ss:$16 sps:$4 sm:$0xff]  }
  0xe1   :  { %v10642_v42 = vsel %vm572_vm3, %v3653_v26, %v12460_v3  ;;  %v12381_v47 = vld [vmem:[#allocation22 + $0x224] ss:$16 sps:$4 sm:$0xff]   ;;  %10307 = vst [vmem:[#allocation22 + $0x240] sm:$0xf] %v10305_v28  ;;  %v10575_v6 = vpack.c.bf16 %v12398_v55, %v10572_v36  ;;  %v10410_v49 = vmax.f32 %v12544_v44, %v10406_v39  ;;  %v10460_v50 = vsel %vm12548_vm4, %v10426_v40, %v12462_v4 }
  0xe2   :  { %10361 = vst [vmem:[#allocation22 + $0x244] sm:$0xf] %v10359_v31  ;;  %10523 = vst [vmem:[#allocation22 + $0x250] sm:$0xf] %v10521_v34  ;;  %v10626_v51 = vmax.f32 %v12544_v44, %v10622_v41  ;;  %v10464_v52 = vmax.f32 %v12567_v53, %v10460_v50  ;;  %v10676_v54 = vsel %vm12548_vm4, %v10642_v42, %v12462_v4  ;;  %v3765_v56 = vunpack.c.l.bf16 %v12153_v38 }
  0xe3   :  { %v3877_v57 = vunpack.c.h.bf16 %v12153_v38  ;;  %11901 = vmatprep.subr.bf16.mxu0 %v12381_v47  ;;  %10577 = vst [vmem:[#allocation22 + $0x254] sm:$0xf] %v10575_v6  ;;  %v10413_v60 = vpack.c.bf16 %v12398_v55, %v10410_v49  ;;  %v10680_v62 = vmax.f32 %v12567_v53, %v10676_v54  ;;  %v4213_v63 = vunpack.c.l.bf16 %v12169_v43 }
  0xe4   :  { %v10629_v61 = vpack.c.bf16 %v12398_v55, %v10626_v51  ;;  %11902 = vmatpush1.bf16.msra.mxu0 %v12379_v46  ;;  %v10467_v1 = vpack.c.bf16 %v12398_v55, %v10464_v52  ;;  %v4325_v2 = vunpack.c.h.bf16 %v12169_v43  ;;  %v10730_v30 = vsel %vm12490_vm0, %v3765_v56, %v12462_v4  ;;  %v12382_v12 = vld [vmem:[#allocation22 + $0x228] ss:$16 sps:$4 sm:$0xff]  }
  0xe5   :  { %v10784_v5 = vsel %vm12512_vm1, %v3877_v57, %v12462_v4  ;;  %10415 = vst [vmem:[#allocation22 + $0x248] sm:$0xf] %v10413_v60  ;;  %v10683_v7 = vpack.c.bf16 %v12398_v55, %v10680_v62  ;;  %v10734_v8 = vmax.f32 %v12503_v29, %v10730_v30  ;;  %v10907_v10 = vsel %vm4263_vm7, %v4213_v63, %v12460_v3 }
  0xe6   :  { %10631 = vst [vmem:[#allocation22 + $0x258] sm:$0xf] %v10629_v61  ;;  %v10788_v9 = vmax.f32 %v12528_v37, %v10784_v5  ;;  %v12384_v13 = vld [vmem:[#allocation22 + $0x22c] ss:$16 sps:$4 sm:$0xff]   ;;  %10469 = vst [vmem:[#allocation22 + $0x24c] sm:$0xf] %v10467_v1  ;;  %v10946_v14 = vsel %vm12490_vm0, %v10907_v10, %v12462_v4  ;;  %v10961_v16 = vsel %vm4263_vm7, %v4325_v2, %v12460_v3  ;;  %v3989_v17 = vunpack.c.l.bf16 %v12161_v0 }
  0xe7   :  { %v4101_v18 = vunpack.c.h.bf16 %v12161_v0  ;;  %10685 = vst [vmem:[#allocation22 + $0x25c] sm:$0xf] %v10683_v7  ;;  %v10737_v19 = vpack.c.bf16 %v12398_v55, %v10734_v8  ;;  %v10950_v21 = vmax.f32 %v12503_v29, %v10946_v14  ;;  %v11000_v22 = vsel %vm12512_vm1, %v10961_v16, %v12462_v4  ;;  %11942 = vmatprep.subr.bf16.mxu1 %v12384_v13 }
  0xe8   :  { %v10791_v20 = vpack.c.bf16 %v12398_v55, %v10788_v9  ;;  %v11004_v24 = vmax.f32 %v12528_v37, %v11000_v22  ;;  %v4437_v23 = vunpack.c.l.bf16 %v12177_v11  ;;  %v4549_v59 = vunpack.c.h.bf16 %v12177_v11  ;;  %11943 = vmatpush1.bf16.msra.mxu1 %v12382_v12 }
  0xe9   :  { %v10838_v15 = vsel %vm12517_vm2, %v3989_v17, %v12462_v4  ;;  %10739 = vst [vmem:[#allocation22 + $0x260] sm:$0xf] %v10737_v19  ;;  %v10953_v25 = vpack.c.bf16 %v12398_v55, %v10950_v21  ;;  %v10858_v33 = vsel %vm572_vm3, %v4101_v18, %v12460_v3  ;;  %v12385_v26 = vld [vmem:[#allocation22 + $0x240] ss:$16 sps:$4 sm:$0xff]  }
  0xea   :  { %10793 = vst [vmem:[#allocation22 + $0x264] sm:$0xf] %v10791_v20  ;;  %v10842_v29 = vmax.f32 %v12544_v44, %v10838_v15  ;;  %v12387_v28 = vld [vmem:[#allocation22 + $0x244] ss:$16 sps:$4 sm:$0xff]   ;;  %v11007_v37 = vpack.c.bf16 %v12398_v55, %v11004_v24  ;;  %v10892_v31 = vsel %vm12548_vm4, %v10858_v33, %v12462_v4  ;;  %v11015_v34 = vsel %vm4263_vm7, %v4437_v23, %v12460_v3 }
  0xeb   :  { %v11069_v36 = vsel %vm4263_vm7, %v4549_v59, %v12460_v3  ;;  %10955 = vst [vmem:[#allocation22 + $0x270] sm:$0xf] %v10953_v25  ;;  %v10896_v39 = vmax.f32 %v12567_v53, %v10892_v31  ;;  %v11054_v40 = vsel %vm12517_vm2, %v11015_v34, %v12462_v4  ;;  %11903 = vmatprep.subr.bf16.mxu0 %v12387_v28 }
  0xec   :  { %v10845_v38 = vpack.c.bf16 %v12398_v55, %v10842_v29  ;;  %v11074_v41 = vsel %vm572_vm3, %v11069_v36, %v12460_v3  ;;  %11009 = vst [vmem:[#allocation22 + $0x274] sm:$0xf] %v11007_v37  ;;  %v11058_v42 = vmax.f32 %v12544_v44, %v11054_v40  ;;  %11904 = vmatpush1.bf16.msra.mxu0 %v12385_v26 }
  0xed   :  { %v11108_v48 = vsel %vm12548_vm4, %v11074_v41, %v12462_v4  ;;  %v10899_v43 = vpack.c.bf16 %v12398_v55, %v10896_v39  ;;  %v12388_v35 = vld [vmem:[#allocation22 + $0x248] ss:$16 sps:$4 sm:$0xff]  }
  0xee   :  { %10847 = vst [vmem:[#allocation22 + $0x268] sm:$0xf] %v10845_v38  ;;  %v11112_v46 = vmax.f32 %v12567_v53, %v11108_v48  ;;  %v12390_v47 = vld [vmem:[#allocation22 + $0x24c] ss:$16 sps:$4 sm:$0xff]   ;;  %v11061_v6 = vpack.c.bf16 %v12398_v55, %v11058_v42 }
  0xef   :  { %10901 = vst [vmem:[#allocation22 + $0x26c] sm:$0xf] %v10899_v43  ;;  %11944 = vmatprep.subr.bf16.mxu1 %v12390_v47 }
  0xf0   :  { %v11115_v3 = vpack.c.bf16 %v12398_v55, %v11112_v46  ;;  %11063 = vst [vmem:[#allocation22 + $0x278] sm:$0xf] %v11061_v6  ;;  %11945 = vmatpush1.bf16.msra.mxu1 %v12388_v35 }
  0xf2   :  { %11117 = vst [vmem:[#allocation22 + $0x27c] sm:$0xf] %v11115_v3  ;;  %v12391_v27 = vld [vmem:[#allocation22 + $0x260] ss:$16 sps:$4 sm:$0x3f]  }
  0xf3   :  { %v12393_v44 = vld [vmem:[#allocation22 + $0x264] ss:$16 sps:$4 sm:$0x3f]   ;;  %v11886_v4 = vand.u32 %v12391_v27, %v12885_v32 }
  0xf4   :  { %v11889_v45 = vand.u32 %v12393_v44, %v12885_v32 }
  0xf6   :  { %11905 = vmatprep.subr.bf16.mxu0 %v11889_v45 }
  0xf7   :  { %v12394_v49 = vld [vmem:[#allocation22 + $0x268] ss:$16 sps:$4 sm:$0x3f]   ;;  %11906 = vmatpush1.bf16.msra.mxu0 %v11886_v4 }
  0xf8   :  { %v11892_v50 = vand.u32 %v12394_v49, %v12885_v32  ;;  %v11987_v59 = vpop.permute.xlu0 %11986 }
  0xf9   :  { %v12396_v53 = vld [vmem:[#allocation22 + $0x26c] ss:$16 sps:$4 sm:$0x3f]  }
  0xfa   :  { %v11895_v51 = vand.u32 %v12396_v53, %v12885_v32  ;;  %12271 = vmatmul.mubr.msk.bf16.vlgmr.msra.gmra.mrb[12].mxu0 %vm11236_vm8, %v13769_v58 }
  0xfc   :  { %11946 = vmatprep.subr.bf16.mxu1 %v11895_v51 }
  0xfd   :  { %11947 = vmatpush1.bf16.msra.mxu1 %v11892_v50 }
 0x100   :  { %12272 = vmatmul.mubr.msk.bf16.vlgmr.msra.gmra.mrb[12].mxu1 %vm11236_vm8, %v13769_v58 }
 0x129   :  { %v11290_v55 = vpop.f32.mrb[0].mxu0 }
 0x12a   :  { %v11292_v52 = vpop.f32.mrb[1].mxu0 }
 0x12b   :  { %v11294_v54 = vpop.f32.mrb[2].mxu0 }
 0x12c   :  { %v11295_v56 = vpop.f32.mrb[3].mxu0 }
 0x131   :  { %v11331_v57 = vpop.f32.mrb[0].mxu1 }
 0x132   :  { %v11333_v60 = vpop.f32.mrb[1].mxu1 }
 0x133   :  { %v11335_v61 = vpop.f32.mrb[2].mxu1 }
 0x134   :  { %v11336_v62 = vpop.f32.mrb[3].mxu1 }
 0x16a   :  { %v11501_v63 = vpop.f32.mrb[4].mxu0 }
 0x16b   :  { %v11549_v0 = vmax.f32 %v11290_v55, %v11501_v63  ;;  %v11503_v1 = vpop.f32.mrb[5].mxu0 }
 0x16c   :  { %v11550_v32 = vmax.f32 %v11292_v52, %v11503_v1  ;;  %v11505_v2 = vpop.f32.mrb[6].mxu0 }
 0x16d   :  { %v11506_v30 = vpop.f32.mrb[7].mxu0 }
 0x172   :  { %v11542_v5 = vpop.f32.mrb[4].mxu1 }
 0x173   :  { %v11551_v7 = vmax.f32 %v11331_v57, %v11542_v5  ;;  %v11544_v8 = vpop.f32.mrb[5].mxu1 }
 0x174   :  { %v11552_v9 = vmax.f32 %v11333_v60, %v11544_v8  ;;  %v11546_v10 = vpop.f32.mrb[6].mxu1 }
 0x175   :  { %v11547_v58 = vpop.f32.mrb[7].mxu1 }
 0x1a1   :  { %v11716_v11 = vpop.f32.mrb[8].mxu0 }
 0x1a2   :  { %v11764_v12 = vmax.f32 %v11549_v0, %v11716_v11  ;;  %v11718_v13 = vpop.f32.mrb[9].mxu0 }
 0x1a3   :  { %v11765_v14 = vmax.f32 %v11550_v32, %v11718_v13  ;;  %v11720_v16 = vpop.f32.mrb[10].mxu0 }
 0x1a4   :  { %v11721_v17 = vpop.f32.mrb[11].mxu0 }
 0x1a9   :  { %v11757_v18 = vpop.f32.mrb[8].mxu1 }
 0x1aa   :  { %v11766_v19 = vmax.f32 %v11551_v7, %v11757_v18  ;;  %v11759_v20 = vpop.f32.mrb[9].mxu1 }
 0x1ab   :  { %v11767_v21 = vmax.f32 %v11552_v9, %v11759_v20  ;;  %v11761_v22 = vpop.f32.mrb[10].mxu1 }
 0x1ac   :  { %v11762_v24 = vpop.f32.mrb[11].mxu1 }
 0x1cd   :  { %v11931_v23 = vpop.f32.mrb[12].mxu0 }
 0x1ce   :  { %v11979_v15 = vmax.f32 %v11764_v12, %v11931_v23  ;;  %v11933_v25 = vpop.f32.mrb[13].mxu0 }
 0x1cf   :  { %v11980_v29 = vmax.f32 %v11765_v14, %v11933_v25  ;;  %v11935_v33 = vpop.f32.mrb[14].mxu0 }
 0x1d0   :  { %v11989_v26 = vadd.f32 %v11987_v59, %v11979_v15  ;;  %v11936_v28 = vpop.f32.mrb[15].mxu0 }
 0x1d1   :  { %v11990_v37 = vadd.f32 %v11987_v59, %v11980_v29 }
 0x1d2   :  { %v11993_v34 = vmax.f32 %v11989_v26, 0.0 }
 0x1d3   :  { %v11972_v31 = vpop.f32.mrb[12].mxu1  ;;  %v11994_v38 = vmax.f32 %v11990_v37, 0.0 }
 0x1d4   :  { %v11981_v36 = vmax.f32 %v11766_v19, %v11972_v31  ;;  %v11974_v39 = vpop.f32.mrb[13].mxu1 }
 0x1d5   :  { %v11982_v40 = vmax.f32 %v11767_v21, %v11974_v39  ;;  %v11976_v41 = vpop.f32.mrb[14].mxu1  ;;  %v12001_v48 = vcombine.low %v11993_v34, %v11994_v38 }
 0x1d6   :  { %v11991_v42 = vadd.f32 %v11987_v59, %v11981_v36  ;;  %v11977_v43 = vpop.f32.mrb[15].mxu1 }
 0x1d7   :  { %v11992_v46 = vadd.f32 %v11987_v59, %v11982_v40  ;;  %12005 = vst [vmem:[%s14002_s9] sm:$0xff] %v12001_v48 }
 0x1d8   :  { %v11995_v35 = vmax.f32 %v11991_v42, 0.0 }
 0x1d9   :  { %v11996_v47 = vmax.f32 %v11992_v46, 0.0 }
 0x1db   :  { %v12002_v6 = vcombine.low %v11995_v35, %v11996_v47 }
 0x1dd   :  { %12006 = vst [vmem:[%s14002_s9 + $0x8] sm:$0xff] %v12002_v6 }

// kernel: forward.7
= control target key start
LH: loop header
LB: loop body
LE: loop exit
PB: predicated region body
PF: predicated region fallthrough
CT: control target
= control target key end

     0   :  { %s5080_s0 = inlined_call_operand.vmem [shape: bf16[8,100], index: 0, kind: input, shape index: {}]   ;;  %s5081_s1 = inlined_call_operand.vmem [shape: f32[8,1], index: 1, kind: input, shape index: {}]   ;;  %s5082_s2 = inlined_call_operand.vmem [shape: bf16[1,100,50], index: 2, kind: input, shape index: {}]   ;;  %s5083_s3 = inlined_call_operand.<no memory space> [shape: bf16[], index: 3, kind: input, shape index: {}]   ;;  %s5084_s4 = inlined_call_operand.vmem [shape: bf16[1,100,50], index: 4, kind: input, shape index: {}]   ;;  %s5085_s5 = inlined_call_operand.vmem [shape: bf16[1,100,50], index: 5, kind: input, shape index: {}]   ;;  %s5086_s6 = inlined_call_operand.<no memory space> [shape: s32[], index: 6, kind: input, shape index: {}]   ;;  %s5087_s7 = inlined_call_operand.vmem [shape: bf16[1,100,50], index: 7, kind: input, shape index: {}]   ;;  %s5088_s8 = inlined_call_operand.<no memory space> [shape: bf16[], index: 8, kind: input, shape index: {}]   ;;  %s5089_s9 = inlined_call_operand.vmem [shape: f32[8,128], index: 9, kind: output, shape index: {}]  }
   0x1   :  { %v14_v0 = vstv %s5083_s3  ;;  %v29_v1 = vstv %s5086_s6  ;;  %v35_v2 = vstv %s5088_s8 }
   0x2   :  { %v4407_v3 = vunpack.i.l.bf16 %v14_v0  ;;  %v4409_v4 = vunpack.i.l.bf16 %v35_v2 }
   0x3   :  { %v211_v5 = vld [vmem:[%s5087_s7] sm:$0xff]   ;;  %v219_v6 = vlaneseq  ;;  %v4136_v8 = vld [vmem:[%s5087_s7 + $0x8] sm:$0xff]   ;;  %v4345_v9 = vmov 0.0   ;;  %v4428_v15 = vld [vmem:[%s5087_s7 + $0x10] sm:$0xff]   ;;  %vm4346_vm0 = vmmov 0   ;;  %vm3763_vm4 = vcmask 1041408  }
   0x4   :  { %v199_v7 = vld [vmem:[%s5085_s5] sm:$0xff]   ;;  %4241 = vmatprep.subr.bf16.mxu0 %v4345_v9  ;;  %4259 = vmatprep.subr.bf16.mxu1 %v4345_v9  ;;  %v212_v10 = vunpack.c.l.bf16 %v211_v5  ;;  %v323_v11 = vunpack.c.h.bf16 %v211_v5  ;;  %v4135_v14 = vld [vmem:[%s5085_s5 + $0x8] sm:$0xff]   ;;  %v4433_v16 = vld [vmem:[%s5085_s5 + $0x10] sm:$0xff]   ;;  %v435_v18 = vunpack.c.l.bf16 %v4136_v8  ;;  %v547_v19 = vunpack.c.h.bf16 %v4136_v8 }
   0x5   :  { %v200_v12 = vunpack.c.l.bf16 %v199_v7  ;;  %v310_v13 = vunpack.c.h.bf16 %v199_v7  ;;  %v4436_v17 = vand.u32 127, %v219_v6  ;;  %v422_v20 = vunpack.c.l.bf16 %v4135_v14  ;;  %v4441_v21 = vld [vmem:[%s5087_s7 + $0x18] sm:$0xff]   ;;  %4255 = vmatprep.mubr.msk.bf16.mxu0 %vm4346_vm0, %v4345_v9  ;;  %4273 = vmatprep.mubr.msk.bf16.mxu1 %vm4346_vm0, %v4345_v9 }
   0x6   :  { %v534_v22 = vunpack.c.h.bf16 %v4135_v14  ;;  %v659_v23 = vunpack.c.l.bf16 %v4428_v15  ;;  %v771_v24 = vunpack.c.h.bf16 %v4428_v15  ;;  %v646_v25 = vunpack.c.l.bf16 %v4433_v16 }
   0x7   :  { %vm222_vm1 = vcmp.lt.s32.totalorder %v4436_v17, 50  ;;  %vm4452_vm2 = vcmp.lt.s32.totalorder %v4436_v17, %v29_v1  ;;  %v758_v27 = vunpack.c.h.bf16 %v4433_v16  ;;  %v883_v28 = vunpack.c.l.bf16 %v4441_v21 }
   0x8   :  { %v223_v29 = vsel %vm222_vm1, %v212_v10, %v4407_v3  ;;  %v4465_v30 = vsel %vm4452_vm2, %v4407_v3, %v4409_v4  ;;  %v334_v31 = vsel %vm222_vm1, %v323_v11, %v4407_v3  ;;  %v1617_v32 = vsel %vm222_vm1, %v200_v12, %v4407_v3 }
   0x9   :  { %v235_v33 = vsel %vm4452_vm2, %v223_v29, %v4409_v4  ;;  %v346_v34 = vsel %vm4452_vm2, %v334_v31, %v4409_v4  ;;  %v1633_v35 = vsel %vm4452_vm2, %v1617_v32, %v4409_v4  ;;  %v1671_v36 = vsel %vm222_vm1, %v310_v13, %v4407_v3 }
   0xa   :  { %v243_v37 = vmax.f32 %v235_v33, %v4465_v30  ;;  %v354_v38 = vmax.f32 %v346_v34, %v4465_v30  ;;  %v1637_v39 = vmax.f32 %v4465_v30, %v1633_v35  ;;  %v1687_v40 = vsel %vm4452_vm2, %v1671_v36, %v4409_v4 }
   0xb   :  { %v1691_v41 = vmax.f32 %v4465_v30, %v1687_v40  ;;  %v446_v42 = vsel %vm222_vm1, %v435_v18, %v4407_v3  ;;  %v558_v43 = vsel %vm222_vm1, %v547_v19, %v4407_v3  ;;  %v1725_v44 = vsel %vm222_vm1, %v422_v20, %v4407_v3 }
   0xc   :  { %v251_v45 = vmax.f32 %v243_v37, %v4465_v30  ;;  %v362_v46 = vmax.f32 %v354_v38, %v4465_v30  ;;  %v1645_v47 = vmax.f32 %v1637_v39, %v4465_v30  ;;  %v458_v48 = vsel %vm4452_vm2, %v446_v42, %v4409_v4  ;;  %v4160_v42 = vld [vmem:[%s5087_s7 + $0x20] sm:$0xff]  }
   0xd   :  { %v1699_v49 = vmax.f32 %v1691_v41, %v4465_v30  ;;  %v466_v50 = vmax.f32 %v458_v48, %v4465_v30  ;;  %v570_v51 = vsel %vm4452_vm2, %v558_v43, %v4409_v4  ;;  %v1741_v52 = vsel %vm4452_vm2, %v1725_v44, %v4409_v4 }
   0xe   :  { %v259_v53 = vmax.f32 %v251_v45, %v4465_v30  ;;  %v370_v54 = vmax.f32 %v362_v46, %v4465_v30  ;;  %v1653_v55 = vmax.f32 %v1645_v47, %v4465_v30  ;;  %v578_v56 = vmax.f32 %v570_v51, %v4465_v30 }
   0xf   :  { %v1707_v57 = vmax.f32 %v1699_v49, %v4465_v30  ;;  %v474_v58 = vmax.f32 %v466_v50, %v4465_v30  ;;  %v1745_v59 = vmax.f32 %v4465_v30, %v1741_v52  ;;  %v1779_v60 = vsel %vm222_vm1, %v534_v22, %v4407_v3 }
  0x10   :  { %v261_v61 = vpack.c.bf16 %v4345_v9, %v259_v53  ;;  %v373_v62 = vpack.c.bf16 %v4345_v9, %v370_v54  ;;  %v1656_v63 = vpack.c.bf16 %v4345_v9, %v1653_v55  ;;  %v586_v0 = vmax.f32 %v578_v56, %v4465_v30 }
  0x11   :  { %v1710_v1 = vpack.c.bf16 %v4345_v9, %v1707_v57  ;;  %v482_v2 = vmax.f32 %v474_v58, %v4465_v30  ;;  %v1753_v5 = vmax.f32 %v1745_v59, %v4465_v30  ;;  %v1795_v7 = vsel %vm4452_vm2, %v1779_v60, %v4409_v4 }
  0x12   :  { %263 = vst [vmem:[#allocation22] sm:$0xf] %v261_v61  ;;  %375 = vst [vmem:[#allocation22 + $0x4] sm:$0xf] %v373_v62  ;;  %v594_v8 = vmax.f32 %v586_v0, %v4465_v30  ;;  %v1799_v10 = vmax.f32 %v4465_v30, %v1795_v7  ;;  %v670_v11 = vsel %vm222_vm1, %v659_v23, %v4407_v3  ;;  %v995_v37 = vunpack.c.h.bf16 %v4441_v21 }
  0x13   :  { %1658 = vst [vmem:[#allocation22 + $0x34] sm:$0xf] %v1656_v63  ;;  %v782_v12 = vsel %vm222_vm1, %v771_v24, %v4407_v3  ;;  %1712 = vst [vmem:[#allocation22 + $0x38] sm:$0xf] %v1710_v1  ;;  %v485_v13 = vpack.c.bf16 %v4345_v9, %v482_v2  ;;  %v1761_v14 = vmax.f32 %v1753_v5, %v4465_v30  ;;  %v1107_v58 = vunpack.c.l.bf16 %v4160_v42 }
  0x14   :  { %v682_v15 = vsel %vm4452_vm2, %v670_v11, %v4409_v4  ;;  %v794_v18 = vsel %vm4452_vm2, %v782_v12, %v4409_v4  ;;  %v597_v19 = vpack.c.bf16 %v4345_v9, %v594_v8  ;;  %v1807_v20 = vmax.f32 %v1799_v10, %v4465_v30  ;;  %v4159_v8 = vld [vmem:[%s5085_s5 + $0x20] sm:$0xff]  }
  0x15   :  { %v690_v22 = vmax.f32 %v682_v15, %v4465_v30  ;;  %v802_v23 = vmax.f32 %v794_v18, %v4465_v30  ;;  %487 = vst [vmem:[#allocation22 + $0x8] sm:$0xf] %v485_v13  ;;  %v1764_v24 = vpack.c.bf16 %v4345_v9, %v1761_v14  ;;  %v1833_v29 = vsel %vm222_vm1, %v646_v25, %v4407_v3  ;;  %v4151_v25 = vld [vmem:[%s5085_s5 + $0x18] sm:$0xff]  }
  0x16   :  { %v1887_v31 = vsel %vm222_vm1, %v758_v27, %v4407_v3  ;;  %v894_v32 = vsel %vm222_vm1, %v883_v28, %v4407_v3  ;;  %599 = vst [vmem:[#allocation22 + $0xc] sm:$0xf] %v597_v19  ;;  %v1815_v33 = vmax.f32 %v1807_v20, %v4465_v30  ;;  %v1849_v16 = vsel %vm4452_vm2, %v1833_v29, %v4409_v4  ;;  %v4168_v20 = vld [vmem:[%s5087_s7 + $0x28] sm:$0xff]  }
  0x17   :  { %v698_v34 = vmax.f32 %v690_v22, %v4465_v30  ;;  %v810_v35 = vmax.f32 %v802_v23, %v4465_v30  ;;  %1766 = vst [vmem:[#allocation22 + $0x3c] sm:$0xf] %v1764_v24  ;;  %v1853_v27 = vmax.f32 %v4465_v30, %v1849_v16  ;;  %v1903_v28 = vsel %vm4452_vm2, %v1887_v31, %v4409_v4 }
  0x18   :  { %v906_v36 = vsel %vm4452_vm2, %v894_v32, %v4409_v4  ;;  %v1818_v38 = vpack.c.bf16 %v4345_v9, %v1815_v33  ;;  %v1907_v41 = vmax.f32 %v4465_v30, %v1903_v28  ;;  %v1006_v21 = vsel %vm222_vm1, %v995_v37, %v4407_v3 }
  0x19   :  { %v706_v39 = vmax.f32 %v698_v34, %v4465_v30  ;;  %v818_v40 = vmax.f32 %v810_v35, %v4465_v30  ;;  %v4317_v43 = vld [vmem:[#allocation22] sm:$0xff]   ;;  %v1861_v44 = vmax.f32 %v1853_v27, %v4465_v30  ;;  %v914_v45 = vmax.f32 %v906_v36, %v4465_v30 }
  0x1a   :  { %v870_v46 = vunpack.c.l.bf16 %v4151_v25  ;;  %v4318_v47 = vld [vmem:[#allocation22 + $0x34] sm:$0xff]   ;;  %1820 = vst [vmem:[#allocation22 + $0x40] sm:$0xf] %v1818_v38  ;;  %v1915_v50 = vmax.f32 %v1907_v41, %v4465_v30  ;;  %v1018_v51 = vsel %vm4452_vm2, %v1006_v21, %v4409_v4  ;;  %4242 = vmatpush3.bf16.msra.mxu0 %v4317_v43  ;;  %v982_v55 = vunpack.c.h.bf16 %v4151_v25  ;;  %v4167_v41 = vld [vmem:[%s5085_s5 + $0x28] sm:$0xff]  }
  0x1b   :  { %v709_v48 = vpack.c.bf16 %v4345_v9, %v706_v39  ;;  %v821_v49 = vpack.c.bf16 %v4345_v9, %v818_v40  ;;  %v1869_v52 = vmax.f32 %v1861_v44, %v4465_v30  ;;  %v922_v53 = vmax.f32 %v914_v45, %v4465_v30  ;;  %4260 = vmatpush3.bf16.msra.mxu1 %v4318_v47 }
  0x1c   :  { %v1026_v54 = vmax.f32 %v1018_v51, %v4465_v30  ;;  %4243 = vmatprep.subr.bf16.mxu0 %v4345_v9  ;;  %v1923_v56 = vmax.f32 %v1915_v50, %v4465_v30  ;;  %v1941_v57 = vsel %vm222_vm1, %v870_v46, %v4407_v3  ;;  %v1219_v59 = vunpack.c.h.bf16 %v4160_v42  ;;  %4261 = vmatprep.subr.bf16.mxu1 %v4345_v9 }
  0x1d   :  { %711 = vst [vmem:[#allocation22 + $0x10] sm:$0xf] %v709_v48  ;;  %823 = vst [vmem:[#allocation22 + $0x14] sm:$0xf] %v821_v49  ;;  %v4319_v60 = vld [vmem:[#allocation22 + $0x8] sm:$0xff]   ;;  %v1872_v61 = vpack.c.bf16 %v4345_v9, %v1869_v52  ;;  %v930_v62 = vmax.f32 %v922_v53, %v4465_v30  ;;  %v1957_v0 = vsel %vm4452_vm2, %v1941_v57, %v4409_v4  ;;  %v1094_v29 = vunpack.c.l.bf16 %v4159_v8 }
  0x1e   :  { %v1034_v63 = vmax.f32 %v1026_v54, %v4465_v30  ;;  %v1926_v1 = vpack.c.bf16 %v4345_v9, %v1923_v56  ;;  %v1961_v2 = vmax.f32 %v4465_v30, %v1957_v0  ;;  %v1995_v5 = vsel %vm222_vm1, %v982_v55, %v4407_v3  ;;  %4244 = vmatpush3.bf16.msra.mxu0 %v4319_v60  ;;  %v4176_v49 = vld [vmem:[%s5087_s7 + $0x30] sm:$0xf] }
  0x1f   :  { %v1118_v7 = vsel %vm222_vm1, %v1107_v58, %v4407_v3  ;;  %1874 = vst [vmem:[#allocation22 + $0x44] sm:$0xf] %v1872_v61  ;;  %v933_v10 = vpack.c.bf16 %v4345_v9, %v930_v62  ;;  %v2011_v12 = vsel %vm4452_vm2, %v1995_v5, %v4409_v4  ;;  %4245 = vmatprep.subr.bf16.mxu0 %v4345_v9  ;;  %v1206_v31 = vunpack.c.h.bf16 %v4159_v8 }
  0x20   :  { %v1042_v11 = vmax.f32 %v1034_v63, %v4465_v30  ;;  %v1130_v13 = vsel %vm4452_vm2, %v1118_v7, %v4409_v4  ;;  %1928 = vst [vmem:[#allocation22 + $0x48] sm:$0xf] %v1926_v1  ;;  %v1969_v14 = vmax.f32 %v1961_v2, %v4465_v30  ;;  %v2015_v15 = vmax.f32 %v4465_v30, %v2011_v12  ;;  %v4175_v12 = vld [vmem:[%s5085_s5 + $0x30] sm:$0xf] }
  0x21   :  { %v1138_v18 = vmax.f32 %v1130_v13, %v4465_v30  ;;  %v1230_v19 = vsel %vm222_vm1, %v1219_v59, %v4407_v3  ;;  %v4320_v22 = vld [vmem:[#allocation22 + $0x3c] sm:$0xff]   ;;  %935 = vst [vmem:[#allocation22 + $0x18] sm:$0xf] %v933_v10  ;;  %v2049_v25 = vsel %vm222_vm1, %v1094_v29, %v4407_v3  ;;  %v2103_v27 = vsel %vm222_vm1, %v1206_v31, %v4407_v3 }
  0x22   :  { %v1045_v23 = vpack.c.bf16 %v4345_v9, %v1042_v11  ;;  %v1242_v24 = vsel %vm4452_vm2, %v1230_v19, %v4409_v4  ;;  %v1977_v32 = vmax.f32 %v1969_v14, %v4465_v30  ;;  %v2023_v33 = vmax.f32 %v2015_v15, %v4465_v30  ;;  %4262 = vmatpush3.bf16.msra.mxu1 %v4320_v22  ;;  %v184_v19 = vld [vmem:[%s5084_s4] sm:$0xff]  }
  0x23   :  { %v1146_v34 = vmax.f32 %v1138_v18, %v4465_v30  ;;  %v1250_v35 = vmax.f32 %v1242_v24, %v4465_v30  ;;  %v1331_v28 = vunpack.c.l.bf16 %v4168_v20  ;;  %v1443_v36 = vunpack.c.h.bf16 %v4168_v20  ;;  %4263 = vmatprep.subr.bf16.mxu1 %v4345_v9  ;;  %v169_v24 = vld [vmem:[%s5082_s2] sm:$0xff]  }
  0x24   :  { %v4321_v16 = vld [vmem:[#allocation22 + $0x10] sm:$0xff]   ;;  %1047 = vst [vmem:[#allocation22 + $0x1c] sm:$0xf] %v1045_v23  ;;  %v1980_v37 = vpack.c.bf16 %v4345_v9, %v1977_v32  ;;  %v2031_v38 = vmax.f32 %v2023_v33, %v4465_v30  ;;  %v2065_v42 = vsel %vm4452_vm2, %v2049_v25, %v4409_v4  ;;  %v2119_v43 = vsel %vm4452_vm2, %v2103_v27, %v4409_v4 }
  0x25   :  { %v1154_v39 = vmax.f32 %v1146_v34, %v4465_v30  ;;  %v1258_v40 = vmax.f32 %v1250_v35, %v4465_v30  ;;  %4246 = vmatpush3.bf16.msra.mxu0 %v4321_v16  ;;  %v1342_v44 = vsel %vm222_vm1, %v1331_v28, %v4407_v3  ;;  %v1454_v45 = vsel %vm222_vm1, %v1443_v36, %v4407_v3 }
  0x26   :  { %4247 = vmatprep.subr.bf16.mxu0 %v4345_v9  ;;  %1982 = vst [vmem:[#allocation22 + $0x4c] sm:$0xf] %v1980_v37  ;;  %v2034_v21 = vpack.c.bf16 %v4345_v9, %v2031_v38  ;;  %v2069_v48 = vmax.f32 %v4465_v30, %v2065_v42  ;;  %v2123_v51 = vmax.f32 %v4465_v30, %v2119_v43  ;;  %v1318_v54 = vunpack.c.l.bf16 %v4167_v41 }
  0x27   :  { %v1157_v46 = vpack.c.bf16 %v4345_v9, %v1154_v39  ;;  %v1266_v47 = vmax.f32 %v1258_v40, %v4465_v30  ;;  %v4322_v50 = vld [vmem:[#allocation22 + $0x44] sm:$0xff]   ;;  %v1354_v52 = vsel %vm4452_vm2, %v1342_v44, %v4409_v4  ;;  %v1466_v53 = vsel %vm4452_vm2, %v1454_v45, %v4409_v4 }
  0x28   :  { %2036 = vst [vmem:[#allocation22 + $0x50] sm:$0xf] %v2034_v21  ;;  %v2077_v56 = vmax.f32 %v2069_v48, %v4465_v30  ;;  %v1362_v57 = vmax.f32 %v1354_v52, %v4465_v30  ;;  %v1474_v58 = vmax.f32 %v1466_v53, %v4465_v30  ;;  %4264 = vmatpush3.bf16.msra.mxu1 %v4322_v50  ;;  %v1430_v60 = vunpack.c.h.bf16 %v4167_v41 }
  0x29   :  { %1159 = vst [vmem:[#allocation22 + $0x20] sm:$0xf] %v1157_v46  ;;  %v1269_v55 = vpack.c.bf16 %v4345_v9, %v1266_v47  ;;  %v2131_v59 = vmax.f32 %v2123_v51, %v4465_v30  ;;  %v2157_v61 = vsel %vm222_vm1, %v1318_v54, %v4407_v3  ;;  %v1555_v62 = vunpack.c.l.bf16 %v4176_v49  ;;  %4265 = vmatprep.subr.bf16.mxu1 %v4345_v9  ;;  %v4134_v49 = vld [vmem:[%s5084_s4 + $0x8] sm:$0xff]  }
  0x2a   :  { %v2085_v0 = vmax.f32 %v2077_v56, %v4465_v30  ;;  %v1370_v1 = vmax.f32 %v1362_v57, %v4465_v30  ;;  %v1482_v2 = vmax.f32 %v1474_v58, %v4465_v30  ;;  %v2173_v5 = vsel %vm4452_vm2, %v2157_v61, %v4409_v4 }
  0x2b   :  { %v4323_v63 = vld [vmem:[#allocation22 + $0x18] sm:$0xff]   ;;  %1271 = vst [vmem:[#allocation22 + $0x24] sm:$0xf] %v1269_v55  ;;  %v2139_v7 = vmax.f32 %v2131_v59, %v4465_v30  ;;  %v2177_v8 = vmax.f32 %v4465_v30, %v2173_v5  ;;  %v2211_v10 = vsel %vm222_vm1, %v1430_v60, %v4407_v3  ;;  %v1558_v11 = vshrl.u32 %v219_v6, 7 }
  0x2c   :  { %4248 = vmatpush3.bf16.msra.mxu0 %v4323_v63  ;;  %v2088_v13 = vpack.c.bf16 %v4345_v9, %v2085_v0  ;;  %v1378_v14 = vmax.f32 %v1370_v1, %v4465_v30  ;;  %v1490_v15 = vmax.f32 %v1482_v2, %v4465_v30  ;;  %v2227_v18 = vsel %vm4452_vm2, %v2211_v10, %v4409_v4  ;;  %v4133_v63 = vld [vmem:[%s5082_s2 + $0x8] sm:$0xff]  }
  0x2d   :  { %4249 = vmatprep.subr.bf16.mxu0 %v4345_v9  ;;  %v2142_v6 = vpack.c.bf16 %v4345_v9, %v2139_v7  ;;  %v2185_v20 = vmax.f32 %v2177_v8, %v4465_v30  ;;  %v2231_v22 = vmax.f32 %v4465_v30, %v2227_v18  ;;  %v4732_v23 = vadd.s32 96, %v1558_v11 }
  0x2e   :  { %2090 = vst [vmem:[#allocation22 + $0x54] sm:$0xf] %v2088_v13  ;;  %v1381_v29 = vpack.c.bf16 %v4345_v9, %v1378_v14  ;;  %v1493_v31 = vpack.c.bf16 %v4345_v9, %v1490_v15  ;;  %v1542_v32 = vunpack.c.l.bf16 %v4175_v12  ;;  %v185_v16 = vunpack.c.l.bf16 %v184_v19  ;;  %v4142_v13 = vld [vmem:[%s5084_s4 + $0x10] sm:$0xff]  }
  0x2f   :  { %v4324_v33 = vld [vmem:[#allocation22 + $0x4c] sm:$0xff]   ;;  %2144 = vst [vmem:[#allocation22 + $0x58] sm:$0xf] %v2142_v6  ;;  %v2193_v34 = vmax.f32 %v2185_v20, %v4465_v30  ;;  %v2239_v35 = vmax.f32 %v2231_v22, %v4465_v30  ;;  %vm1560_vm3 = vcmp.lt.s32.totalorder %v4732_v23, 100  ;;  %v294_v28 = vunpack.c.h.bf16 %v184_v19 }
  0x30   :  { %1383 = vst [vmem:[#allocation22 + $0x28] sm:$0xf] %v1381_v29  ;;  %1495 = vst [vmem:[#allocation22 + $0x2c] sm:$0xf] %v1493_v31  ;;  %v1561_v25 = vsel %vm1560_vm3, %v1555_v62, %v4407_v3  ;;  %v2260_v27 = vsel %vm1560_vm3, %v1542_v32, %v4407_v3  ;;  %v170_v36 = vunpack.c.l.bf16 %v169_v24  ;;  %4266 = vmatpush3.bf16.msra.mxu1 %v4324_v33  ;;  %v278_v52 = vunpack.c.h.bf16 %v169_v24 }
  0x31   :  { %v2196_v38 = vpack.c.bf16 %v4345_v9, %v2193_v34  ;;  %v2247_v39 = vmax.f32 %v2239_v35, %v4465_v30  ;;  %v1566_v40 = vsel %vm222_vm1, %v1561_v25, %v4407_v3  ;;  %v2265_v41 = vsel %vm222_vm1, %v2260_v27, %v4407_v3  ;;  %4267 = vmatprep.subr.bf16.mxu1 %v4345_v9 }
  0x32   :  { %v4325_v37 = vld [vmem:[#allocation22 + $0x20] sm:$0xff]   ;;  %v1578_v42 = vsel %vm4452_vm2, %v1566_v40, %v4409_v4  ;;  %v2281_v43 = vsel %vm4452_vm2, %v2265_v41, %v4409_v4  ;;  %v2316_v44 = vsel %vm222_vm1, %v185_v16, %v4407_v3  ;;  %v2369_v45 = vsel %vm222_vm1, %v294_v28, %v4407_v3  ;;  %v4141_v28 = vld [vmem:[%s5082_s2 + $0x10] sm:$0xff]  }
  0x33   :  { %4250 = vmatpush3.bf16.msra.mxu0 %v4325_v37  ;;  %2198 = vst [vmem:[#allocation22 + $0x5c] sm:$0xf] %v2196_v38  ;;  %v2250_v21 = vpack.c.bf16 %v4345_v9, %v2247_v39  ;;  %v1586_v46 = vmax.f32 %v1578_v42, %v4465_v30  ;;  %v2285_v47 = vmax.f32 %v4465_v30, %v2281_v43  ;;  %v406_v62 = vunpack.c.l.bf16 %v4134_v49 }
  0x34   :  { %v2340_v48 = vsel %vm4452_vm2, %v2316_v44, %v4409_v4  ;;  %4251 = vmatprep.subr.bf16.mxu0 %v4345_v9  ;;  %v2394_v51 = vsel %vm4452_vm2, %v2369_v45, %v4409_v4  ;;  %v3015_v53 = vsel %vm222_vm1, %v170_v36, %v4407_v3  ;;  %v3067_v61 = vsel %vm222_vm1, %v278_v52, %v4407_v3 }
  0x35   :  { %v2344_v50 = vmax.f32 %v4465_v30, %v2340_v48  ;;  %2252 = vst [vmem:[#allocation22 + $0x60] sm:$0xf] %v2250_v21  ;;  %v1594_v54 = vmax.f32 %v1586_v46, %v4465_v30  ;;  %v2293_v55 = vmax.f32 %v2285_v47, %v4465_v30  ;;  %v2398_v56 = vmax.f32 %v4465_v30, %v2394_v51  ;;  %v4150_v47 = vld [vmem:[%s5084_s4 + $0x18] sm:$0xff]  }
  0x36   :  { %v3047_v57 = vsel %vm4452_vm2, %v3015_v53, %v4409_v4  ;;  %v4326_v58 = vld [vmem:[#allocation22 + $0x54] sm:$0xff]   ;;  %v3101_v7 = vsel %vm4452_vm2, %v3067_v61, %v4409_v4  ;;  %v518_v12 = vunpack.c.h.bf16 %v4134_v49  ;;  %v390_v19 = vunpack.c.l.bf16 %v4133_v63 }
  0x37   :  { %v2352_v59 = vmax.f32 %v2344_v50, %v4465_v30  ;;  %v3051_v60 = vmax.f32 %v4465_v30, %v3047_v57  ;;  %v4327_v0 = vld [vmem:[#allocation22 + $0x28] sm:$0xff]   ;;  %v1602_v1 = vmax.f32 %v1594_v54, %v4465_v30  ;;  %v2301_v2 = vmax.f32 %v2293_v55, %v4465_v30  ;;  %4268 = vmatpush3.bf16.msra.mxu1 %v4326_v58  ;;  %v4149_v48 = vld [vmem:[%s5082_s2 + $0x18] sm:$0xff]  }
  0x38   :  { %v2406_v5 = vmax.f32 %v2398_v56, %v4465_v30  ;;  %v3105_v11 = vmax.f32 %v4465_v30, %v3101_v7  ;;  %4269 = vmatprep.subr.bf16.mxu1 %v4345_v9  ;;  %4252 = vmatpush3.bf16.msra.mxu0 %v4327_v0  ;;  %v2423_v20 = vsel %vm222_vm1, %v406_v62, %v4407_v3  ;;  %v502_v24 = vunpack.c.h.bf16 %v4133_v63 }
  0x39   :  { %v2355_v8 = vpack.c.bf16 %v4345_v9, %v2352_v59  ;;  %v3054_v10 = vpack.c.bf16 %v4345_v9, %v3051_v60  ;;  %v1605_v14 = vpack.c.bf16 %v4345_v9, %v1602_v1  ;;  %v2304_v15 = vpack.c.bf16 %v4345_v9, %v2301_v2  ;;  %4253 = vmatprep.subr.bf16.mxu0 %v4345_v9 }
  0x3a   :  { %v2409_v18 = vpack.c.bf16 %v4345_v9, %v2406_v5  ;;  %v3108_v6 = vpack.c.bf16 %v4345_v9, %v3105_v11  ;;  %v2477_v22 = vsel %vm222_vm1, %v518_v12, %v4407_v3  ;;  %v2448_v29 = vsel %vm4452_vm2, %v2423_v20, %v4409_v4  ;;  %v4903_v12 = vld [vmem:[%s5080_s0] sm:$0xf] }
  0x3b   :  { %2357 = vst [vmem:[#allocation22 + $0x68] sm:$0xf] %v2355_v8  ;;  %3056 = vst [vmem:[#allocation22 + $0x9c] sm:$0xf] %v3054_v10  ;;  %v2502_v31 = vsel %vm4452_vm2, %v2477_v22, %v4409_v4  ;;  %v3121_v32 = vsel %vm222_vm1, %v390_v19, %v4407_v3  ;;  %v630_v33 = vunpack.c.l.bf16 %v4142_v13  ;;  %v2452_v35 = vmax.f32 %v4465_v30, %v2448_v29  ;;  %v4158_v19 = vld [vmem:[%s5084_s4 + $0x20] sm:$0xff]  }
  0x3c   :  { %1607 = vst [vmem:[#allocation22 + $0x30] sm:$0xf] %v1605_v14  ;;  %2306 = vst [vmem:[#allocation22 + $0x64] sm:$0xf] %v2304_v15  ;;  %v4328_v34 = vld [vmem:[#allocation22 + $0x5c] sm:$0xff]   ;;  %v2506_v16 = vmax.f32 %v4465_v30, %v2502_v31  ;;  %v3155_v25 = vsel %vm4452_vm2, %v3121_v32, %v4409_v4  ;;  %v3175_v27 = vsel %vm222_vm1, %v502_v24, %v4407_v3  ;;  %vm3759_vm5 = vcmask 818176  }
  0x3d   :  { %2411 = vst [vmem:[#allocation22 + $0x6c] sm:$0xf] %v2409_v18  ;;  %3110 = vst [vmem:[#allocation22 + $0xa0] sm:$0xf] %v3108_v6  ;;  %v3159_v36 = vmax.f32 %v4465_v30, %v3155_v25  ;;  %v3209_v37 = vsel %vm4452_vm2, %v3175_v27, %v4409_v4  ;;  %v742_v38 = vunpack.c.h.bf16 %v4142_v13  ;;  %v2531_v39 = vsel %vm222_vm1, %v630_v33, %v4407_v3  ;;  %v4157_v31 = vld [vmem:[%s5082_s2 + $0x20] sm:$0xff]  }
  0x3e   :  { %4270 = vmatpush3.bf16.msra.mxu1 %v4328_v34  ;;  %v2460_v40 = vmax.f32 %v2452_v35, %v4465_v30  ;;  %v2514_v41 = vmax.f32 %v2506_v16, %v4465_v30  ;;  %v3213_v42 = vmax.f32 %v4465_v30, %v3209_v37  ;;  %v2556_v43 = vsel %vm4452_vm2, %v2531_v39, %v4409_v4 }
  0x3f   :  { %4271 = vmatprep.subr.bf16.mxu1 %v4345_v9  ;;  %v3162_v44 = vpack.c.bf16 %v4345_v9, %v3159_v36  ;;  %v2560_v45 = vmax.f32 %v4465_v30, %v2556_v43  ;;  %v2585_v21 = vsel %vm222_vm1, %v742_v38, %v4407_v3  ;;  %v614_v46 = vunpack.c.l.bf16 %v4141_v28 }
  0x40   :  { %v2463_v49 = vpack.c.bf16 %v4345_v9, %v2460_v40  ;;  %v2517_v50 = vpack.c.bf16 %v4345_v9, %v2514_v41  ;;  %v3216_v51 = vpack.c.bf16 %v4345_v9, %v3213_v42  ;;  %v2610_v52 = vsel %vm4452_vm2, %v2585_v21, %v4409_v4  ;;  %v4166_v21 = vld [vmem:[%s5084_s4 + $0x28] sm:$0xff]  }
  0x41   :  { %3164 = vst [vmem:[#allocation22 + $0xa4] sm:$0xf] %v3162_v44  ;;  %v2568_v53 = vmax.f32 %v2560_v45, %v4465_v30  ;;  %v2614_v54 = vmax.f32 %v4465_v30, %v2610_v52  ;;  %v726_v55 = vunpack.c.h.bf16 %v4141_v28  ;;  %v3229_v56 = vsel %vm222_vm1, %v614_v46, %v4407_v3 }
  0x42   :  { %2465 = vst [vmem:[#allocation22 + $0x70] sm:$0xf] %v2463_v49  ;;  %2519 = vst [vmem:[#allocation22 + $0x74] sm:$0xf] %v2517_v50  ;;  %v3263_v58 = vsel %vm4452_vm2, %v3229_v56, %v4409_v4  ;;  %v854_v59 = vunpack.c.l.bf16 %v4150_v47  ;;  %v966_v60 = vunpack.c.h.bf16 %v4150_v47  ;;  %v838_v61 = vunpack.c.l.bf16 %v4149_v48 }
  0x43   :  { %v4329_v57 = vld [vmem:[#allocation22 + $0x30] ss:$0 sps:$4 sm:$0x33]   ;;  %3218 = vst [vmem:[#allocation22 + $0xa8] sm:$0xf] %v3216_v51  ;;  %v2571_v63 = vpack.c.bf16 %v4345_v9, %v2568_v53  ;;  %v2622_v0 = vmax.f32 %v2614_v54, %v4465_v30  ;;  %v3267_v1 = vmax.f32 %v4465_v30, %v3263_v58  ;;  %v3283_v2 = vsel %vm222_vm1, %v726_v55, %v4407_v3  ;;  %v4165_v54 = vld [vmem:[%s5082_s2 + $0x28] sm:$0xff]  }
  0x44   :  { %v4330_v62 = vld [vmem:[#allocation22 + $0x64] ss:$0 sps:$4 sm:$0x33]   ;;  %v3765_v5 = vsel %vm3763_vm4, %v4329_v57, 0  ;;  %v3317_v7 = vsel %vm4452_vm2, %v3283_v2, %v4409_v4  ;;  %v2639_v8 = vsel %vm222_vm1, %v854_v59, %v4407_v3  ;;  %v2693_v10 = vsel %vm222_vm1, %v966_v60, %v4407_v3  ;;  %v4331_v13 = vld [vmem:[#allocation22 + $0x68] sm:$0xff]   ;;  %v4332_v6 = vld [vmem:[#allocation22 + $0x9c] sm:$0xff]  }
  0x45   :  { %4254 = vmatpush3.bf16.msra.mxu0 %v3765_v5  ;;  %v3861_v11 = vsel %vm3763_vm4, %v4330_v62, 0  ;;  %2573 = vst [vmem:[#allocation22 + $0x78] sm:$0xf] %v2571_v63  ;;  %v2625_v14 = vpack.c.bf16 %v4345_v9, %v2622_v0  ;;  %v3270_v15 = vpack.c.bf16 %v4345_v9, %v3267_v1  ;;  %v3321_v18 = vmax.f32 %v4465_v30, %v3317_v7  ;;  %v4174_v7 = vld [vmem:[%s5084_s4 + $0x30] sm:$0xf] }
  0x46   :  { %4272 = vmatpush3.bf16.msra.mxu1 %v3861_v11  ;;  %4277 = vmatprep.subr.bf16.mxu0 %v4345_v9  ;;  %v2664_v20 = vsel %vm4452_vm2, %v2639_v8, %v4409_v4  ;;  %v2718_v22 = vsel %vm4452_vm2, %v2693_v10, %v4409_v4  ;;  %v950_v24 = vunpack.c.h.bf16 %v4149_v48  ;;  %v3337_v29 = vsel %vm222_vm1, %v838_v61, %v4407_v3 }
  0x47   :  { %4295 = vmatprep.subr.bf16.mxu1 %v4345_v9  ;;  %2627 = vst [vmem:[#allocation22 + $0x7c] sm:$0xf] %v2625_v14  ;;  %3272 = vst [vmem:[#allocation22 + $0xac] sm:$0xf] %v3270_v15  ;;  %v3324_v32 = vpack.c.bf16 %v4345_v9, %v3321_v18  ;;  %v2668_v33 = vmax.f32 %v4465_v30, %v2664_v20  ;;  %v2722_v34 = vmax.f32 %v4465_v30, %v2718_v22  ;;  %v4173_v15 = vld [vmem:[%s5082_s2 + $0x30] sm:$0xf] }
  0x48   :  { %v3371_v35 = vsel %vm4452_vm2, %v3337_v29, %v4409_v4  ;;  %4256 = vmatmul.mubr.msk.bf16.vlgmr.msra.gmra.mrb[0].mxu0 %vm3759_vm5, %v4903_v12  ;;  %v3391_v25 = vsel %vm222_vm1, %v950_v24, %v4407_v3  ;;  %v1078_v27 = vunpack.c.l.bf16 %v4158_v19  ;;  %v1190_v28 = vunpack.c.h.bf16 %v4158_v19 }
  0x49   :  { %v3375_v16 = vmax.f32 %v4465_v30, %v3371_v35  ;;  %4274 = vmatmul.mubr.msk.bf16.vlgmr.msra.gmra.mrb[0].mxu1 %vm3759_vm5, %v4903_v12  ;;  %4278 = vmatpush3.bf16.msra.mxu0 %v4331_v13  ;;  %v4333_v36 = vld [vmem:[#allocation22 + $0x70] sm:$0xff]   ;;  %3326 = vst [vmem:[#allocation22 + $0xb0] sm:$0xf] %v3324_v32  ;;  %v2676_v37 = vmax.f32 %v2668_v33, %v4465_v30  ;;  %v1062_v40 = vunpack.c.l.bf16 %v4157_v31  ;;  %v1174_v45 = vunpack.c.h.bf16 %v4157_v31  ;;  %v4098_v32 = vld [vmem:[%s5081_s1] sm:$0xff] }
  0x4a   :  { %v2730_v38 = vmax.f32 %v2722_v34, %v4465_v30  ;;  %v3425_v39 = vsel %vm4452_vm2, %v3391_v25, %v4409_v4  ;;  %4296 = vmatpush3.bf16.msra.mxu1 %v4332_v6  ;;  %4279 = vmatprep.subr.bf16.mxu0 %v4345_v9  ;;  %v4334_v41 = vld [vmem:[#allocation22 + $0xa4] sm:$0xff]   ;;  %v2747_v44 = vsel %vm222_vm1, %v1078_v27, %v4407_v3  ;;  %v1302_v58 = vunpack.c.l.bf16 %v4166_v21 }
  0x4b   :  { %v3378_v42 = vpack.c.bf16 %v4345_v9, %v3375_v16  ;;  %v3429_v43 = vmax.f32 %v4465_v30, %v3425_v39  ;;  %4297 = vmatprep.subr.bf16.mxu1 %v4345_v9  ;;  %v2679_v46 = vpack.c.bf16 %v4345_v9, %v2676_v37  ;;  %v2772_v48 = vsel %vm4452_vm2, %v2747_v44, %v4409_v4 }
  0x4c   :  { %v2733_v47 = vpack.c.bf16 %v4345_v9, %v2730_v38  ;;  %v2801_v49 = vsel %vm222_vm1, %v1190_v28, %v4407_v3  ;;  %v2776_v51 = vmax.f32 %v4465_v30, %v2772_v48  ;;  %v3445_v53 = vsel %vm222_vm1, %v1062_v40, %v4407_v3  ;;  %4291 = vmatprep.mubr.msk.bf16.mxu0 %vm4346_vm0, %v4345_v9 }
  0x4d   :  { %3380 = vst [vmem:[#allocation22 + $0xb4] sm:$0xf] %v3378_v42  ;;  %v3432_v50 = vpack.c.bf16 %v4345_v9, %v3429_v43  ;;  %v2826_v52 = vsel %vm4452_vm2, %v2801_v49, %v4409_v4  ;;  %4280 = vmatpush3.bf16.msra.mxu0 %v4333_v36  ;;  %2681 = vst [vmem:[#allocation22 + $0x80] sm:$0xf] %v2679_v46  ;;  %v3479_v56 = vsel %vm4452_vm2, %v3445_v53, %v4409_v4  ;;  %v4347_v37 = vmov 0  }
  0x4e   :  { %2735 = vst [vmem:[#allocation22 + $0x84] sm:$0xf] %v2733_v47  ;;  %v2830_v55 = vmax.f32 %v4465_v30, %v2826_v52  ;;  %v3499_v57 = vsel %vm222_vm1, %v1174_v45, %v4407_v3  ;;  %4309 = vmatprep.mubr.msk.bf16.mxu1 %vm4346_vm0, %v4345_v9  ;;  %4298 = vmatpush3.bf16.msra.mxu1 %v4334_v41  ;;  %v4335_v59 = vld [vmem:[#allocation22 + $0x78] sm:$0xff]   ;;  %v1414_v63 = vunpack.c.h.bf16 %v4166_v21  ;;  %v1286_v5 = vunpack.c.l.bf16 %v4165_v54 }
  0x4f   :  { %4281 = vmatprep.subr.bf16.mxu0 %v4345_v9  ;;  %3434 = vst [vmem:[#allocation22 + $0xb8] sm:$0xf] %v3432_v50  ;;  %v2784_v60 = vmax.f32 %v2776_v51, %v4465_v30  ;;  %v3483_v61 = vmax.f32 %v4465_v30, %v3479_v56  ;;  %v3533_v62 = vsel %vm4452_vm2, %v3499_v57, %v4409_v4  ;;  %v1398_v24 = vunpack.c.h.bf16 %v4165_v54 }
  0x50   :  { %4299 = vmatprep.subr.bf16.mxu1 %v4345_v9  ;;  %v2838_v0 = vmax.f32 %v2830_v55, %v4465_v30  ;;  %v3537_v1 = vmax.f32 %v4465_v30, %v3533_v62  ;;  %v2855_v2 = vsel %vm222_vm1, %v1302_v58, %v4407_v3  ;;  %v4336_v8 = vld [vmem:[#allocation22 + $0xac] sm:$0xff]   ;;  %v2909_v14 = vsel %vm222_vm1, %v1414_v63, %v4407_v3 }
  0x51   :  { %v2787_v10 = vpack.c.bf16 %v4345_v9, %v2784_v60  ;;  %v3486_v11 = vpack.c.bf16 %v4345_v9, %v3483_v61  ;;  %v2880_v13 = vsel %vm4452_vm2, %v2855_v2, %v4409_v4  ;;  %4282 = vmatpush3.bf16.msra.mxu0 %v4335_v59  ;;  %v2934_v20 = vsel %vm4452_vm2, %v2909_v14, %v4409_v4 }
  0x52   :  { %v2841_v18 = vpack.c.bf16 %v4345_v9, %v2838_v0  ;;  %v3540_v19 = vpack.c.bf16 %v4345_v9, %v3537_v1  ;;  %v2884_v6 = vmax.f32 %v4465_v30, %v2880_v13  ;;  %4300 = vmatpush3.bf16.msra.mxu1 %v4336_v8  ;;  %4283 = vmatprep.subr.bf16.mxu0 %v4345_v9  ;;  %v1526_v31 = vunpack.c.l.bf16 %v4174_v7 }
  0x53   :  { %2789 = vst [vmem:[#allocation22 + $0x88] sm:$0xf] %v2787_v10  ;;  %3488 = vst [vmem:[#allocation22 + $0xbc] sm:$0xf] %v3486_v11  ;;  %v2938_v22 = vmax.f32 %v4465_v30, %v2934_v20  ;;  %v3553_v29 = vsel %vm222_vm1, %v1286_v5, %v4407_v3  ;;  %4301 = vmatprep.subr.bf16.mxu1 %v4345_v9  ;;  %v1510_v35 = vunpack.c.l.bf16 %v4173_v15  ;;  %4316 = vset.pattern.permute.xlu0 %v4347_v37 }
  0x54   :  { %2843 = vst [vmem:[#allocation22 + $0x8c] sm:$0xf] %v2841_v18  ;;  %3542 = vst [vmem:[#allocation22 + $0xc0] sm:$0xf] %v3540_v19  ;;  %v2892_v33 = vmax.f32 %v2884_v6, %v4465_v30  ;;  %v3587_v34 = vsel %vm4452_vm2, %v3553_v29, %v4409_v4  ;;  %v3607_v28 = vsel %vm222_vm1, %v1398_v24, %v4407_v3  ;;  %4101 = vperm.xlu0 %4316, %v4098_v32  }
  0x55   :  { %v4337_v16 = vld [vmem:[#allocation22 + $0x80] sm:$0xff]   ;;  %v2946_v25 = vmax.f32 %v2938_v22, %v4465_v30  ;;  %v3591_v27 = vmax.f32 %v4465_v30, %v3587_v34  ;;  %v2958_v36 = vsel %vm1560_vm3, %v1526_v31, %v4407_v3  ;;  %v3641_v40 = vsel %vm4452_vm2, %v3607_v28, %v4409_v4 }
  0x56   :  { %v4338_v38 = vld [vmem:[#allocation22 + $0xb4] sm:$0xff]   ;;  %v2895_v39 = vpack.c.bf16 %v4345_v9, %v2892_v33  ;;  %v2963_v41 = vsel %vm222_vm1, %v2958_v36, %v4407_v3  ;;  %v3656_v42 = vsel %vm1560_vm3, %v1510_v35, %v4407_v3  ;;  %4284 = vmatpush3.bf16.msra.mxu0 %v4337_v16  ;;  %v3645_v45 = vmax.f32 %v4465_v30, %v3641_v40 }
  0x57   :  { %v2949_v43 = vpack.c.bf16 %v4345_v9, %v2946_v25  ;;  %v3594_v44 = vpack.c.bf16 %v4345_v9, %v3591_v27  ;;  %v2988_v21 = vsel %vm4452_vm2, %v2963_v41, %v4409_v4  ;;  %4302 = vmatpush3.bf16.msra.mxu1 %v4338_v38  ;;  %4285 = vmatprep.subr.bf16.mxu0 %v4345_v9 }
  0x58   :  { %2897 = vst [vmem:[#allocation22 + $0x90] sm:$0xf] %v2895_v39  ;;  %v2992_v46 = vmax.f32 %v4465_v30, %v2988_v21  ;;  %v3661_v23 = vsel %vm222_vm1, %v3656_v42, %v4407_v3  ;;  %4303 = vmatprep.subr.bf16.mxu1 %v4345_v9  ;;  %v3648_v47 = vpack.c.bf16 %v4345_v9, %v3645_v45 }
  0x59   :  { %2951 = vst [vmem:[#allocation22 + $0x94] sm:$0xf] %v2949_v43  ;;  %3596 = vst [vmem:[#allocation22 + $0xc4] sm:$0xf] %v3594_v44  ;;  %v3695_v48 = vsel %vm4452_vm2, %v3661_v23, %v4409_v4 }
  0x5a   :  { %v3000_v49 = vmax.f32 %v2992_v46, %v4465_v30  ;;  %v3699_v50 = vmax.f32 %v4465_v30, %v3695_v48  ;;  %3650 = vst [vmem:[#allocation22 + $0xc8] sm:$0xf] %v3648_v47 }
  0x5b   :  { %v4339_v51 = vld [vmem:[#allocation22 + $0x88] sm:$0xff]   ;;  %v4340_v52 = vld [vmem:[#allocation22 + $0xbc] sm:$0xff]  }
  0x5c   :  { %v3003_v17 = vpack.c.bf16 %v4345_v9, %v3000_v49  ;;  %v3702_v3 = vpack.c.bf16 %v4345_v9, %v3699_v50  ;;  %4286 = vmatpush3.bf16.msra.mxu0 %v4339_v51  ;;  %4304 = vmatpush3.bf16.msra.mxu1 %v4340_v52 }
  0x5d   :  { %4287 = vmatprep.subr.bf16.mxu0 %v4345_v9  ;;  %4305 = vmatprep.subr.bf16.mxu1 %v4345_v9 }
  0x5e   :  { %3005 = vst [vmem:[#allocation22 + $0x98] sm:$0xf] %v3003_v17  ;;  %3704 = vst [vmem:[#allocation22 + $0xcc] sm:$0xf] %v3702_v3 }
  0x60   :  { %v4341_v4 = vld [vmem:[#allocation22 + $0x90] sm:$0xff]  }
  0x61   :  { %4288 = vmatpush3.bf16.msra.mxu0 %v4341_v4  ;;  %v4342_v26 = vld [vmem:[#allocation22 + $0xc4] sm:$0xff]  }
  0x62   :  { %4289 = vmatprep.subr.bf16.mxu0 %v4345_v9  ;;  %4306 = vmatpush3.bf16.msra.mxu1 %v4342_v26 }
  0x63   :  { %4307 = vmatprep.subr.bf16.mxu1 %v4345_v9 }
  0x65   :  { %v4343_v30 = vld [vmem:[#allocation22 + $0x98] ss:$0 sps:$4 sm:$0x33]   ;;  %v4344_v53 = vld [vmem:[#allocation22 + $0xcc] ss:$0 sps:$4 sm:$0x33]  }
  0x66   :  { %v3958_v54 = vsel %vm3763_vm4, %v4343_v30, 0  ;;  %v4055_v55 = vsel %vm3763_vm4, %v4344_v53, 0 }
  0x67   :  { %4290 = vmatpush3.bf16.msra.mxu0 %v3958_v54  ;;  %4308 = vmatpush3.bf16.msra.mxu1 %v4055_v55 }
  0x6a   :  { %4292 = vmatmul.mubr.msk.bf16.vlgmr.msra.gmra.mrb[4].mxu0 %vm3759_vm5, %v4903_v12  ;;  %4310 = vmatmul.mubr.msk.bf16.vlgmr.msra.gmra.mrb[4].mxu1 %vm3759_vm5, %v4903_v12 }
  0xd3   :  { %v4102_v1 = vpop.permute.xlu0 %4101 }
 0x11b   :  { %v3801_v56 = vpop.f32.mrb[0].mxu0 }
 0x11c   :  { %v3897_v57 = vpop.f32.mrb[0].mxu1  ;;  %v4257_v58 = vpop.f32.mrb[1].mxu0 }
 0x11d   :  { %v3903_v59 = vmax.f32 %v3801_v56, %v3897_v57  ;;  %v4275_v60 = vpop.f32.mrb[1].mxu1  ;;  %v3804_v9 = vpop.f32.mrb[2].mxu0 }
 0x11e   :  { %v3900_v61 = vpop.f32.mrb[2].mxu1  ;;  %v4258_v62 = vpop.f32.mrb[3].mxu0 }
 0x11f   :  { %v4276_v63 = vpop.f32.mrb[3].mxu1 }
 0x13d   :  { %v3994_v0 = vpop.f32.mrb[4].mxu0  ;;  %v4091_v5 = vpop.f32.mrb[4].mxu1 }
 0x13e   :  { %v4000_v2 = vmax.f32 %v3903_v59, %v3994_v0  ;;  %v4293_v7 = vpop.f32.mrb[5].mxu0  ;;  %v4311_v8 = vpop.f32.mrb[5].mxu1 }
 0x13f   :  { %v3997_v10 = vpop.f32.mrb[6].mxu0  ;;  %v4094_v13 = vpop.f32.mrb[6].mxu1 }
 0x140   :  { %v4097_v11 = vmax.f32 %v4000_v2, %v4091_v5  ;;  %v4294_v14 = vpop.f32.mrb[7].mxu0  ;;  %v4312_v12 = vpop.f32.mrb[7].mxu1 }
 0x142   :  { %v4104_v15 = vadd.f32 %v4102_v1, %v4097_v11 }
 0x144   :  { %v4105_v18 = vmax.f32 %v4104_v15, 0.0 }
 0x146   :  { %4106 = vst [vmem:[%s5089_s9] sm:$0xff] %v4105_v18 }

// kernel: forward.5
= control target key start
LH: loop header
LB: loop body
LE: loop exit
PB: predicated region body
PF: predicated region fallthrough
CT: control target
= control target key end

     0   :  { %16 = vsyncpa [#allocation3], 0  ;;  %vm373_vm0 = vcmask 588800   ;;  %vm377_vm1 = vcmask 1043456   ;;  %s3292_s0 = inlined_call_operand.vmem [shape: f32[2,200], index: 0, kind: input, shape index: {}]   ;;  %s3293_s1 = inlined_call_operand.vmem [shape: bf16[200,512], index: 1, kind: input, shape index: {}]   ;;  %s3294_s2 = inlined_call_operand.vmem [shape: f32[1,512], index: 2, kind: input, shape index: {}]   ;;  %s3295_s3 = inlined_call_operand.vmem [shape: bf16[512,512], index: 3, kind: input, shape index: {}]   ;;  %s3296_s4 = inlined_call_operand.vmem [shape: f32[1,512], index: 4, kind: input, shape index: {}]   ;;  %s3297_s5 = inlined_call_operand.vmem [shape: f32[1,512], index: 5, kind: input, shape index: {}]   ;;  %s3298_s6 = inlined_call_operand.vmem [shape: f32[2,512], index: 6, kind: input, shape index: {}]   ;;  %s3299_s7 = inlined_call_operand.vmem [shape: bf16[512,128], index: 7, kind: input, shape index: {}]   ;;  %s3300_s8 = inlined_call_operand.vmem [shape: f32[1,128], index: 8, kind: input, shape index: {}]   ;;  %s3301_s9 = inlined_call_operand.hbm [shape: f32[2,512], index: 9, kind: output, shape index: {0}]   ;;  %s3302_s10 = inlined_call_operand.hbm [shape: f32[2,128], index: 10, kind: output, shape index: {1}]  }
   0x1   :  { %v2167_v0 = vld [vmem:[%s3293_s1 + $0x4] ss:$16 sps:$4 sm:$0xff]   ;;  %v2169_v1 = vld [vmem:[%s3293_s1] ss:$16 sps:$4 sm:$0xff]   ;;  %v2205_v13 = vld [vmem:[%s3293_s1 + $0xc] ss:$16 sps:$4 sm:$0xff]  }
   0x2   :  { %390 = vmatprep.subr.bf16.mxu0 %v2167_v0  ;;  %v2170_v2 = vld [vmem:[%s3293_s1 + $0x24] ss:$16 sps:$4 sm:$0xff]   ;;  %v2172_v3 = vld [vmem:[%s3293_s1 + $0x20] ss:$16 sps:$4 sm:$0xff]   ;;  %v2207_v14 = vld [vmem:[%s3293_s1 + $0x8] ss:$16 sps:$4 sm:$0xff]   ;;  %431 = vmatprep.subr.bf16.mxu1 %v2205_v13 }
   0x3   :  { %391 = vmatpush1.bf16.msra.mxu0 %v2169_v1  ;;  %v2173_v4 = vld [vmem:[%s3293_s1 + $0x44] ss:$16 sps:$4 sm:$0xff]   ;;  %v2175_v5 = vld [vmem:[%s3293_s1 + $0x40] ss:$16 sps:$4 sm:$0xff]   ;;  %v2208_v15 = vld [vmem:[%s3293_s1 + $0x2c] ss:$16 sps:$4 sm:$0xff]   ;;  %432 = vmatpush1.bf16.msra.mxu1 %v2207_v14 }
   0x4   :  { %392 = vmatprep.subr.bf16.mxu0 %v2170_v2  ;;  %v2176_v6 = vld [vmem:[%s3293_s1 + $0x64] ss:$16 sps:$4 sm:$0xff]   ;;  %v2178_v7 = vld [vmem:[%s3293_s1 + $0x60] ss:$16 sps:$4 sm:$0xff]   ;;  %v2210_v19 = vld [vmem:[%s3293_s1 + $0x28] ss:$16 sps:$4 sm:$0xff]   ;;  %433 = vmatprep.subr.bf16.mxu1 %v2208_v15 }
   0x5   :  { %v2179_v8 = vld [vmem:[%s3293_s1 + $0x84] ss:$16 sps:$4 sm:$0xff]   ;;  %v2181_v9 = vld [vmem:[%s3293_s1 + $0x80] ss:$16 sps:$4 sm:$0xff]   ;;  %v2211_v20 = vld [vmem:[%s3293_s1 + $0x4c] ss:$16 sps:$4 sm:$0xff]  }
   0x6   :  { %v2182_v10 = vld [vmem:[%s3293_s1 + $0xa4] ss:$16 sps:$4 sm:$0xff]   ;;  %v2610_v11 = vld.sshfl [vmem:[%s3292_s0] sm:$0x33 pattern:$0x76325410] }
   0x7   :  { %393 = vmatpush1.bf16.msra.mxu0 %v2172_v3  ;;  %v46_v12 = vcombine.high %v2610_v11, %v2610_v11  ;;  %v2184_v16 = vld [vmem:[%s3293_s1 + $0xa0] ss:$16 sps:$4 sm:$0xff]   ;;  %v2185_v18 = vld [vmem:[%s3293_s1 + $0xc4] ss:$16 sps:$4 sm:$0xff]   ;;  %434 = vmatpush1.bf16.msra.mxu1 %v2210_v19  ;;  %v2213_v23 = vld [vmem:[%s3293_s1 + $0x48] ss:$16 sps:$4 sm:$0xff]   ;;  %v49_v51 = vpack.c.bf16 %v2610_v11, %v2610_v11 }
   0x8   :  { %394 = vmatprep.subr.bf16.mxu0 %v2173_v4  ;;  %v2187_v21 = vld [vmem:[%s3293_s1 + $0xc0] ss:$16 sps:$4 sm:$0xff]   ;;  %v2188_v22 = vld [vmem:[%s3293_s1 + $0xe4] ss:$16 sps:$4 sm:$0xff]   ;;  %435 = vmatprep.subr.bf16.mxu1 %v2211_v20  ;;  %v2214_v24 = vld [vmem:[%s3293_s1 + $0x6c] ss:$16 sps:$4 sm:$0xff]  }
   0x9   :  { %v50_v17 = vpack.c.bf16 %v46_v12, %v46_v12  ;;  %v2190_v25 = vld [vmem:[%s3293_s1 + $0xe0] ss:$16 sps:$4 sm:$0xff]   ;;  %v2191_v26 = vld [vmem:[%s3293_s1 + $0x104] ss:$16 sps:$4 sm:$0xff]   ;;  %v2216_v27 = vld [vmem:[%s3293_s1 + $0x68] ss:$16 sps:$4 sm:$0xff]  }
   0xa   :  { %v2217_v28 = vld [vmem:[%s3293_s1 + $0x8c] ss:$16 sps:$4 sm:$0xff]   ;;  %v2193_v29 = vld [vmem:[%s3293_s1 + $0x100] ss:$16 sps:$4 sm:$0xff]   ;;  %v2194_v30 = vld [vmem:[%s3293_s1 + $0x124] ss:$16 sps:$4 sm:$0xff]  }
   0xb   :  { %395 = vmatpush1.bf16.msra.mxu0 %v2175_v5  ;;  %1944 = vmatprep.mubr.msk.bf16.mxu0 %vm373_vm0, %v50_v17  ;;  %v2219_v31 = vld [vmem:[%s3293_s1 + $0x88] ss:$16 sps:$4 sm:$0xff]   ;;  %v2220_v32 = vld [vmem:[%s3293_s1 + $0xac] ss:$16 sps:$4 sm:$0xff]   ;;  %v2196_v33 = vld [vmem:[%s3293_s1 + $0x120] ss:$16 sps:$4 sm:$0xff]  }
   0xc   :  { %396 = vmatprep.subr.bf16.mxu0 %v2176_v6  ;;  %1946 = vmatprep.mubr.msk.bf16.mxu1 %vm373_vm0, %v50_v17  ;;  %v2197_v34 = vld [vmem:[%s3293_s1 + $0x144] ss:$16 sps:$4 sm:$0xff]   ;;  %v2222_v35 = vld [vmem:[%s3293_s1 + $0xa8] ss:$16 sps:$4 sm:$0xff]   ;;  %v2223_v36 = vld [vmem:[%s3293_s1 + $0xcc] ss:$16 sps:$4 sm:$0xff]  }
   0xd   :  { %436 = vmatpush1.bf16.msra.mxu1 %v2213_v23  ;;  %v2199_v37 = vld [vmem:[%s3293_s1 + $0x140] ss:$16 sps:$4 sm:$0xff]   ;;  %v2200_v38 = vld [vmem:[%s3293_s1 + $0x164] ss:$16 sps:$4 sm:$0xff]   ;;  %v2225_v40 = vld [vmem:[%s3293_s1 + $0xc8] ss:$16 sps:$4 sm:$0xff]  }
   0xe   :  { %437 = vmatprep.subr.bf16.mxu1 %v2214_v24  ;;  %v99_v39 = vld [vmem:[%s3293_s1 + $0x180] sm:$0xff]  ;;  %v2226_v41 = vld [vmem:[%s3293_s1 + $0xec] ss:$16 sps:$4 sm:$0xff]   ;;  %v2228_v45 = vld [vmem:[%s3293_s1 + $0xe8] ss:$16 sps:$4 sm:$0xff]  }
   0xf   :  { %397 = vmatpush1.bf16.msra.mxu0 %v2178_v7  ;;  %v2202_v42 = vld [vmem:[%s3293_s1 + $0x160] ss:$16 sps:$4 sm:$0xff]   ;;  %v1940_v43 = vcombine.high %v99_v39, %v99_v39  ;;  %v1939_v44 = vcombine.low %v99_v39, %v99_v39  ;;  %v2229_v46 = vld [vmem:[%s3293_s1 + $0x10c] ss:$16 sps:$4 sm:$0xff]   ;;  %v2231_v48 = vld [vmem:[%s3293_s1 + $0x108] ss:$16 sps:$4 sm:$0xff]  }
  0x10   :  { %398 = vmatprep.subr.bf16.mxu0 %v2179_v8  ;;  %v2245_v49 = vld [vmem:[%s3295_s3 + $0x4] ss:$16 sps:$4 sm:$0xff]   ;;  %v2232_v50 = vld [vmem:[%s3293_s1 + $0x12c] ss:$16 sps:$4 sm:$0xff]   ;;  %v2243_v52 = vld [vmem:[%s3295_s3] ss:$16 sps:$4 sm:$0xff]  }
  0x11   :  { %438 = vmatpush1.bf16.msra.mxu1 %v2216_v27  ;;  %v379_v47 = vsel %vm377_vm1, %v1939_v44, 0  ;;  %v2234_v53 = vld [vmem:[%s3293_s1 + $0x128] ss:$16 sps:$4 sm:$0xff]   ;;  %v2251_v54 = vld [vmem:[%s3295_s3 + $0x24] ss:$16 sps:$4 sm:$0xff]  }
  0x12   :  { %439 = vmatprep.subr.bf16.mxu1 %v2217_v28  ;;  %v2235_v55 = vld [vmem:[%s3293_s1 + $0x14c] ss:$16 sps:$4 sm:$0xff]   ;;  %v2249_v56 = vld [vmem:[%s3295_s3 + $0x20] ss:$16 sps:$4 sm:$0xff]   ;;  %v2237_v57 = vld [vmem:[%s3293_s1 + $0x148] ss:$16 sps:$4 sm:$0xff]  }
  0x13   :  { %399 = vmatpush1.bf16.msra.mxu0 %v2181_v9  ;;  %v2257_v58 = vld [vmem:[%s3295_s3 + $0x44] ss:$16 sps:$4 sm:$0xff]   ;;  %v2238_v59 = vld [vmem:[%s3293_s1 + $0x16c] ss:$16 sps:$4 sm:$0xff]   ;;  %v2255_v61 = vld [vmem:[%s3295_s3 + $0x40] ss:$16 sps:$4 sm:$0xff]  }
  0x14   :  { %400 = vmatprep.subr.bf16.mxu0 %v2182_v10  ;;  %v100_v60 = vld [vmem:[%s3293_s1 + $0x188] sm:$0xff]  ;;  %v2263_v63 = vld [vmem:[%s3295_s3 + $0x64] ss:$16 sps:$4 sm:$0xff]   ;;  %v2261_v2 = vld [vmem:[%s3295_s3 + $0x60] ss:$16 sps:$4 sm:$0xff]  }
  0x15   :  { %440 = vmatpush1.bf16.msra.mxu1 %v2219_v31  ;;  %v2240_v62 = vld [vmem:[%s3293_s1 + $0x168] ss:$16 sps:$4 sm:$0xff]   ;;  %v1942_v0 = vcombine.high %v100_v60, %v100_v60  ;;  %v1941_v1 = vcombine.low %v100_v60, %v100_v60  ;;  %v2269_v3 = vld [vmem:[%s3295_s3 + $0x84] ss:$16 sps:$4 sm:$0xff]   ;;  %v2248_v5 = vld [vmem:[%s3295_s3 + $0xc] ss:$16 sps:$4 sm:$0xff]  }
  0x16   :  { %441 = vmatprep.subr.bf16.mxu1 %v2220_v32  ;;  %v2267_v6 = vld [vmem:[%s3295_s3 + $0x80] ss:$16 sps:$4 sm:$0xff]   ;;  %v2246_v7 = vld [vmem:[%s3295_s3 + $0x8] ss:$16 sps:$4 sm:$0xff]   ;;  %v2275_v8 = vld [vmem:[%s3295_s3 + $0xa4] ss:$16 sps:$4 sm:$0xff]  }
  0x17   :  { %401 = vmatpush1.bf16.msra.mxu0 %v2184_v16  ;;  %v385_v4 = vsel %vm377_vm1, %v1941_v1, 0  ;;  %v2254_v9 = vld [vmem:[%s3295_s3 + $0x2c] ss:$16 sps:$4 sm:$0xff]   ;;  %v2252_v10 = vld [vmem:[%s3295_s3 + $0x28] ss:$16 sps:$4 sm:$0xff]  }
  0x18   :  { %402 = vmatprep.subr.bf16.mxu0 %v2185_v18  ;;  %v2273_v11 = vld [vmem:[%s3295_s3 + $0xa0] ss:$16 sps:$4 sm:$0xff]   ;;  %v2281_v12 = vld [vmem:[%s3295_s3 + $0xc4] ss:$16 sps:$4 sm:$0xff]   ;;  %v2260_v13 = vld [vmem:[%s3295_s3 + $0x4c] ss:$16 sps:$4 sm:$0xff]  }
  0x19   :  { %442 = vmatpush1.bf16.msra.mxu1 %v2222_v35  ;;  %v2279_v14 = vld [vmem:[%s3295_s3 + $0xc0] ss:$16 sps:$4 sm:$0xff]   ;;  %v2258_v15 = vld [vmem:[%s3295_s3 + $0x48] ss:$16 sps:$4 sm:$0xff]   ;;  %v2287_v16 = vld [vmem:[%s3295_s3 + $0xe4] ss:$16 sps:$4 sm:$0xff]  }
  0x1a   :  { %443 = vmatprep.subr.bf16.mxu1 %v2223_v36  ;;  %v2266_v17 = vld [vmem:[%s3295_s3 + $0x6c] ss:$16 sps:$4 sm:$0xff]   ;;  %v2285_v18 = vld [vmem:[%s3295_s3 + $0xe0] ss:$16 sps:$4 sm:$0xff]   ;;  %v2264_v19 = vld [vmem:[%s3295_s3 + $0x68] ss:$16 sps:$4 sm:$0xff]  }
  0x1b   :  { %403 = vmatpush1.bf16.msra.mxu0 %v2187_v21  ;;  %v2293_v20 = vld [vmem:[%s3295_s3 + $0x104] ss:$16 sps:$4 sm:$0xff]   ;;  %v2272_v21 = vld [vmem:[%s3295_s3 + $0x8c] ss:$16 sps:$4 sm:$0xff]   ;;  %v2270_v23 = vld [vmem:[%s3295_s3 + $0x88] ss:$16 sps:$4 sm:$0xff]  }
  0x1c   :  { %404 = vmatprep.subr.bf16.mxu0 %v2188_v22  ;;  %v2291_v22 = vld [vmem:[%s3295_s3 + $0x100] ss:$16 sps:$4 sm:$0xff]   ;;  %v2299_v24 = vld [vmem:[%s3295_s3 + $0x124] ss:$16 sps:$4 sm:$0xff]   ;;  %v2276_v27 = vld [vmem:[%s3295_s3 + $0xa8] ss:$16 sps:$4 sm:$0xff]  }
  0x1d   :  { %444 = vmatpush1.bf16.msra.mxu1 %v2225_v40  ;;  %v2305_v28 = vld [vmem:[%s3295_s3 + $0x144] ss:$16 sps:$4 sm:$0xff]   ;;  %v2282_v31 = vld [vmem:[%s3295_s3 + $0xc8] ss:$16 sps:$4 sm:$0xff]   ;;  %v2308_v44 = vld [vmem:[%s3295_s3 + $0x14c] ss:$16 sps:$4 sm:$0xff]  }
  0x1e   :  { %445 = vmatprep.subr.bf16.mxu1 %v2226_v41  ;;  %v2311_v32 = vld [vmem:[%s3295_s3 + $0x164] ss:$16 sps:$4 sm:$0xff]   ;;  %v2288_v35 = vld [vmem:[%s3295_s3 + $0xe8] ss:$16 sps:$4 sm:$0xff]   ;;  %v2302_v41 = vld [vmem:[%s3295_s3 + $0x12c] ss:$16 sps:$4 sm:$0xff]  }
  0x1f   :  { %405 = vmatpush1.bf16.msra.mxu0 %v2190_v25  ;;  %v2278_v25 = vld [vmem:[%s3295_s3 + $0xac] ss:$16 sps:$4 sm:$0xff]   ;;  %v2317_v36 = vld [vmem:[%s3295_s3 + $0x184] ss:$16 sps:$4 sm:$0xff]   ;;  %v2294_v39 = vld [vmem:[%s3295_s3 + $0x108] ss:$16 sps:$4 sm:$0xff]  }
  0x20   :  { %406 = vmatprep.subr.bf16.mxu0 %v2191_v26  ;;  %v2297_v26 = vld [vmem:[%s3295_s3 + $0x120] ss:$16 sps:$4 sm:$0xff]   ;;  %v2323_v40 = vld [vmem:[%s3295_s3 + $0x1a4] ss:$16 sps:$4 sm:$0xff]  }
  0x21   :  { %446 = vmatpush1.bf16.msra.mxu1 %v2228_v45  ;;  %v2306_v45 = vld [vmem:[%s3295_s3 + $0x148] ss:$16 sps:$4 sm:$0xff]  }
  0x22   :  { %447 = vmatprep.subr.bf16.mxu1 %v2229_v46  ;;  %v2314_v46 = vld [vmem:[%s3295_s3 + $0x16c] ss:$16 sps:$4 sm:$0xff]  }
  0x23   :  { %407 = vmatpush1.bf16.msra.mxu0 %v2193_v29  ;;  %v2284_v29 = vld [vmem:[%s3295_s3 + $0xcc] ss:$16 sps:$4 sm:$0xff]  }
  0x24   :  { %408 = vmatprep.subr.bf16.mxu0 %v2194_v30  ;;  %v2303_v30 = vld [vmem:[%s3295_s3 + $0x140] ss:$16 sps:$4 sm:$0xff]  }
  0x25   :  { %448 = vmatpush1.bf16.msra.mxu1 %v2231_v48  ;;  %v2320_v48 = vld [vmem:[%s3295_s3 + $0x18c] ss:$16 sps:$4 sm:$0xff]  }
  0x26   :  { %449 = vmatprep.subr.bf16.mxu1 %v2232_v50 }
  0x27   :  { %409 = vmatpush1.bf16.msra.mxu0 %v2196_v33  ;;  %v2290_v33 = vld [vmem:[%s3295_s3 + $0xec] ss:$16 sps:$4 sm:$0xff]  }
  0x28   :  { %410 = vmatprep.subr.bf16.mxu0 %v2197_v34  ;;  %v2309_v34 = vld [vmem:[%s3295_s3 + $0x160] ss:$16 sps:$4 sm:$0xff]  }
  0x29   :  { %450 = vmatpush1.bf16.msra.mxu1 %v2234_v53 }
  0x2a   :  { %451 = vmatprep.subr.bf16.mxu1 %v2235_v55 }
  0x2b   :  { %411 = vmatpush1.bf16.msra.mxu0 %v2199_v37  ;;  %v2296_v37 = vld [vmem:[%s3295_s3 + $0x10c] ss:$16 sps:$4 sm:$0xff]  }
  0x2c   :  { %412 = vmatprep.subr.bf16.mxu0 %v2200_v38  ;;  %v2315_v38 = vld [vmem:[%s3295_s3 + $0x180] ss:$16 sps:$4 sm:$0xff]  }
  0x2d   :  { %452 = vmatpush1.bf16.msra.mxu1 %v2237_v57 }
  0x2e   :  { %453 = vmatprep.subr.bf16.mxu1 %v2238_v59 }
  0x2f   :  { %413 = vmatpush1.bf16.msra.mxu0 %v2202_v42  ;;  %v2321_v42 = vld [vmem:[%s3295_s3 + $0x1a0] ss:$16 sps:$4 sm:$0xff]  }
  0x30   :  { %1943 = vmatprep.subr.msk.bf16.mxu0 %vm377_vm1, %v1940_v43  ;;  %v2300_v43 = vld [vmem:[%s3295_s3 + $0x128] ss:$16 sps:$4 sm:$0xff]  }
  0x31   :  { %454 = vmatpush1.bf16.msra.mxu1 %v2240_v62 }
  0x32   :  { %1945 = vmatprep.subr.msk.bf16.mxu1 %vm377_vm1, %v1942_v0 }
  0x33   :  { %415 = vmatpush1.bf16.msra.mxu0 %v379_v47  ;;  %v2312_v47 = vld [vmem:[%s3295_s3 + $0x168] ss:$16 sps:$4 sm:$0xff]  }
  0x34   :  { %1270 = vmatprep.subr.bf16.mxu0 %v2245_v49  ;;  %v2318_v49 = vld [vmem:[%s3295_s3 + $0x188] ss:$16 sps:$4 sm:$0xff]  }
  0x35   :  { %456 = vmatpush1.bf16.msra.mxu1 %v385_v4 }
  0x36   :  { %423 = vmatmul.mubr.bf16.vlgmr.msra.gmra.mrb[0].mxu0 %v49_v51  ;;  %1352 = vmatprep.subr.bf16.mxu1 %v2248_v5 }
  0x37   :  { %1271 = vmatpush1.bf16.msra.mxu0 %v2243_v52 }
  0x38   :  { %1272 = vmatprep.subr.bf16.mxu0 %v2251_v54  ;;  %464 = vmatmul.mubr.bf16.vlgmr.msra.gmra.mrb[0].mxu1 %v49_v51 }
  0x39   :  { %1353 = vmatpush1.bf16.msra.mxu1 %v2246_v7 }
  0x3a   :  { %1354 = vmatprep.subr.bf16.mxu1 %v2254_v9 }
  0x3b   :  { %1273 = vmatpush1.bf16.msra.mxu0 %v2249_v56 }
  0x3c   :  { %1274 = vmatprep.subr.bf16.mxu0 %v2257_v58 }
  0x3d   :  { %1355 = vmatpush1.bf16.msra.mxu1 %v2252_v10 }
  0x3e   :  { %1356 = vmatprep.subr.bf16.mxu1 %v2260_v13 }
  0x3f   :  { %1275 = vmatpush1.bf16.msra.mxu0 %v2255_v61 }
  0x40   :  { %1276 = vmatprep.subr.bf16.mxu0 %v2263_v63 }
  0x41   :  { %1357 = vmatpush1.bf16.msra.mxu1 %v2258_v15 }
  0x42   :  { %1358 = vmatprep.subr.bf16.mxu1 %v2266_v17 }
  0x43   :  { %1277 = vmatpush1.bf16.msra.mxu0 %v2261_v2 }
  0x44   :  { %1278 = vmatprep.subr.bf16.mxu0 %v2269_v3 }
  0x45   :  { %1359 = vmatpush1.bf16.msra.mxu1 %v2264_v19 }
  0x46   :  { %1360 = vmatprep.subr.bf16.mxu1 %v2272_v21 }
  0x47   :  { %1279 = vmatpush1.bf16.msra.mxu0 %v2267_v6 }
  0x48   :  { %1280 = vmatprep.subr.bf16.mxu0 %v2275_v8 }
  0x49   :  { %1361 = vmatpush1.bf16.msra.mxu1 %v2270_v23 }
  0x4a   :  { %1362 = vmatprep.subr.bf16.mxu1 %v2278_v25 }
  0x4b   :  { %1281 = vmatpush1.bf16.msra.mxu0 %v2273_v11 }
  0x4c   :  { %1282 = vmatprep.subr.bf16.mxu0 %v2281_v12 }
  0x4d   :  { %1363 = vmatpush1.bf16.msra.mxu1 %v2276_v27 }
  0x4e   :  { %1364 = vmatprep.subr.bf16.mxu1 %v2284_v29 }
  0x4f   :  { %1283 = vmatpush1.bf16.msra.mxu0 %v2279_v14 }
  0x50   :  { %1284 = vmatprep.subr.bf16.mxu0 %v2287_v16 }
  0x51   :  { %1365 = vmatpush1.bf16.msra.mxu1 %v2282_v31 }
  0x52   :  { %1366 = vmatprep.subr.bf16.mxu1 %v2290_v33 }
  0x53   :  { %1285 = vmatpush1.bf16.msra.mxu0 %v2285_v18 }
  0x54   :  { %1286 = vmatprep.subr.bf16.mxu0 %v2293_v20 }
  0x55   :  { %1367 = vmatpush1.bf16.msra.mxu1 %v2288_v35 }
  0x56   :  { %1368 = vmatprep.subr.bf16.mxu1 %v2296_v37 }
  0x57   :  { %1287 = vmatpush1.bf16.msra.mxu0 %v2291_v22 }
  0x58   :  { %1288 = vmatprep.subr.bf16.mxu0 %v2299_v24 }
  0x59   :  { %1369 = vmatpush1.bf16.msra.mxu1 %v2294_v39 }
  0x5a   :  { %1370 = vmatprep.subr.bf16.mxu1 %v2302_v41 }
  0x5b   :  { %1289 = vmatpush1.bf16.msra.mxu0 %v2297_v26 }
  0x5c   :  { %1290 = vmatprep.subr.bf16.mxu0 %v2305_v28 }
  0x5d   :  { %1371 = vmatpush1.bf16.msra.mxu1 %v2300_v43 }
  0x5e   :  { %1372 = vmatprep.subr.bf16.mxu1 %v2308_v44 }
  0x5f   :  { %1291 = vmatpush1.bf16.msra.mxu0 %v2303_v30 }
  0x60   :  { %1292 = vmatprep.subr.bf16.mxu0 %v2311_v32 }
  0x61   :  { %1373 = vmatpush1.bf16.msra.mxu1 %v2306_v45 }
  0x62   :  { %1374 = vmatprep.subr.bf16.mxu1 %v2314_v46 }
  0x63   :  { %1293 = vmatpush1.bf16.msra.mxu0 %v2309_v34 }
  0x64   :  { %1294 = vmatprep.subr.bf16.mxu0 %v2317_v36 }
  0x65   :  { %1375 = vmatpush1.bf16.msra.mxu1 %v2312_v47 }
  0x67   :  { %1295 = vmatpush1.bf16.msra.mxu0 %v2315_v38 }
  0x68   :  { %1296 = vmatprep.subr.bf16.mxu0 %v2323_v40 }
  0x6b   :  { %1297 = vmatpush1.bf16.msra.mxu0 %v2321_v42 }
  0x6c   :  { %17 = vsyncpa [#allocation5], 0  ;;  %1376 = vmatprep.subr.bf16.mxu1 %v2320_v48  ;;  %v2326_v50 = vld [vmem:[%s3295_s3 + $0x1ac] ss:$16 sps:$4 sm:$0xff]   ;;  %v2324_v51 = vld [vmem:[%s3295_s3 + $0x1a8] ss:$16 sps:$4 sm:$0xff]   ;;  %v103_v62 = vlaneseq }
  0x6d   :  { %1377 = vmatpush1.bf16.msra.mxu1 %v2318_v49  ;;  %v2329_v52 = vld [vmem:[%s3295_s3 + $0x1c4] ss:$16 sps:$4 sm:$0xff]   ;;  %v2332_v53 = vld [vmem:[%s3295_s3 + $0x1cc] ss:$16 sps:$4 sm:$0xff]   ;;  %v2327_v54 = vld [vmem:[%s3295_s3 + $0x1c0] ss:$16 sps:$4 sm:$0xff]  }
  0x6e   :  { %1378 = vmatprep.subr.bf16.mxu1 %v2326_v50  ;;  %v2330_v55 = vld [vmem:[%s3295_s3 + $0x1c8] ss:$16 sps:$4 sm:$0xff]   ;;  %1298 = vmatprep.subr.bf16.mxu0 %v2329_v52  ;;  %v2335_v56 = vld [vmem:[%s3295_s3 + $0x1e4] ss:$16 sps:$4 sm:$0xff]   ;;  %v2338_v57 = vld [vmem:[%s3295_s3 + $0x1ec] ss:$16 sps:$4 sm:$0xff]  }
  0x6f   :  { %1299 = vmatpush1.bf16.msra.mxu0 %v2327_v54  ;;  %v2333_v58 = vld [vmem:[%s3295_s3 + $0x1e0] ss:$16 sps:$4 sm:$0xff]   ;;  %v2336_v59 = vld [vmem:[%s3295_s3 + $0x1e8] ss:$16 sps:$4 sm:$0xff]   ;;  %v2341_v60 = vld [vmem:[%s3295_s3 + $0x204] ss:$16 sps:$4 sm:$0xff]  }
  0x70   :  { %1300 = vmatprep.subr.bf16.mxu0 %v2335_v56  ;;  %v2344_v61 = vld [vmem:[%s3295_s3 + $0x20c] ss:$16 sps:$4 sm:$0xff]   ;;  %v2935_v63 = vshrl.u32 %v103_v62, 7  ;;  %v2943_v1 = vld [vmem:[%s3294_s2] sm:$0xf] }
  0x71   :  { %1379 = vmatpush1.bf16.msra.mxu1 %v2324_v51  ;;  %v2339_v14 = vld [vmem:[%s3295_s3 + $0x200] ss:$16 sps:$4 sm:$0xff]   ;;  %v2342_v15 = vld [vmem:[%s3295_s3 + $0x208] ss:$16 sps:$4 sm:$0xff]   ;;  %v2347_v17 = vld [vmem:[%s3295_s3 + $0x224] ss:$16 sps:$4 sm:$0xff]  }
  0x72   :  { %1380 = vmatprep.subr.bf16.mxu1 %v2332_v53  ;;  %v2938_v0 = vsub.s32 0, %v2935_v63  ;;  %v2946_v2 = vsub.s32 1, %v2935_v63  ;;  %v2350_v18 = vld [vmem:[%s3295_s3 + $0x22c] ss:$16 sps:$4 sm:$0xff]   ;;  %v2345_v19 = vld [vmem:[%s3295_s3 + $0x220] ss:$16 sps:$4 sm:$0xff]  }
  0x73   :  { %1301 = vmatpush1.bf16.msra.mxu0 %v2333_v58  ;;  %v2348_v20 = vld [vmem:[%s3295_s3 + $0x228] ss:$16 sps:$4 sm:$0xff]   ;;  %v2353_v21 = vld [vmem:[%s3295_s3 + $0x244] ss:$16 sps:$4 sm:$0xff]   ;;  %v2356_v22 = vld [vmem:[%s3295_s3 + $0x24c] ss:$16 sps:$4 sm:$0xff]  }
  0x74   :  { %1311 = vmatprep.subr.bf16.mxu0 %v2341_v60  ;;  %v106_v3 = vrot.slane %v2943_v1, %v2938_v0  ;;  %v110_v4 = vrot.slane %v2943_v1, %v2946_v2  ;;  %v2977_v23 = vsub.s32 3, %v2935_v63  ;;  %v2351_v24 = vld [vmem:[%s3295_s3 + $0x240] ss:$16 sps:$4 sm:$0xff]   ;;  %v2354_v25 = vld [vmem:[%s3295_s3 + $0x248] ss:$16 sps:$4 sm:$0xff]  }
  0x75   :  { %1381 = vmatpush1.bf16.msra.mxu1 %v2330_v55  ;;  %v2359_v26 = vld [vmem:[%s3295_s3 + $0x264] ss:$16 sps:$4 sm:$0xff]   ;;  %v2362_v27 = vld [vmem:[%s3295_s3 + $0x26c] ss:$16 sps:$4 sm:$0xff]   ;;  %v2357_v30 = vld [vmem:[%s3295_s3 + $0x260] ss:$16 sps:$4 sm:$0xff]  }
  0x76   :  { %1382 = vmatprep.subr.bf16.mxu1 %v2338_v57  ;;  %v118_v28 = vrot.slane %v2943_v1, %v2977_v23  ;;  %v2360_v31 = vld [vmem:[%s3295_s3 + $0x268] ss:$16 sps:$4 sm:$0xff]   ;;  %v2365_v33 = vld [vmem:[%s3295_s3 + $0x284] ss:$16 sps:$4 sm:$0xff]   ;;  %v2368_v34 = vld [vmem:[%s3295_s3 + $0x28c] ss:$16 sps:$4 sm:$0xff]  }
  0x77   :  { %v2363_v39 = vld [vmem:[%s3295_s3 + $0x280] ss:$16 sps:$4 sm:$0xff]   ;;  %v2366_v40 = vld [vmem:[%s3295_s3 + $0x288] ss:$16 sps:$4 sm:$0xff]   ;;  %v2371_v41 = vld [vmem:[%s3295_s3 + $0x2a4] ss:$16 sps:$4 sm:$0xff]  }
  0x78   :  { %v2374_v42 = vld [vmem:[%s3295_s3 + $0x2ac] ss:$16 sps:$4 sm:$0xff]   ;;  %v2369_v44 = vld [vmem:[%s3295_s3 + $0x2a0] ss:$16 sps:$4 sm:$0xff]   ;;  %v2372_v45 = vld [vmem:[%s3295_s3 + $0x2a8] ss:$16 sps:$4 sm:$0xff]  }
  0x79   :  { %1383 = vmatpush1.bf16.msra.mxu1 %v2336_v59  ;;  %v2377_v46 = vld [vmem:[%s3295_s3 + $0x2c4] ss:$16 sps:$4 sm:$0xff]   ;;  %v2380_v47 = vld [vmem:[%s3295_s3 + $0x2cc] ss:$16 sps:$4 sm:$0xff]   ;;  %v2375_v48 = vld [vmem:[%s3295_s3 + $0x2c0] ss:$16 sps:$4 sm:$0xff]  }
  0x7a   :  { %1393 = vmatprep.subr.bf16.mxu1 %v2344_v61  ;;  %v2378_v49 = vld [vmem:[%s3295_s3 + $0x2c8] ss:$16 sps:$4 sm:$0xff]   ;;  %v2383_v50 = vld [vmem:[%s3295_s3 + $0x2e4] ss:$16 sps:$4 sm:$0xff]   ;;  %v2386_v51 = vld [vmem:[%s3295_s3 + $0x2ec] ss:$16 sps:$4 sm:$0xff]  }
  0x7b   :  { %v2381_v52 = vld [vmem:[%s3295_s3 + $0x2e0] ss:$16 sps:$4 sm:$0xff]   ;;  %v2384_v53 = vld [vmem:[%s3295_s3 + $0x2e8] ss:$16 sps:$4 sm:$0xff]   ;;  %v2389_v54 = vld [vmem:[%s3295_s3 + $0x304] ss:$16 sps:$4 sm:$0xff]  }
  0x7c   :  { %v2392_v55 = vld [vmem:[%s3295_s3 + $0x30c] ss:$16 sps:$4 sm:$0xff]   ;;  %v2387_v56 = vld [vmem:[%s3295_s3 + $0x300] ss:$16 sps:$4 sm:$0xff]   ;;  %v2390_v57 = vld [vmem:[%s3295_s3 + $0x308] ss:$16 sps:$4 sm:$0xff]  }
  0x7d   :  { %v2395_v58 = vld [vmem:[%s3295_s3 + $0x324] ss:$16 sps:$4 sm:$0xff]   ;;  %v2398_v59 = vld [vmem:[%s3295_s3 + $0x32c] ss:$16 sps:$4 sm:$0xff]   ;;  %v2393_v60 = vld [vmem:[%s3295_s3 + $0x320] ss:$16 sps:$4 sm:$0xff]  }
  0x7e   :  { %v2396_v61 = vld [vmem:[%s3295_s3 + $0x328] ss:$16 sps:$4 sm:$0xff]   ;;  %v2401_v62 = vld [vmem:[%s3295_s3 + $0x344] ss:$16 sps:$4 sm:$0xff]  }
 0x109   :  { %v424_v5 = vpop.f32.mrb[0].mxu0 }
 0x10a   :  { %v425_v6 = vadd.f32 %v424_v5, %v106_v3  ;;  %v426_v7 = vpop.f32.mrb[1].mxu0  ;;  %v2404_v3 = vld [vmem:[%s3295_s3 + $0x34c] ss:$16 sps:$4 sm:$0xff]   ;;  %v2402_v5 = vld [vmem:[%s3295_s3 + $0x348] ss:$16 sps:$4 sm:$0xff]  }
 0x10b   :  { %v427_v8 = vadd.f32 %v426_v7, %v110_v4  ;;  %v428_v9 = vpop.f32.mrb[2].mxu0  ;;  %v2993_v29 = vpop.f32.mrb[0].mxu1  ;;  %v2399_v4 = vld [vmem:[%s3295_s3 + $0x340] ss:$16 sps:$4 sm:$0xff]   ;;  %v2410_v7 = vld [vmem:[%s3295_s3 + $0x36c] ss:$16 sps:$4 sm:$0xff]  }
 0x10c   :  { %v472_v10 = vmax.f32 %v425_v6, 0.0  ;;  %v429_v11 = vpop.f32.mrb[3].mxu0  ;;  %v467_v32 = vpop.f32.mrb[1].mxu1  ;;  %v2407_v6 = vld [vmem:[%s3295_s3 + $0x364] ss:$16 sps:$4 sm:$0xff]  }
 0x10d   :  { %v473_v12 = vmax.f32 %v427_v8, 0.0  ;;  %v468_v35 = vadd.f32 %v467_v32, %v118_v28  ;;  %v469_v36 = vpop.f32.mrb[2].mxu1  ;;  %v2405_v8 = vld [vmem:[%s3295_s3 + $0x360] ss:$16 sps:$4 sm:$0xff]   ;;  %v2408_v9 = vld [vmem:[%s3295_s3 + $0x368] ss:$16 sps:$4 sm:$0xff]  }
 0x10e   :  { %v476_v16 = vpack.c.bf16 %v472_v10, %v472_v10  ;;  %v470_v37 = vpop.f32.mrb[3].mxu1  ;;  %v2413_v10 = vld [vmem:[%s3295_s3 + $0x384] ss:$16 sps:$4 sm:$0xff]   ;;  %v2416_v11 = vld [vmem:[%s3295_s3 + $0x38c] ss:$16 sps:$4 sm:$0xff]  }
 0x10f   :  { %v477_v13 = vpack.c.bf16 %v473_v12, %v473_v12  ;;  %v475_v38 = vmax.f32 %v468_v35, 0.0  ;;  %v2411_v12 = vld [vmem:[%s3295_s3 + $0x380] ss:$16 sps:$4 sm:$0xff]   ;;  %v2432_v28 = vld [vmem:[%s3295_s3 + $0x3e8] ss:$16 sps:$4 sm:$0xff]  }
 0x110   :  { %v2437_v32 = vld [vmem:[%s3299_s7] sm:$0xff]   ;;  %v2439_v35 = vld [vmem:[%s3299_s7 + $0x48] sm:$0xff]  }
 0x111   :  { %1302 = vmatprep.mubr.bf16.mxu0 %v477_v13  ;;  %1384 = vmatprep.mubr.bf16.mxu1 %v477_v13  ;;  %v479_v43 = vpack.c.bf16 %v475_v38, %v475_v38  ;;  %v2414_v13 = vld [vmem:[%s3295_s3 + $0x388] ss:$16 sps:$4 sm:$0xff]  }
 0x112   :  { %1303 = vmatmul.mubr.bf16.vlgmr.msra.gmra.mrb[4].mxu0 %v476_v16  ;;  %1385 = vmatmul.mubr.bf16.vlgmr.msra.gmra.mrb[4].mxu1 %v476_v16  ;;  %v2422_v16 = vld [vmem:[%s3295_s3 + $0x3ac] ss:$16 sps:$4 sm:$0xff]  }
 0x113   :  { %1312 = vmatpush1.bf16.msra.mxu0 %v2339_v14  ;;  %1394 = vmatpush1.bf16.msra.mxu1 %v2342_v15  ;;  %v3110_v14 = vsub.s32 2, %v2935_v63  ;;  %v2419_v15 = vld [vmem:[%s3295_s3 + $0x3a4] ss:$16 sps:$4 sm:$0xff]   ;;  %v2440_v36 = vld [vmem:[%s3299_s7 + $0xc8] sm:$0xff]  }
 0x114   :  { %1313 = vmatprep.subr.bf16.mxu0 %v2347_v17  ;;  %1395 = vmatprep.subr.bf16.mxu1 %v2350_v18  ;;  %v2417_v17 = vld [vmem:[%s3295_s3 + $0x3a0] ss:$16 sps:$4 sm:$0xff]   ;;  %v2420_v18 = vld [vmem:[%s3295_s3 + $0x3a8] ss:$16 sps:$4 sm:$0xff]  }
 0x115   :  { %1343 = vmatprep.mubr.bf16.mxu0 %v479_v43  ;;  %1425 = vmatprep.mubr.bf16.mxu1 %v479_v43  ;;  %v2441_v37 = vld [vmem:[%s3299_s7 + $0x8] sm:$0xff]   ;;  %v2447_v43 = vld [vmem:[%s3299_s7 + $0x58] sm:$0xff]  }
 0x116   :  { %v2442_v38 = vld [vmem:[%s3299_s7 + $0x88] sm:$0xff]  }
 0x117   :  { %1314 = vmatpush1.bf16.msra.mxu0 %v2345_v19  ;;  %1396 = vmatpush1.bf16.msra.mxu1 %v2348_v20  ;;  %v114_v19 = vrot.slane %v2943_v1, %v3110_v14  ;;  %v2425_v20 = vld [vmem:[%s3295_s3 + $0x3c4] ss:$16 sps:$4 sm:$0xff]   ;;  %v2426_v1 = vld [vmem:[%s3295_s3 + $0x3c8] ss:$16 sps:$4 sm:$0xff]  }
 0x118   :  { %1315 = vmatprep.subr.bf16.mxu0 %v2353_v21  ;;  %1397 = vmatprep.subr.bf16.mxu1 %v2356_v22  ;;  %v2428_v21 = vld [vmem:[%s3295_s3 + $0x3cc] ss:$16 sps:$4 sm:$0xff]   ;;  %v2423_v22 = vld [vmem:[%s3295_s3 + $0x3c0] ss:$16 sps:$4 sm:$0xff]  }
 0x11b   :  { %1316 = vmatpush1.bf16.msra.mxu0 %v2351_v24  ;;  %1398 = vmatpush1.bf16.msra.mxu1 %v2354_v25  ;;  %v466_v24 = vadd.f32 %v2993_v29, %v114_v19  ;;  %v2431_v25 = vld [vmem:[%s3295_s3 + $0x3e4] ss:$16 sps:$4 sm:$0xff]  }
 0x11c   :  { %1317 = vmatprep.subr.bf16.mxu0 %v2359_v26  ;;  %1399 = vmatprep.subr.bf16.mxu1 %v2362_v27  ;;  %v2434_v26 = vld [vmem:[%s3295_s3 + $0x3ec] ss:$16 sps:$4 sm:$0xff]   ;;  %v2429_v27 = vld [vmem:[%s3295_s3 + $0x3e0] ss:$16 sps:$4 sm:$0xff]  }
 0x11d   :  { %v474_v29 = vmax.f32 %v466_v24, 0.0 }
 0x11f   :  { %1318 = vmatpush1.bf16.msra.mxu0 %v2357_v30  ;;  %1400 = vmatpush1.bf16.msra.mxu1 %v2360_v31  ;;  %v2435_v30 = vld [vmem:[%s3299_s7 + $0x40] sm:$0xff]  }
 0x120   :  { %1319 = vmatprep.subr.bf16.mxu0 %v2365_v33  ;;  %1401 = vmatprep.subr.bf16.mxu1 %v2368_v34  ;;  %v2436_v31 = vld [vmem:[%s3299_s7 + $0xc0] sm:$0xff]   ;;  %v478_v34 = vpack.c.bf16 %v474_v29, %v474_v29 }
 0x121   :  { %v2438_v33 = vld [vmem:[%s3299_s7 + $0x80] sm:$0xff]  }
 0x123   :  { %1320 = vmatpush1.bf16.msra.mxu0 %v2363_v39  ;;  %1402 = vmatpush1.bf16.msra.mxu1 %v2366_v40  ;;  %v2443_v39 = vld [vmem:[%s3299_s7 + $0x50] sm:$0xff]  }
 0x124   :  { %1321 = vmatprep.subr.bf16.mxu0 %v2371_v41  ;;  %1403 = vmatprep.subr.bf16.mxu1 %v2374_v42  ;;  %v2444_v40 = vld [vmem:[%s3299_s7 + $0xd0] sm:$0xff]  }
 0x125   :  { %v2445_v41 = vld [vmem:[%s3299_s7 + $0x10] sm:$0xff]  }
 0x126   :  { %v2446_v42 = vld [vmem:[%s3299_s7 + $0x90] sm:$0xff]  }
 0x127   :  { %1322 = vmatpush1.bf16.msra.mxu0 %v2369_v44  ;;  %1404 = vmatpush1.bf16.msra.mxu1 %v2372_v45  ;;  %v2448_v44 = vld [vmem:[%s3299_s7 + $0xd8] sm:$0xff]  }
 0x128   :  { %1323 = vmatprep.subr.bf16.mxu0 %v2377_v46  ;;  %1405 = vmatprep.subr.bf16.mxu1 %v2380_v47  ;;  %v2449_v45 = vld [vmem:[%s3299_s7 + $0x18] sm:$0xff]   ;;  %v2451_v47 = vld [vmem:[%s3299_s7 + $0x60] sm:$0xff]  }
 0x129   :  { %v2450_v46 = vld [vmem:[%s3299_s7 + $0x98] sm:$0xff]  }
 0x12b   :  { %1324 = vmatpush1.bf16.msra.mxu0 %v2375_v48  ;;  %1406 = vmatpush1.bf16.msra.mxu1 %v2378_v49  ;;  %v2452_v48 = vld [vmem:[%s3299_s7 + $0xe0] sm:$0xff]  }
 0x12c   :  { %1325 = vmatprep.subr.bf16.mxu0 %v2383_v50  ;;  %1407 = vmatprep.subr.bf16.mxu1 %v2386_v51  ;;  %v2453_v49 = vld [vmem:[%s3299_s7 + $0x20] sm:$0xff]   ;;  %v2456_v51 = vld [vmem:[%s3299_s7 + $0x68] sm:$0xff]  }
 0x12d   :  { %v2454_v50 = vld [vmem:[%s3299_s7 + $0xa0] sm:$0xff]  }
 0x12f   :  { %1326 = vmatpush1.bf16.msra.mxu0 %v2381_v52  ;;  %1408 = vmatpush1.bf16.msra.mxu1 %v2384_v53  ;;  %v2457_v52 = vld [vmem:[%s3299_s7 + $0xe8] sm:$0xff]  }
 0x130   :  { %1327 = vmatprep.subr.bf16.mxu0 %v2389_v54  ;;  %1409 = vmatprep.subr.bf16.mxu1 %v2392_v55  ;;  %v2458_v53 = vld [vmem:[%s3299_s7 + $0x28] sm:$0xff]   ;;  %v2460_v55 = vld [vmem:[%s3299_s7 + $0x70] sm:$0xff]  }
 0x131   :  { %v2459_v54 = vld [vmem:[%s3299_s7 + $0xa8] sm:$0xff]  }
 0x133   :  { %1328 = vmatpush1.bf16.msra.mxu0 %v2387_v56  ;;  %1410 = vmatpush1.bf16.msra.mxu1 %v2390_v57  ;;  %v2461_v56 = vld [vmem:[%s3299_s7 + $0xf0] sm:$0xff]  }
 0x134   :  { %1329 = vmatprep.subr.bf16.mxu0 %v2395_v58  ;;  %1411 = vmatprep.subr.bf16.mxu1 %v2398_v59  ;;  %v2462_v57 = vld [vmem:[%s3299_s7 + $0x30] sm:$0xff]   ;;  %v2464_v59 = vld [vmem:[%s3299_s7 + $0x78] sm:$0xff]  }
 0x135   :  { %v2463_v58 = vld [vmem:[%s3299_s7 + $0xb0] sm:$0xff]  }
 0x137   :  { %1330 = vmatpush1.bf16.msra.mxu0 %v2393_v60  ;;  %1412 = vmatpush1.bf16.msra.mxu1 %v2396_v61  ;;  %v2465_v60 = vld [vmem:[%s3299_s7 + $0xf8] sm:$0xff]  }
 0x138   :  { %1331 = vmatprep.subr.bf16.mxu0 %v2401_v62  ;;  %1413 = vmatprep.subr.bf16.mxu1 %v2404_v3  ;;  %v2466_v61 = vld [vmem:[%s3299_s7 + $0x38] sm:$0xff]   ;;  %v2516_v3 = vmov 1983009808  }
 0x139   :  { %v2467_v62 = vld [vmem:[%s3299_s7 + $0xb8] sm:$0xff]  }
 0x13b   :  { %1332 = vmatpush1.bf16.msra.mxu0 %v2399_v4  ;;  %1414 = vmatpush1.bf16.msra.mxu1 %v2402_v5  ;;  %v1468_v4 = vunpack.c.l.s4 %v2516_v3 }
 0x13c   :  { %1333 = vmatprep.subr.bf16.mxu0 %v2407_v6  ;;  %1415 = vmatprep.subr.bf16.mxu1 %v2410_v7  ;;  %v1464_v6 = vld [vmem:[%s3298_s6] sm:$0xff] }
 0x13d   :  { %v1469_v5 = vunpack.c.0.s8 %v1468_v4  ;;  %v608_v7 = vld [vmem:[%s3296_s4] sm:$0xf]  ;;  %s2517_s4 = smov [#allocation2]  }
 0x13f   :  { %1334 = vmatpush1.bf16.msra.mxu0 %v2405_v8  ;;  %1416 = vmatpush1.bf16.msra.mxu1 %v2408_v9  ;;  %v1472_v8 = vsub.s32 %v1469_v5, %v2935_v63  ;;  %v1466_v9 = vcombine.high %v1464_v6, %v1464_v6 }
 0x140   :  { %1335 = vmatprep.subr.bf16.mxu0 %v2413_v10  ;;  %1417 = vmatprep.subr.bf16.mxu1 %v2416_v11  ;;  %v613_v10 = vrot.slane %v608_v7, %v2938_v0  ;;  %v621_v11 = vrot.slane %v608_v7, %v3110_v14 }
 0x141   :  { %v1480_v19 = vrot.slane %v1466_v9, %v1472_v8 }
 0x143   :  { %1336 = vmatpush1.bf16.msra.mxu0 %v2411_v12  ;;  %1418 = vmatpush1.bf16.msra.mxu1 %v2414_v13  ;;  %v1438_v12 = vld [vmem:[%s3297_s5] sm:$0xf]  ;;  %v617_v13 = vrot.slane %v608_v7, %v2946_v2  ;;  %s1868_s5 = sshll.u32 %s2517_s4, 4  ;;  %s1869_s5 = int_to_ptr.vmem [resolvable:$true] %s1868_s5 }
 0x144   :  { %1337 = vmatprep.subr.bf16.mxu0 %v2419_v15  ;;  %1419 = vmatprep.subr.bf16.mxu1 %v2422_v16  ;;  %v625_v15 = vrot.slane %v608_v7, %v2977_v23  ;;  %v1443_v63 = vrot.slane %v1438_v12, %v2938_v0  ;;  %s2468_s6 = scalar_lea.vmem %s1869_s5, 128  ;;  %p2473_p1 = scmp.lt.s32.totalorder %s1869_s5, %s1869_s5 }
 0x145   :  { %p2469_p0 = scmp.ne.s32.totalorder %s1869_s5, %s2468_s6  ;;  %p2474_p2 = scmp.lt.s32.totalorder %s2468_s6, %s2468_s6 }
 0x147   :  { %1338 = vmatpush1.bf16.msra.mxu0 %v2417_v17  ;;  %1420 = vmatpush1.bf16.msra.mxu1 %v2420_v18  ;;  %v1473_v17 = vrot.slane %v1464_v6, %v1472_v8  ;;  %p2475_p3 = por %p2474_p2, %p2473_p1 }
 0x148   :  { %1339 = vmatprep.subr.bf16.mxu0 %v2425_v20  ;;  %1421 = vmatprep.subr.bf16.mxu1 %v2428_v21 }
 0x149   :  { %p2476_p4 = pnand %p2475_p3, %p2469_p0 }
 0x14b   :  { %1340 = vmatpush1.bf16.msra.mxu0 %v2423_v22  ;;  %1422 = vmatpush1.bf16.msra.mxu1 %v2426_v1  ;;  %v1451_v22 = vrot.slane %v1438_v12, %v3110_v14 }
 0x14c   :  { %1341 = vmatprep.subr.bf16.mxu0 %v2431_v25  ;;  %1423 = vmatprep.subr.bf16.mxu1 %v2434_v26  ;;  %v1447_v26 = vrot.slane %v1438_v12, %v2946_v2 }
 0x14f   :  { %1342 = vmatpush1.bf16.msra.mxu0 %v2429_v27  ;;  %1424 = vmatpush1.bf16.msra.mxu1 %v2432_v28  ;;  %v1455_v28 = vrot.slane %v1438_v12, %v2977_v23 }
 0x150   :  { %2108 = vmatprep.subr.bf16.mxu0 %v2435_v30  ;;  %2130 = vmatprep.subr.bf16.mxu1 %v2436_v31 }
 0x152   :  { %1344 = vmatmul.mubr.bf16.vlgmr.msra.gmra.mrb[4].mxu0 %v478_v34  ;;  %1426 = vmatmul.mubr.bf16.vlgmr.msra.gmra.mrb[4].mxu1 %v478_v34 }
 0x153   :  { %2109 = vmatpush3.bf16.msra.mxu0 %v2437_v32  ;;  %2131 = vmatpush3.bf16.msra.mxu1 %v2438_v33 }
 0x154   :  { %2110 = vmatprep.subr.bf16.mxu0 %v2439_v35  ;;  %2132 = vmatprep.subr.bf16.mxu1 %v2440_v36  ;;  %v1481_v36 = vcombine.high %v1473_v17, %v1473_v17 }
 0x157   :  { %2111 = vmatpush3.bf16.msra.mxu0 %v2441_v37  ;;  %2133 = vmatpush3.bf16.msra.mxu1 %v2442_v38  ;;  %v1482_v37 = vcombine.high %v1480_v19, %v1480_v19 }
 0x158   :  { %2112 = vmatprep.subr.bf16.mxu0 %v2443_v39  ;;  %2134 = vmatprep.subr.bf16.mxu1 %v2444_v40 }
 0x15b   :  { %2113 = vmatpush3.bf16.msra.mxu0 %v2445_v41  ;;  %2135 = vmatpush3.bf16.msra.mxu1 %v2446_v42 }
 0x15c   :  { %2114 = vmatprep.subr.bf16.mxu0 %v2447_v43  ;;  %2136 = vmatprep.subr.bf16.mxu1 %v2448_v44 }
 0x15f   :  { %2115 = vmatpush3.bf16.msra.mxu0 %v2449_v45  ;;  %2137 = vmatpush3.bf16.msra.mxu1 %v2450_v46 }
 0x160   :  { %2116 = vmatprep.subr.bf16.mxu0 %v2451_v47  ;;  %2138 = vmatprep.subr.bf16.mxu1 %v2452_v48 }
 0x163   :  { %2117 = vmatpush3.bf16.msra.mxu0 %v2453_v49  ;;  %2139 = vmatpush3.bf16.msra.mxu1 %v2454_v50 }
 0x164   :  { %2118 = vmatprep.subr.bf16.mxu0 %v2456_v51  ;;  %2140 = vmatprep.subr.bf16.mxu1 %v2457_v52 }
 0x167   :  { %2119 = vmatpush3.bf16.msra.mxu0 %v2458_v53  ;;  %2141 = vmatpush3.bf16.msra.mxu1 %v2459_v54 }
 0x168   :  { %2120 = vmatprep.subr.bf16.mxu0 %v2460_v55  ;;  %2142 = vmatprep.subr.bf16.mxu1 %v2461_v56 }
 0x16b   :  { %2121 = vmatpush3.bf16.msra.mxu0 %v2462_v57  ;;  %2143 = vmatpush3.bf16.msra.mxu1 %v2463_v58 }
 0x16c   :  { %2122 = vmatprep.subr.bf16.mxu0 %v2464_v59  ;;  %2144 = vmatprep.subr.bf16.mxu1 %v2465_v60 }
 0x16f   :  { %2123 = vmatpush3.bf16.msra.mxu0 %v2466_v61  ;;  %2145 = vmatpush3.bf16.msra.mxu1 %v2467_v62 }
 0x225   :  { %v1345_v16 = vpop.f32.mrb[4].mxu0  ;;  %v1427_v18 = vpop.f32.mrb[4].mxu1 }
 0x226   :  { %v2152_v20 = vadd.f32 %v1345_v16, %v613_v10  ;;  %v2154_v21 = vadd.f32 %v1427_v18, %v621_v11  ;;  %v1347_v1 = vpop.f32.mrb[5].mxu0  ;;  %v1429_v24 = vpop.f32.mrb[5].mxu1 }
 0x227   :  { %v2153_v25 = vadd.f32 %v1347_v1, %v617_v13  ;;  %v2155_v27 = vadd.f32 %v1429_v24, %v625_v15  ;;  %v1349_v29 = vpop.f32.mrb[6].mxu0  ;;  %v1431_v30 = vpop.f32.mrb[6].mxu1 }
 0x228   :  { %v1434_v31 = vmax.f32 %v2152_v20, 0.0  ;;  %v1436_v32 = vmax.f32 %v2154_v21, 0.0  ;;  %v1350_v33 = vpop.f32.mrb[7].mxu0  ;;  %v1432_v34 = vpop.f32.mrb[7].mxu1 }
 0x229   :  { %v1435_v35 = vmax.f32 %v2153_v25, 0.0  ;;  %v1437_v0 = vmax.f32 %v2155_v27, 0.0 }
 0x22a   :  { %v1460_v38 = vmul.f32 %v1443_v63, %v1434_v31  ;;  %v1462_v14 = vmul.f32 %v1451_v22, %v1436_v32 }
 0x22b   :  { %v1461_v39 = vmul.f32 %v1447_v26, %v1435_v35  ;;  %v1463_v40 = vmul.f32 %v1455_v28, %v1437_v0 }
 0x22c   :  { %v1487_v41 = vadd.f32 %v1473_v17, %v1460_v38  ;;  %v1489_v42 = vadd.f32 %v1480_v19, %v1462_v14 }
 0x22d   :  { %v1488_v2 = vadd.f32 %v1481_v36, %v1461_v39  ;;  %v1490_v43 = vadd.f32 %v1482_v37, %v1463_v40 }
 0x22e   :  { %v1514_v47 = vpack.c.bf16 %v1487_v41, %v1487_v41  ;;  %v1516_v48 = vpack.c.bf16 %v1489_v42, %v1489_v42 }
 0x22f   :  { %v1515_v44 = vpack.c.bf16 %v1488_v2, %v1488_v2  ;;  %v1517_v23 = vpack.c.bf16 %v1490_v43, %v1490_v43  ;;  %v1495_v45 = vcombine.low %v1487_v41, %v1488_v2  ;;  %v1496_v46 = vcombine.low %v1489_v42, %v1490_v43 }
 0x231   :  { %1813 = vmatprep.mubr.bf16.mxu0 %v1515_v44  ;;  %1853 = vmatprep.mubr.bf16.mxu1 %v1517_v23  ;;  %v1503_v49 = vrot.slane %v1495_v45, %v1472_v8  ;;  %v1510_v50 = vrot.slane %v1496_v46, %v1472_v8 }
 0x232   :  { %1814 = vmatmul.mubr.bf16.vlgmr.msra.gmra.mrb[8].mxu0 %v1514_v47  ;;  %1854 = vmatmul.mubr.bf16.vlgmr.msra.gmra.mrb[8].mxu1 %v1516_v48 }
 0x233   :  { %v1511_v51 = vcombine.low %v1503_v49, %v1510_v50 }
 0x235   :  { %1513 = vst [vmem:[#allocation2] sm:$0xff] %v1511_v51 }
 0x236   :  { %2479 = shalt.err (!%p2476_p4)
}
 0x237   :  { %s2480_s20 = scalar_lea.hbm %s3301_s9, 128 }
 0x238   :  { %p2481_p5 = scmp.ne.s32.totalorder %s3301_s9, %s2480_s20  ;;  %p2484_p6 = scmp.lt.u32.totalorder %s2480_s20, %s3301_s9 }
 0x23a   :  { %p2486_p7 = pnand %p2484_p6, %p2481_p5 }
 0x23c   :  { %2489 = shalt.err (!%p2486_p7)
}
 0x23d   :  { %1871 = dma.vmem_to_hbm [thread:$0]  %s1869_s5, 128, %s3301_s9, [#allocation3]   ;;  %v2075_v54 = vld [vmem:[%s3300_s8] ss:$0 sm:$0xff] }
 0x23e   :  { %s2518_s3 = smov [#allocation4]  }
 0x23f   :  { %s1878_s1 = sshll.u32 %s2518_s3, 4  ;;  %s1879_s1 = int_to_ptr.vmem [resolvable:$true] %s1878_s1 }
 0x240   :  { %s2490_s9 = scalar_lea.vmem %s1879_s1, 32  ;;  %p2495_p9 = scmp.lt.s32.totalorder %s1879_s1, %s1879_s1 }
 0x241   :  { %p2491_p8 = scmp.ne.s32.totalorder %s1879_s1, %s2490_s9  ;;  %p2496_p10 = scmp.lt.s32.totalorder %s2490_s9, %s2490_s9 }
 0x243   :  { %p2497_p11 = por %p2496_p10, %p2495_p9 }
 0x245   :  { %p2498_p12 = pnand %p2497_p11, %p2491_p8 }
 0x305   :  { %v2124_v52 = vpop.f32.mrb[8].mxu0  ;;  %v2146_v53 = vpop.f32.mrb[8].mxu1 }
 0x306   :  { %v2125_v55 = vpop.f32.mrb[9].mxu0  ;;  %v2147_v56 = vpop.f32.mrb[9].mxu1 }
 0x307   :  { %v2126_v57 = vadd.f32 %v2125_v55, %v2124_v52  ;;  %v2148_v58 = vadd.f32 %v2147_v56, %v2146_v53  ;;  %v2127_v59 = vpop.f32.mrb[10].mxu0  ;;  %v2149_v60 = vpop.f32.mrb[10].mxu1 }
 0x308   :  { %v2128_v61 = vpop.f32.mrb[11].mxu0  ;;  %v2150_v62 = vpop.f32.mrb[11].mxu1 }
 0x309   :  { %v1816_v3 = vadd.f32 %v2126_v57, %v2075_v54 }
 0x30b   :  { %v1856_v4 = vadd.f32 %v2148_v58, %v1816_v3 }
 0x30d   :  { %1861 = vst [vmem:[#allocation4] sm:$0x3] %v1856_v4 }
 0x30e   :  { %2501 = shalt.err (!%p2498_p12)
}
 0x30f   :  { %s2502_s29 = scalar_lea.hbm %s3302_s10, 32 }
 0x310   :  { %p2503_p13 = scmp.ne.s32.totalorder %s3302_s10, %s2502_s29  ;;  %p2506_p0 = scmp.lt.u32.totalorder %s2502_s29, %s3302_s10 }
 0x312   :  { %p2508_p1 = pnand %p2506_p0, %p2503_p13 }
 0x314   :  { %2511 = shalt.err (!%p2508_p1)
}
 0x315   :  { %1881 = dma.vmem_to_hbm [thread:$0]  %s1879_s1, 32, %s3302_s10, [#allocation5]  }
 0x316   :  { %2512 = dma.done.wait [#allocation3], 128  }
 0x317   :  { %2513 = vsyncadd [#allocation3], 4294967168 }
 0x318   :  { %2514 = dma.done.wait [#allocation5], 32  }
 0x319   :  { %2515 = vsyncadd [#allocation5], 4294967264 }
 0x31a   :  { %1888 = vsyncpa [#allocation3], 1 }
 0x31b   :  { %1889 = vsyncpa [#allocation5], 1 }

</bundles_post_ra>
